<compile_context>
chip_gen: v7x
topology: tpu7x:2x2x1
jax: 0.10.0
libtpu: 0.0.40
codegen_flags: <defaults>
</compile_context>

<pallas_src>
import functools

import jax
import jax.numpy as jnp
from jax import lax
from jax.experimental import pallas as pl
from jax.experimental.pallas import tpu as pltpu


# ---------------------------------------------------------------------------
# Kernel 1: fused QKV projection
# ---------------------------------------------------------------------------
def qkv_proj_kernel(x_ref, w_ref, b_ref, o_ref):
    """One (batch, seq-tile) step: qkv = x @ W_qkv + b_qkv, stored lane-dense in bf16."""
    x = x_ref[0].astype(jnp.bfloat16)                                  # (TS, D)
    qkv = jnp.dot(x, w_ref[...], preferred_element_type=jnp.float32)  # (TS, 3D) f32 acc
    o_ref[0] = (qkv + b_ref[...]).astype(o_ref.dtype)


# ---------------------------------------------------------------------------
# Kernel 2: per-(batch, q-tile) attention over ALL heads + fused output projection
# ---------------------------------------------------------------------------
def attention_kernel(q_ref, k_ref, v_ref, wo_ref, bo_ref, o_ref, ctx_ref, *,
                     n_heads, head_dim):
    q_all = q_ref[0]            # (TQ, D) bf16  (1/sqrt(hd) already folded into W_q)
    k_all = k_ref[0]            # (S,  D) bf16
    v_all = v_ref[0]            # (S,  D) bf16

    # Static (trace-time) head loop: 8 small MXU matmuls for scores / PV, each head's
    # context lands in its lane slice of the (TQ, D) bf16 scratch.
    for h in range(n_heads):
        lo = h * head_dim
        hi = lo + head_dim
        qh = q_all[:, lo:hi]                                            # (TQ, hd)
        kh = k_all[:, lo:hi]                                            # (S,  hd)
        vh = v_all[:, lo:hi]                                            # (S,  hd)

        # q @ k^T without materializing a transpose: contract last dims on the MXU.
        scores = lax.dot_general(qh, kh, (((1,), (1,)), ((), ())),
                                 preferred_element_type=jnp.float32)    # (TQ, S) f32

        # Softmax in f32; the reciprocal goes to the EUP slot instead of a VALU divide.
        m = jnp.max(scores, axis=-1, keepdims=True)
        e = jnp.exp(scores - m)
        p = e * pl.reciprocal(jnp.sum(e, axis=-1, keepdims=True), approx=True)

        ctx = jnp.dot(p.astype(jnp.bfloat16), vh,
                      preferred_element_type=jnp.float32)               # (TQ, hd) f32
        ctx_ref[:, lo:hi] = ctx.astype(ctx_ref.dtype)

    # One full-width output projection: (TQ, D) @ (D, D), K = D contraction depth.
    out = jnp.dot(ctx_ref[...], wo_ref[...],
                  preferred_element_type=jnp.float32)                   # (TQ, D) f32
    o_ref[0] = (out + bo_ref[...]).astype(o_ref.dtype)


# ---------------------------------------------------------------------------
# Wrapper
# ---------------------------------------------------------------------------
def self_attention(x, params, n_heads, *, seq_tile=256):
    B, S, D = x.shape
    assert D % n_heads == 0, "d_model must be divisible by n_heads"
    hd = D // n_heads
    TS = min(seq_tile, S)
    TQ = min(seq_tile, S)
    assert S % TS == 0 and S % TQ == 0, "seq_len must be divisible by the seq tile"

    f32 = jnp.float32
    scale = 1.0 / jnp.sqrt(jnp.asarray(hd, f32))

    # Fuse the three projections into one (D, 3D) bf16 weight; fold the softmax scale
    # into the Q projection (parameter prep, done once -- not a per-call activation pass).
    w_qkv = jnp.concatenate(
        [params["wq"] * scale, params["wk"], params["wv"]], axis=1).astype(jnp.bfloat16)
    b_qkv = jnp.concatenate(
        [params["bq"] * scale, params["bk"], params["bv"]], axis=1).astype(f32)  # (1, 3D)
    wo = params["wo"].astype(jnp.bfloat16)                              # (D, D) lane-dense
    bo = params["bo"].astype(f32)                                       # (1, D)

    vmem_limit = 48 * 1024 * 1024   # safe on 64 MiB (v7x) and generous on 128 MiB chips

    # ---- Kernel 1: fused QKV projection ------------------------------------
    qkv = pl.pallas_call(
        qkv_proj_kernel,
        out_shape=jax.ShapeDtypeStruct((B, S, 3 * D), jnp.bfloat16),
        grid_spec=pltpu.PrefetchScalarGridSpec(
            num_scalar_prefetch=0,
            grid=(B, S // TS),
            in_specs=[
                pl.BlockSpec((1, TS, D), lambda b, s: (b, s, 0)),       # x tile
                pl.BlockSpec((D, 3 * D), lambda b, s: (0, 0)),          # W_qkv (constant)
                pl.BlockSpec((1, 3 * D), lambda b, s: (0, 0)),          # b_qkv (constant)
            ],
            out_specs=pl.BlockSpec((1, TS, 3 * D), lambda b, s: (b, s, 0)),
        ),
        compiler_params=pltpu.CompilerParams(
            dimension_semantics=("parallel", "parallel"),
            vmem_limit_bytes=vmem_limit),
    )(x, w_qkv, b_qkv)

    # ---- Kernel 2: attention (all heads per step) + fused output projection -
    # The same (B, S, 3D) buffer is passed three times; the Q / K / V column split
    # (128-aligned blocks of width D) is done by the BlockSpec index maps, so no
    # wrapper-side reshape/transpose HBM round trip is needed.
    kernel2 = functools.partial(attention_kernel, n_heads=n_heads, head_dim=hd)
    out = pl.pallas_call(
        kernel2,
        out_shape=jax.ShapeDtypeStruct((B, S, D), x.dtype),
        grid_spec=pltpu.PrefetchScalarGridSpec(
            num_scalar_prefetch=0,
            grid=(B, S // TQ),                                          # fully parallel
            in_specs=[
                pl.BlockSpec((1, TQ, D), lambda b, qi: (b, qi, 0)),     # Q columns [0:D)
                pl.BlockSpec((1, S, D), lambda b, qi: (b, 0, 1)),       # K columns [D:2D)
                pl.BlockSpec((1, S, D), lambda b, qi: (b, 0, 2)),       # V columns [2D:3D)
                pl.BlockSpec((D, D), lambda b, qi: (0, 0)),             # Wo (constant)
                pl.BlockSpec((1, D), lambda b, qi: (0, 0)),             # bo (constant)
            ],
            out_specs=pl.BlockSpec((1, TQ, D), lambda b, qi: (b, qi, 0)),
            scratch_shapes=[pltpu.VMEM((TQ, D), jnp.bfloat16)],         # per-step ctx slab
        ),
        compiler_params=pltpu.CompilerParams(
            dimension_semantics=("parallel", "parallel"),
            vmem_limit_bytes=vmem_limit),
    )(qkv, qkv, qkv, wo, bo)
    return out


# ---------------------------------------------------------------------------
# Pure-JAX reference mirroring the PyTorch forward.
# With matmul_dtype=bfloat16 it mirrors the kernel's precision policy
# (bf16 matmul operands, f32 accumulation); with float32 it is the exact math.
# ---------------------------------------------------------------------------
def reference_self_attention(x, params, n_heads, matmul_dtype=jnp.float32):
    B, S, D = x.shape
    hd = D // n_heads
    md = matmul_dtype
    rnd = lambda t: t.astype(md).astype(jnp.float32)        # round-trip (no-op for f32)
    mm = lambda a, b: jnp.matmul(a.astype(md), b.astype(md),
                                 preferred_element_type=jnp.float32)

    q = rnd(mm(x, params["wq"]) + params["bq"])
    k = rnd(mm(x, params["wk"]) + params["bk"])
    v = rnd(mm(x, params["wv"]) + params["bv"])

    split = lambda t: t.reshape(B, S, n_heads, hd).transpose(0, 2, 1, 3)
    q, k, v = split(q), split(k), split(v)

    logits = jnp.einsum("bhqd,bhkd->bhqk", q, k) / jnp.sqrt(jnp.float32(hd))
    attn = rnd(jax.nn.softmax(logits, axis=-1))
    ctx = jnp.einsum("bhqk,bhkd->bhqd", attn, v)
    ctx = ctx.transpose(0, 2, 1, 3).reshape(B, S, D)
    return mm(ctx, params["wo"]) + params["bo"]


if __name__ == "__main__":
    # Small shapes consistent with the module's globals (d_model=512, n_heads=8).
    batch, seq, d_model, n_heads = 2, 128, 512, 8

    key = jax.random.PRNGKey(0)
    kx, kq, kk, kv, ko, kbq, kbk, kbv, kbo = jax.random.split(key, 9)

    x = jax.random.normal(kx, (batch, seq, d_model), dtype=jnp.float32)
    wscale = 0.05
    params = {
        "wq": wscale * jax.random.normal(kq, (d_model, d_model), dtype=jnp.float32),
        "wk": wscale * jax.random.normal(kk, (d_model, d_model), dtype=jnp.float32),
        "wv": wscale * jax.random.normal(kv, (d_model, d_model), dtype=jnp.float32),
        "wo": wscale * jax.random.normal(ko, (d_model, d_model), dtype=jnp.float32),
        "bq": wscale * jax.random.normal(kbq, (1, d_model), dtype=jnp.float32),
        "bk": wscale * jax.random.normal(kbk, (1, d_model), dtype=jnp.float32),
        "bv": wscale * jax.random.normal(kbv, (1, d_model), dtype=jnp.float32),
        "bo": wscale * jax.random.normal(kbo, (1, d_model), dtype=jnp.float32),
    }

    out = jax.block_until_ready(self_attention(x, params, n_heads))
    assert out.shape == (batch, seq, d_model)

    # Tight check vs a reference using the same precision policy as the kernel
    # (bf16 MXU operands, f32 accumulation).
    ref_bf16 = reference_self_attention(x, params, n_heads, matmul_dtype=jnp.bfloat16)
    assert jnp.allclose(out, ref_bf16, atol=2e-2, rtol=2e-2), "mismatch vs bf16-policy reference"

    # Loose check vs the exact-f32 PyTorch math (difference is bf16 rounding noise only).
    ref_f32 = reference_self_attention(x, params, n_heads)
    assert jnp.allclose(out, ref_f32, atol=1e-1, rtol=1e-1), "mismatch vs f32 reference"

    print("KERNEL_OK")
</pallas_src>

<mosaic_0001>
module attributes {stable_mosaic.version = 11 : i64} {
  func.func @qkv_proj_kernel(%arg0: i32, %arg1: i32, %arg2: memref<1x128x512xf32, #tpu.memory_space<vmem>>, %arg3: memref<512x1536xbf16, #tpu.memory_space<vmem>>, %arg4: memref<1x1536xf32, #tpu.memory_space<vmem>>, %arg5: memref<1x128x1536xbf16, #tpu.memory_space<vmem>>) attributes {dimension_semantics = [#tpu.dimension_semantics<parallel>, #tpu.dimension_semantics<parallel>], iteration_bounds = array<i64: 2, 1>, scalar_prefetch = 0 : i64, scratch_operands = 0 : i64, tpu.core_type = #tpu.core_type<tc>, window_params = [{transform_indices = @transform_0, window_bounds = array<i64: 1, 128, 512>}, {pipeline_mode = #tpu.pipeline_mode<synchronous>, transform_indices = @transform_1, window_bounds = array<i64: 512, 1536>}, {pipeline_mode = #tpu.pipeline_mode<synchronous>, transform_indices = @transform_2, window_bounds = array<i64: 1, 1536>}, {transform_indices = @transform_3, window_bounds = array<i64: 1, 128, 1536>}]} {
    %c0 = arith.constant 0 : index
    %c0_0 = arith.constant 0 : index
    %c0_1 = arith.constant 0 : index
    %0 = vector.load %arg2[%c0, %c0_0, %c0_1] : memref<1x128x512xf32, #tpu.memory_space<vmem>>, vector<1x128x512xf32>
    %1 = vector.shape_cast %0 : vector<1x128x512xf32> to vector<128x512xf32>
    %2 = arith.truncf %1 : vector<128x512xf32> to vector<128x512xbf16>
    %c0_2 = arith.constant 0 : index
    %c0_3 = arith.constant 0 : index
    %3 = vector.load %arg3[%c0_2, %c0_3] : memref<512x1536xbf16, #tpu.memory_space<vmem>>, vector<512x1536xbf16>
    %cst = arith.constant dense<0.000000e+00> : vector<128x1536xf32>
    %4 = tpu.matmul %2, %3, %cst {dimension_numbers = #tpu.dot_dimension_numbers<[1], [0], [0], [1], [0, 0, 1, 1], [], []>} : vector<128x512xbf16>, vector<512x1536xbf16>, vector<128x1536xf32> -> vector<128x1536xf32>
    %c0_4 = arith.constant 0 : index
    %c0_5 = arith.constant 0 : index
    %5 = vector.load %arg4[%c0_4, %c0_5] : memref<1x1536xf32, #tpu.memory_space<vmem>>, vector<1x1536xf32>
    %6 = vector.broadcast %5 : vector<1x1536xf32> to vector<128x1536xf32>
    %7 = arith.addf %4, %6 : vector<128x1536xf32>
    %8 = arith.truncf %7 : vector<128x1536xf32> to vector<128x1536xbf16>
    %c0_6 = arith.constant 0 : index
    %c0_7 = arith.constant 0 : index
    %c0_8 = arith.constant 0 : index
    %9 = vector.load %arg5[%c0_6, %c0_7, %c0_8] : memref<1x128x1536xbf16, #tpu.memory_space<vmem>>, vector<1x128x1536xbf16>
    %10 = vector.shape_cast %9 : vector<1x128x1536xbf16> to vector<128x1536xbf16>
    %11 = vector.shape_cast %8 : vector<128x1536xbf16> to vector<1x128x1536xbf16>
    tpu.vector_store %arg5[%c0_6, %c0_7, %c0_8], %11 {strides = array<i32>} : memref<1x128x1536xbf16, #tpu.memory_space<vmem>>, vector<1x128x1536xbf16>,
    return
  }
  func.func @transform_0(%arg0: i32, %arg1: i32) -> (i32, i32, i32) {
    %c0_i32 = arith.constant 0 : i32
    %c0_i32_0 = arith.constant 0 : i32
    return %arg0, %arg1, %c0_i32 : i32, i32, i32
  }
  func.func @transform_1(%arg0: i32, %arg1: i32) -> (i32, i32) {
    %c0_i32 = arith.constant 0 : i32
    %c0_i32_0 = arith.constant 0 : i32
    %c0_i32_1 = arith.constant 0 : i32
    return %c0_i32, %c0_i32_0 : i32, i32
  }
  func.func @transform_2(%arg0: i32, %arg1: i32) -> (i32, i32) {
    %c0_i32 = arith.constant 0 : i32
    %c0_i32_0 = arith.constant 0 : i32
    %c0_i32_1 = arith.constant 0 : i32
    return %c0_i32, %c0_i32_0 : i32, i32
  }
  func.func @transform_3(%arg0: i32, %arg1: i32) -> (i32, i32, i32) {
    %c0_i32 = arith.constant 0 : i32
    %c0_i32_0 = arith.constant 0 : i32
    return %arg0, %arg1, %c0_i32 : i32, i32, i32
  }
}

</mosaic_0001>

<bundles_post_ra>
// kernel: tpu_custom_call.1
= control target key start
LH: loop header
LB: loop body
LE: loop exit
PB: predicated region body
PF: predicated region fallthrough
CT: control target
= control target key end

     0   :  { %8 = vsyncpa [#allocation3], 0  ;;  %s7631_s0 = inlined_call_operand.hbm [shape: f32[2,128,512], index: 0, kind: input, shape index: {}]   ;;  %s7632_s1 = inlined_call_operand.hbm [shape: bf16[512,1536], index: 1, kind: input, shape index: {}]   ;;  %s7633_s2 = inlined_call_operand.hbm [shape: f32[1,1536], index: 2, kind: input, shape index: {}]   ;;  %s7634_s3 = inlined_call_operand.hbm [shape: bf16[2,128,1536], index: 3, kind: output, shape index: {}]  }
   0x1   :  { %10 = vsyncpa [#allocation3 + $0x1], 0 }
   0x2   :  { %11 = vsyncpa [#allocation6], 0 }
   0x3   :  { %12 = vsyncpa [#allocation4], 0 }
   0x4   :  { %14 = vsyncpa [#allocation4 + $0x1], 0  ;;  %s6700_s12 = smov 0   ;;  %s6702_s13 = smov 0  }
   0x5   :  { %s6704_s14 = smov 0   ;;  %s6706_s15 = smov 0  }
   0x6   :  { %s6708_s16 = smov 0   ;;  %s6710_s17 = smov 0  }
   0x7 LB: > { %s4852_s18 = sadd.s32 4294967295, %s6668_s17   ;;  %s4853_s19 = sadd.s32 4294967294, %s6668_s17   ;;  %s6668_s17 = sphi %s6710_s17, %s20_s17   ;;  %s6664_s16 = sphi %s6708_s16, %s7656_s16   ;;  %s6660_s15 = sphi %s6706_s15, %s7655_s15   ;;  %s6656_s14 = sphi %s6704_s14, %s7654_s14   ;;  %s6652_s13 = sphi %s6702_s13, %s7653_s13   ;;  %s6648_s12 = sphi %s6700_s12, %s7652_s12  }
   0x8   : > { %p54_p0 = scmp.ne.s32.totalorder %s6652_s13, %s6648_s12  ;;  %p6734_p1 = scmp.eq.s32.totalorder %s4852_s18, 0 }
   0x9   : > { %p6738_p2 = scmp.eq.s32.totalorder %s4852_s18, 1  ;;  %p128_p3 = scmp.eq.s32.totalorder %s4853_s19, 1 }
   0xa   : > { %s7639_s20 = scalar_select %p6734_p1, 1, 0 }
   0xb   : > { %p6744_p4 = por %p6734_p1, %p54_p0  ;;  %p4854_p5 = scmp.ge.s32.totalorder %s6668_s17, 1 }
   0xc   : > { %p6749_p6 = por %p128_p3, %p54_p0  ;;  %p135_p7 = scmp.lt.s32.totalorder %s6668_s17, 3 }
   0xd   : > { %s7641_s22 = scalar_select %p6744_p4, 1, 0 }
   0xe   : > { %s7642_s23 = scalar_select %p6749_p6, 1, 0 }
   0xf   : > { %p6754_p8 = pnand %p4854_p5, %p135_p7  ;;  %s6670_s25 = smov [#allocation5]  }
  0x10   : > { %s147_s26 = sshll.u32 %s6670_s25, 4  ;;  %s6671_s28 = smov [#allocation7]   ;;  %s6758_s26 = int_to_ptr.vmem [resolvable:$true] %s147_s26 }
  0x11   : > { %p5843_p9 = pneg %p6754_p8  ;;  %s161_s29 = sshll.u32 %s6671_s28, 4  ;;  %s6769_s29 = int_to_ptr.vmem [resolvable:$true] %s161_s29 }
  0x12   : > { %s6496_s5 = scalar_lea.hbm %s7632_s1, 49152 }
  0x13   : > { %p6765_p11 = pnand %p5843_p9, %p6734_p1  ;;  %p6497_p12 = scmp.ne.s32.totalorder %s7632_s1, %s6496_s5 }
  0x14   : > { %p6503_p5 = scmp.lt.u32.totalorder %s6496_s5, %s7632_s1 }
  0x15   : > { %p6498_p13 = pneg %p6765_p11 }
  0x17   : > { %p6499_p0 = pnand %p6498_p13, %p6497_p12 }
  0x19   : > { %p6500_p3 = pneg %p6499_p0 }
  0x1b   : > { %p6505_p7 = pnand %p6503_p5, %p6500_p3 }
  0x1d   : > { %6508 = shalt.err (!%p6505_p7)
}
  0x1e   : > { %s6509_s10 = scalar_lea.vmem %s6758_s26, 49152  ;;  %p6517_p1 = scmp.lt.s32.totalorder %s6758_s26, %s6758_s26 }
  0x1f   : > { %p6510_p9 = scmp.ne.s32.totalorder %s6758_s26, %s6509_s10  ;;  %p6518_p12 = scmp.lt.s32.totalorder %s6509_s10, %s6509_s10 }
  0x21   : > { %p6512_p10 = pnand %p6510_p9, %p6498_p13  ;;  %p6519_p0 = por %p6518_p12, %p6517_p1 }
  0x23   : > { %p6513_p6 = pneg %p6512_p10 }
  0x25   : > { %p6520_p4 = pnand %p6519_p0, %p6513_p6 }
  0x27   : > { %6523 = shalt.err (!%p6520_p4)
}
  0x28   : > { %s6672_s11 = smov 768   ;;  %s6673_s18 = smov 48  }
  0x29   : > { %5846 = dma.hbm_to_vmem [thread:$0]  (!%p6765_p11), %s7632_s1, 49152, %s6758_s26, [#allocation6], %s6672_s11, %s6672_s11, %s6673_s18  }
  0x2a   : > { %s6524_s4 = scalar_lea.hbm %s7633_s2, 192 }
  0x2b   : > { %p6525_p1 = scmp.ne.s32.totalorder %s7633_s2, %s6524_s4  ;;  %p6531_p10 = scmp.lt.u32.totalorder %s6524_s4, %s7633_s2 }
  0x2d   : > { %p6527_p4 = pnand %p6525_p1, %p6498_p13 }
  0x2f   : > { %p6528_p6 = pneg %p6527_p4 }
  0x31   : > { %p6533_p3 = pnand %p6531_p10, %p6528_p6 }
  0x33   : > { %6536 = shalt.err (!%p6533_p3)
}
  0x34   : > { %s6537_s26 = scalar_lea.vmem %s6769_s29, 192  ;;  %p6545_p12 = scmp.lt.s32.totalorder %s6769_s29, %s6769_s29 }
  0x35   : > { %p6538_p5 = scmp.ne.s32.totalorder %s6769_s29, %s6537_s26  ;;  %p6546_p0 = scmp.lt.s32.totalorder %s6537_s26, %s6537_s26 }
  0x37   : > { %p6540_p7 = pnand %p6538_p5, %p6498_p13  ;;  %p6547_p1 = por %p6546_p0, %p6545_p12 }
  0x39   : > { %p6541_p9 = pneg %p6540_p7 }
  0x3b   : > { %p6548_p4 = pnand %p6547_p1, %p6541_p9 }
  0x3d   : > { %6551 = shalt.err (!%p6548_p4)
}
  0x3e   : > { %5849 = dma.hbm_to_vmem [thread:$0]  (!%p6765_p11), %s7633_s2, 192, %s6769_s29, [#allocation6]  }
  0x3f   : > { %s32_s11 = sadd.s32 1, %s6664_s16  ;;  %s41_s18 = sadd.s32 1, %s6656_s14 }
  0x40   : > { %p34_p13 = scmp.ge.s32.totalorder %s32_s11, 2  ;;  %p48_p6 = scmp.ne.s32.totalorder %s6656_s14, %s6652_s13 }
  0x41   : > { %p49_p10 = scmp.eq.s32.totalorder %s6668_s17, 0  ;;  %p5860_p3 = scmp.lt.s32.totalorder %s6668_s17, 2 }
  0x42   : > { %s7658_s11 = smov (%p34_p13, %s32_s11), 0  ;;  %p6833_p7 = por %p6738_p2, %p48_p6 }
  0x43   : > { %p50_p5 = por %p49_p10, %p48_p6  ;;  %s36_s19 = ssub.s32 %s6664_s16, %s7658_s11 }
  0x44   : > { %s7645_s27 = scalar_select %p6833_p7, 1, 0 }
  0x45   : > { %s172_s25 = sand.u32 1, %s6656_s14   ;;  %p39_p9 = scmp.eq.s32.totalorder %s36_s19, 0 }
  0x46   : > { %s4858_s29 = sshll.u32 %s172_s25, 9  ;;  %s5348_s28 = sshll.u32 %s6664_s16, 13 }
  0x47   : > { %s6842_s30 = scalar_select %p39_p9, %s6656_s14, %s41_s18  }
  0x48   : > { %s6847_s6 = scalar_lea.hbm %s7631_s0, %s5348_s28  ;;  %s176_s21 = scalar_lea.vmem [#allocation2], %s4858_s29 }
  0x49   : > { %s186_s7 = sshll.u32 %s176_s21, 4  ;;  %p6851_p2 = pnand %p5860_p3, %p50_p5  ;;  %s6855_s7 = int_to_ptr.vmem [resolvable:$true] %s186_s7 }
  0x4a   : > { %s6857_s26 = scalar_lea.sflag [#allocation3], %s172_s25  ;;  %s6552_s9 = scalar_lea.hbm %s6847_s6, 8192 }
  0x4b   : > { %p6553_p11 = scmp.ne.s32.totalorder %s6847_s6, %s6552_s9  ;;  %p6554_p12 = pneg %p6851_p2 }
  0x4c   : > { %s6557_s19 = scalar_lea.hbm %s7631_s0, 16384  ;;  %p6558_p4 = scmp.lt.u32.totalorder %s6847_s6, %s7631_s0 }
  0x4d   : > { %p6555_p0 = pnand %p6554_p12, %p6553_p11  ;;  %p6559_p13 = scmp.lt.u32.totalorder %s6557_s19, %s6552_s9 }
  0x4e   : > { %p6561_p10 = scmp.lt.u32.totalorder %s6552_s9, %s6847_s6 }
  0x4f   : > { %p6556_p1 = pneg %p6555_p0  ;;  %p6560_p6 = por %p6559_p13, %p6558_p4 }
  0x51   : > { %p6562_p3 = por %p6561_p10, %p6560_p6 }
  0x53   : > { %p6563_p5 = pnand %p6562_p3, %p6556_p1 }
  0x55   : > { %6566 = shalt.err (!%p6563_p5)
}
  0x56   : > { %s6567_s25 = scalar_lea.vmem %s6855_s7, 8192  ;;  %s6674_s4 = smov [#allocation2]  }
  0x57   : > { %p6568_p9 = scmp.ne.s32.totalorder %s6855_s7, %s6567_s25  ;;  %s6572_s5 = sshll.u32 %s6674_s4, 4  ;;  %s6573_s5 = int_to_ptr.vmem [resolvable:$false] %s6572_s5 }
  0x58   : > { %s6574_s21 = scalar_lea.vmem %s6573_s5, 16384  ;;  %p6575_p7 = scmp.lt.s32.totalorder %s6855_s7, %s6573_s5 }
  0x59   : > { %p6570_p11 = pnand %p6568_p9, %p6554_p12  ;;  %p6576_p4 = scmp.lt.s32.totalorder %s6574_s21, %s6567_s25 }
  0x5b   : > { %p6571_p0 = pneg %p6570_p11  ;;  %p6577_p13 = por %p6576_p4, %p6575_p7 }
  0x5d   : > { %p6578_p6 = pnand %p6577_p13, %p6571_p0 }
  0x5f   : > { %6581 = shalt.err (!%p6578_p6)
}
  0x60   : > { %s6675_s9 = smov 512   ;;  %s6676_s10 = smov 32  }
  0x61   : > { %5853 = dma.hbm_to_vmem [thread:$0]  (!%p6851_p2), %s6847_s6, 8192, %s6855_s7, %s6857_s26, %s6675_s9, %s6675_s9, %s6676_s10  }
  0x62   : > { %198 = sbr.rel (%p6754_p8) target bundleno = 784 (0x310), region = 32  ;;  %s6888_s18 = sand.u32 (!%p6754_p8), 1, %s6652_s13  }
  0x63   : > { %s4862_s19 = sshll.u32 (!%p6754_p8), %s6888_s18, 9  ;;  %s201_s29 = scalar_lea.sflag (!%p6754_p8), [#allocation3], %s6888_s18 }
  0x64   : > { %s6892_s28 = scalar_lea.vmem (!%p6754_p8), [#allocation2], %s4862_s19  ;;  %p7647_p7 = scmp.ne.s32.totalorder (!%p6754_p8), %s7641_s22, 0 }
  0x69   : > { %6635 = dma.done.wait (%p7647_p7), %s201_s29, 8192  }
  0x6a   : > { %6637 = vsyncadd (%p7647_p7), %s201_s29, 4294959104  ;;  %p7648_p2 = scmp.ne.s32.totalorder %s7639_s20, 0 }
  0x6c   : > { %6639 = dma.done.wait (%p7648_p2), [#allocation6], 49344  }
  0x6d   : > { %6641 = vsyncadd (%p7648_p2), [#allocation6], 4294917952  ;;  %v5920_v0 = vld [vmem:[#allocation5 + $0x4] ss:$48 sps:$4 sm:$0xff]   ;;  %v5922_v1 = vld [vmem:[#allocation5 + $0xc] ss:$48 sps:$4 sm:$0xff]  }
  0x6e   : > { %2701 = vmatprep.subr.bf16.mxu0 %v5920_v0  ;;  %v5924_v2 = vld [vmem:[#allocation5] ss:$48 sps:$4 sm:$0xff]   ;;  %v5925_v3 = vld [vmem:[#allocation5 + $0x8] ss:$48 sps:$4 sm:$0xff]   ;;  %2927 = vmatprep.subr.bf16.mxu1 %v5922_v1  ;;  %v5926_v4 = vld [vmem:[#allocation5 + $0x64] ss:$48 sps:$4 sm:$0xff]  }
  0x6f   : > { %2702 = vmatpush1.bf16.msra.mxu0 %v5924_v2  ;;  %2928 = vmatpush1.bf16.msra.mxu1 %v5925_v3  ;;  %v5928_v5 = vld [vmem:[#allocation5 + $0x6c] ss:$48 sps:$4 sm:$0xff]   ;;  %v5930_v6 = vld [vmem:[#allocation5 + $0x60] ss:$48 sps:$4 sm:$0xff]   ;;  %v5931_v7 = vld [vmem:[#allocation5 + $0x68] ss:$48 sps:$4 sm:$0xff]  }
  0x70   : > { %2703 = vmatprep.subr.bf16.mxu0 %v5926_v4  ;;  %2929 = vmatprep.subr.bf16.mxu1 %v5928_v5  ;;  %v5932_v8 = vld [vmem:[#allocation5 + $0xc4] ss:$48 sps:$4 sm:$0xff]   ;;  %v5934_v9 = vld [vmem:[#allocation5 + $0xcc] ss:$48 sps:$4 sm:$0xff]   ;;  %v5936_v10 = vld [vmem:[#allocation5 + $0xc0] ss:$48 sps:$4 sm:$0xff]  }
  0x71   : > { %v5937_v11 = vld [vmem:[#allocation5 + $0xc8] ss:$48 sps:$4 sm:$0xff]   ;;  %v5938_v12 = vld [vmem:[#allocation5 + $0x124] ss:$48 sps:$4 sm:$0xff]   ;;  %v5940_v13 = vld [vmem:[#allocation5 + $0x12c] ss:$48 sps:$4 sm:$0xff]  }
  0x72   : > { %v5942_v14 = vld [vmem:[#allocation5 + $0x120] ss:$48 sps:$4 sm:$0xff]   ;;  %v5943_v15 = vld [vmem:[#allocation5 + $0x128] ss:$48 sps:$4 sm:$0xff]   ;;  %v5944_v16 = vld [vmem:[#allocation5 + $0x184] ss:$48 sps:$4 sm:$0xff]  }
  0x73   : > { %2704 = vmatpush1.bf16.msra.mxu0 %v5930_v6  ;;  %2930 = vmatpush1.bf16.msra.mxu1 %v5931_v7  ;;  %v5946_v17 = vld [vmem:[#allocation5 + $0x18c] ss:$48 sps:$4 sm:$0xff]   ;;  %v5948_v18 = vld [vmem:[#allocation5 + $0x180] ss:$48 sps:$4 sm:$0xff]   ;;  %v5949_v19 = vld [vmem:[#allocation5 + $0x188] ss:$48 sps:$4 sm:$0xff]  }
  0x74   : > { %2705 = vmatprep.subr.bf16.mxu0 %v5932_v8  ;;  %2931 = vmatprep.subr.bf16.mxu1 %v5934_v9  ;;  %v5950_v20 = vld [vmem:[#allocation5 + $0x1e4] ss:$48 sps:$4 sm:$0xff]   ;;  %v5952_v21 = vld [vmem:[#allocation5 + $0x1ec] ss:$48 sps:$4 sm:$0xff]   ;;  %v5954_v22 = vld [vmem:[#allocation5 + $0x1e0] ss:$48 sps:$4 sm:$0xff]  }
  0x75   : > { %v5955_v23 = vld [vmem:[#allocation5 + $0x1e8] ss:$48 sps:$4 sm:$0xff]   ;;  %v5956_v24 = vld [vmem:[#allocation5 + $0x244] ss:$48 sps:$4 sm:$0xff]   ;;  %v5958_v25 = vld [vmem:[#allocation5 + $0x24c] ss:$48 sps:$4 sm:$0xff]  }
  0x76   : > { %v5960_v26 = vld [vmem:[#allocation5 + $0x240] ss:$48 sps:$4 sm:$0xff]   ;;  %v5961_v27 = vld [vmem:[#allocation5 + $0x248] ss:$48 sps:$4 sm:$0xff]   ;;  %v5962_v28 = vld [vmem:[#allocation5 + $0x2a4] ss:$48 sps:$4 sm:$0xff]  }
  0x77   : > { %2706 = vmatpush1.bf16.msra.mxu0 %v5936_v10  ;;  %2932 = vmatpush1.bf16.msra.mxu1 %v5937_v11  ;;  %v5964_v29 = vld [vmem:[#allocation5 + $0x2ac] ss:$48 sps:$4 sm:$0xff]   ;;  %v5966_v30 = vld [vmem:[#allocation5 + $0x2a0] ss:$48 sps:$4 sm:$0xff]   ;;  %v5967_v31 = vld [vmem:[#allocation5 + $0x2a8] ss:$48 sps:$4 sm:$0xff]  }
  0x78   : > { %2707 = vmatprep.subr.bf16.mxu0 %v5938_v12  ;;  %2933 = vmatprep.subr.bf16.mxu1 %v5940_v13  ;;  %v5968_v32 = vld [vmem:[#allocation5 + $0x304] ss:$48 sps:$4 sm:$0xff]   ;;  %v5970_v33 = vld [vmem:[#allocation5 + $0x30c] ss:$48 sps:$4 sm:$0xff]   ;;  %v5972_v34 = vld [vmem:[#allocation5 + $0x300] ss:$48 sps:$4 sm:$0xff]  }
  0x79   : > { %v5973_v35 = vld [vmem:[#allocation5 + $0x308] ss:$48 sps:$4 sm:$0xff]   ;;  %v5974_v36 = vld [vmem:[#allocation5 + $0x364] ss:$48 sps:$4 sm:$0xff]   ;;  %v5976_v37 = vld [vmem:[#allocation5 + $0x36c] ss:$48 sps:$4 sm:$0xff]  }
  0x7a   : > { %v5978_v38 = vld [vmem:[#allocation5 + $0x360] ss:$48 sps:$4 sm:$0xff]   ;;  %v5979_v39 = vld [vmem:[#allocation5 + $0x368] ss:$48 sps:$4 sm:$0xff]   ;;  %v5980_v40 = vld [vmem:[#allocation5 + $0x3c4] ss:$48 sps:$4 sm:$0xff]  }
  0x7b   : > { %2708 = vmatpush1.bf16.msra.mxu0 %v5942_v14  ;;  %2934 = vmatpush1.bf16.msra.mxu1 %v5943_v15  ;;  %v5982_v41 = vld [vmem:[#allocation5 + $0x3cc] ss:$48 sps:$4 sm:$0xff]   ;;  %v5984_v42 = vld [vmem:[#allocation5 + $0x3c0] ss:$48 sps:$4 sm:$0xff]   ;;  %v5985_v43 = vld [vmem:[#allocation5 + $0x3c8] ss:$48 sps:$4 sm:$0xff]  }
  0x7c   : > { %2709 = vmatprep.subr.bf16.mxu0 %v5944_v16  ;;  %2935 = vmatprep.subr.bf16.mxu1 %v5946_v17  ;;  %v5986_v44 = vld [vmem:[#allocation5 + $0x424] ss:$48 sps:$4 sm:$0xff]   ;;  %v5988_v45 = vld [vmem:[#allocation5 + $0x42c] ss:$48 sps:$4 sm:$0xff]   ;;  %v5990_v47 = vld [vmem:[#allocation5 + $0x420] ss:$48 sps:$4 sm:$0xff]  }
  0x7d   : > { %v238_v46 = vld [vmem:[%s6892_s28 + $0x8] sm:$0xff]  ;;  %v5992_v50 = vld [vmem:[#allocation5 + $0x484] ss:$48 sps:$4 sm:$0xff]   ;;  %v5996_v53 = vld [vmem:[#allocation5 + $0x480] ss:$48 sps:$4 sm:$0xff]   ;;  %s5829_s20 = smul.u32 768, %s6888_s18 }
  0x7e   : > { %v5991_v48 = vld [vmem:[#allocation5 + $0x428] ss:$48 sps:$4 sm:$0xff]   ;;  %v5994_v52 = vld [vmem:[#allocation5 + $0x48c] ss:$48 sps:$4 sm:$0xff]   ;;  %v5998_v55 = vld [vmem:[#allocation5 + $0x4e4] ss:$48 sps:$4 sm:$0xff]  }
  0x7f   : > { %2710 = vmatpush1.bf16.msra.mxu0 %v5948_v18  ;;  %2936 = vmatpush1.bf16.msra.mxu1 %v5949_v19  ;;  %v242_v49 = vld [vmem:[%s6892_s28 + $0x28] sm:$0xff]  ;;  %v6002_v57 = vld [vmem:[#allocation5 + $0x4e0] ss:$48 sps:$4 sm:$0xff]   ;;  %v6004_v59 = vld [vmem:[#allocation5 + $0x544] ss:$48 sps:$4 sm:$0xff]   ;;  %s7213_s22 = scalar_lea.vmem [#allocation8], %s5829_s20 }
  0x80   : > { %2711 = vmatprep.subr.bf16.mxu0 %v5950_v20  ;;  %2937 = vmatprep.subr.bf16.mxu1 %v5952_v21  ;;  %v6904_v51 = vpack.c.bf16 %v242_v49, %v238_v46  ;;  %v5997_v54 = vld [vmem:[#allocation5 + $0x488] ss:$48 sps:$4 sm:$0xff]   ;;  %v6000_v56 = vld [vmem:[#allocation5 + $0x4ec] ss:$48 sps:$4 sm:$0xff]   ;;  %v6008_v61 = vld [vmem:[#allocation5 + $0x540] ss:$48 sps:$4 sm:$0xff]  }
  0x81   : > { %v6003_v58 = vld [vmem:[#allocation5 + $0x4e8] ss:$48 sps:$4 sm:$0xff]   ;;  %v6006_v60 = vld [vmem:[#allocation5 + $0x54c] ss:$48 sps:$4 sm:$0xff]   ;;  %v6010_v63 = vld [vmem:[#allocation5 + $0x5a4] ss:$48 sps:$4 sm:$0xff]  }
  0x82   : > { %2733 = vmatprep.mubr.bf16.mxu0 %v6904_v51  ;;  %2959 = vmatprep.mubr.bf16.mxu1 %v6904_v51  ;;  %v6009_v62 = vld [vmem:[#allocation5 + $0x548] ss:$48 sps:$4 sm:$0xff]   ;;  %v6012_v0 = vld [vmem:[#allocation5 + $0x5ac] ss:$48 sps:$4 sm:$0xff]   ;;  %v6014_v1 = vld [vmem:[#allocation5 + $0x5a0] ss:$48 sps:$4 sm:$0xff]  }
  0x83   : > { %2712 = vmatpush1.bf16.msra.mxu0 %v5954_v22  ;;  %2938 = vmatpush1.bf16.msra.mxu1 %v5955_v23  ;;  %v6015_v2 = vld [vmem:[#allocation5 + $0x5a8] ss:$48 sps:$4 sm:$0xff]   ;;  %v237_v3 = vld [vmem:[%s6892_s28] sm:$0xff]  ;;  %v6021_v6 = vld [vmem:[#allocation5 + $0x60c] ss:$48 sps:$4 sm:$0xff]   ;;  %s5830_s24 = smul.u32 12288, %s6660_s15 }
  0x84   : > { %2713 = vmatprep.subr.bf16.mxu0 %v5956_v24  ;;  %2939 = vmatprep.subr.bf16.mxu1 %v5958_v25  ;;  %v241_v4 = vld [vmem:[%s6892_s28 + $0x20] sm:$0xff]  ;;  %v6019_v9 = vld [vmem:[#allocation5 + $0x608] ss:$48 sps:$4 sm:$0xff]   ;;  %v6027_v13 = vld [vmem:[#allocation5 + $0x66c] ss:$48 sps:$4 sm:$0xff]   ;;  %s4746_s6 = sshll.u32 %s7213_s22, 4  ;;  %s7578_s6 = int_to_ptr.vmem [resolvable:$true] %s4746_s6 }
  0x85   : > { %v6018_v5 = vld [vmem:[#allocation5 + $0x604] ss:$48 sps:$4 sm:$0xff]   ;;  %v6016_v7 = vld [vmem:[#allocation5 + $0x600] ss:$48 sps:$4 sm:$0xff]   ;;  %v6910_v8 = vpack.c.bf16 %v241_v4, %v237_v3  ;;  %v246_v10 = vld [vmem:[%s6892_s28 + $0x48] sm:$0xff]  ;;  %s7576_s8 = scalar_lea.hbm %s7634_s3, %s5830_s24  ;;  %s4730_s26 = scalar_lea.sflag [#allocation4], %s6888_s18 }
  0x86   : > { %v250_v11 = vld [vmem:[%s6892_s28 + $0x68] sm:$0xff]  ;;  %v6024_v12 = vld [vmem:[#allocation5 + $0x664] ss:$48 sps:$4 sm:$0xff]   ;;  %v6022_v14 = vld [vmem:[#allocation5 + $0x660] ss:$48 sps:$4 sm:$0xff]   ;;  %s6582_s25 = scalar_lea.vmem %s7578_s6, 12288 }
  0x87   : > { %2714 = vmatpush1.bf16.msra.mxu0 %v5960_v26  ;;  %2940 = vmatpush1.bf16.msra.mxu1 %v5961_v27  ;;  %v6914_v15 = vpack.c.bf16 %v250_v11, %v246_v10  ;;  %v6025_v16 = vld [vmem:[#allocation5 + $0x668] ss:$48 sps:$4 sm:$0xff]   ;;  %v245_v17 = vld [vmem:[%s6892_s28 + $0x40] sm:$0xff]  ;;  %v6033_v20 = vld [vmem:[#allocation5 + $0x6cc] ss:$48 sps:$4 sm:$0xff]   ;;  %p6583_p8 = scmp.ne.s32.totalorder %s7578_s6, %s6582_s25  ;;  %p7649_p12 = scmp.ne.s32.totalorder %s7645_s27, 0 }
  0x88   : > { %2715 = vmatprep.subr.bf16.mxu0 %v5962_v28  ;;  %2941 = vmatprep.subr.bf16.mxu1 %v5964_v29  ;;  %v249_v18 = vld [vmem:[%s6892_s28 + $0x60] sm:$0xff]  ;;  %v6031_v22 = vld [vmem:[#allocation5 + $0x6c8] ss:$48 sps:$4 sm:$0xff]   ;;  %v6039_v27 = vld [vmem:[#allocation5 + $0x72c] ss:$48 sps:$4 sm:$0xff]   ;;  %s6677_s4 = smov [#allocation8]  }
  0x89   : > { %v6030_v19 = vld [vmem:[#allocation5 + $0x6c4] ss:$48 sps:$4 sm:$0xff]   ;;  %v6028_v21 = vld [vmem:[#allocation5 + $0x6c0] ss:$48 sps:$4 sm:$0xff]   ;;  %v6922_v23 = vpack.c.bf16 %v249_v18, %v245_v17  ;;  %v254_v24 = vld [vmem:[%s6892_s28 + $0x88] sm:$0xff]  ;;  %p6584_p1 = pnand %p6583_p8, %p7649_p12  ;;  %s6586_s5 = sshll.u32 %s6677_s4, 4  ;;  %s6587_s5 = int_to_ptr.vmem [resolvable:$false] %s6586_s5 }
  0x8a   : > { %v258_v25 = vld [vmem:[%s6892_s28 + $0xa8] sm:$0xff]  ;;  %v6036_v26 = vld [vmem:[#allocation5 + $0x724] ss:$48 sps:$4 sm:$0xff]   ;;  %v6034_v29 = vld [vmem:[#allocation5 + $0x720] ss:$48 sps:$4 sm:$0xff]   ;;  %s6588_s21 = scalar_lea.vmem %s6587_s5, 24576  ;;  %p6589_p3 = scmp.lt.s32.totalorder %s7578_s6, %s6587_s5 }
  0x8b   : > { %2716 = vmatpush1.bf16.msra.mxu0 %v5966_v30  ;;  %2942 = vmatpush1.bf16.msra.mxu1 %v5967_v31  ;;  %v6926_v28 = vpack.c.bf16 %v258_v25, %v254_v24  ;;  %v6037_v30 = vld [vmem:[#allocation5 + $0x728] ss:$48 sps:$4 sm:$0xff]   ;;  %v253_v31 = vld [vmem:[%s6892_s28 + $0x80] sm:$0xff]  ;;  %p6585_p10 = pneg %p6584_p1  ;;  %p6590_p5 = scmp.lt.s32.totalorder %s6588_s21, %s6582_s25 }
  0x8c   : > { %2717 = vmatprep.subr.bf16.mxu0 %v5968_v32  ;;  %2943 = vmatprep.subr.bf16.mxu1 %v5970_v33  ;;  %v257_v32 = vld [vmem:[%s6892_s28 + $0xa0] sm:$0xff]  ;;  %v6067_v4 = vld [vmem:[#allocation5 + $0x908] ss:$48 sps:$4 sm:$0xff]  }
  0x8d   : > { %v6042_v33 = vld [vmem:[#allocation5 + $0x784] ss:$48 sps:$4 sm:$0xff]   ;;  %v6052_v49 = vld [vmem:[#allocation5 + $0x840] ss:$48 sps:$4 sm:$0xff]   ;;  %v6079_v18 = vld [vmem:[#allocation5 + $0x9c8] ss:$48 sps:$4 sm:$0xff]   ;;  %p6591_p9 = por %p6590_p5, %p6589_p3 }
  0x8e   : > { %v265_v46 = vld [vmem:[%s6892_s28 + $0xe0] sm:$0xff] }
  0x8f   : > { %2718 = vmatpush1.bf16.msra.mxu0 %v5972_v34  ;;  %2944 = vmatpush1.bf16.msra.mxu1 %v5973_v35  ;;  %v6045_v34 = vld [vmem:[#allocation5 + $0x78c] ss:$48 sps:$4 sm:$0xff]   ;;  %v6040_v35 = vld [vmem:[#allocation5 + $0x780] ss:$48 sps:$4 sm:$0xff]   ;;  %p6592_p11 = pnand %p6591_p9, %p6585_p10 }
  0x90   : > { %2719 = vmatprep.subr.bf16.mxu0 %v5974_v36  ;;  %2945 = vmatprep.subr.bf16.mxu1 %v5976_v37  ;;  %v6043_v36 = vld [vmem:[#allocation5 + $0x788] ss:$48 sps:$4 sm:$0xff]   ;;  %v6934_v37 = vpack.c.bf16 %v257_v32, %v253_v31  ;;  %v6064_v3 = vld [vmem:[#allocation5 + $0x900] ss:$48 sps:$4 sm:$0xff]   ;;  %v6093_v31 = vld [vmem:[#allocation5 + $0xa8c] ss:$48 sps:$4 sm:$0xff]  }
  0x91   : > { %v277_v11 = vld [vmem:[%s6892_s28 + $0x140] sm:$0xff] }
  0x92   : > { %v6082_v24 = vld [vmem:[#allocation5 + $0xa20] ss:$48 sps:$4 sm:$0xff]  }
  0x93   : > { %2720 = vmatpush1.bf16.msra.mxu0 %v5978_v38  ;;  %2946 = vmatpush1.bf16.msra.mxu1 %v5979_v39  ;;  %v262_v38 = vld [vmem:[%s6892_s28 + $0xc8] sm:$0xff]  ;;  %v6088_v32 = vld [vmem:[#allocation5 + $0xa80] ss:$48 sps:$4 sm:$0xff]  }
  0x94   : > { %2721 = vmatprep.subr.bf16.mxu0 %v5980_v40  ;;  %2947 = vmatprep.subr.bf16.mxu1 %v5982_v41  ;;  %v266_v39 = vld [vmem:[%s6892_s28 + $0xe8] sm:$0xff]  ;;  %v6048_v40 = vld [vmem:[#allocation5 + $0x7e4] ss:$48 sps:$4 sm:$0xff]  }
  0x95   : > { %v6051_v41 = vld [vmem:[#allocation5 + $0x7ec] ss:$48 sps:$4 sm:$0xff]  }
  0x97   : > { %2722 = vmatpush1.bf16.msra.mxu0 %v5984_v42  ;;  %2948 = vmatpush1.bf16.msra.mxu1 %v5985_v43  ;;  %v6046_v42 = vld [vmem:[#allocation5 + $0x7e0] ss:$48 sps:$4 sm:$0xff]   ;;  %v6938_v43 = vpack.c.bf16 %v266_v39, %v262_v38  ;;  %v6096_v38 = vld [vmem:[#allocation5 + $0xae4] ss:$48 sps:$4 sm:$0xff]   ;;  %v6099_v39 = vld [vmem:[#allocation5 + $0xaec] ss:$48 sps:$4 sm:$0xff]  }
  0x98   : > { %2723 = vmatprep.subr.bf16.mxu0 %v5986_v44  ;;  %2949 = vmatprep.subr.bf16.mxu1 %v5988_v45  ;;  %v6049_v44 = vld [vmem:[#allocation5 + $0x7e8] ss:$48 sps:$4 sm:$0xff]   ;;  %v261_v45 = vld [vmem:[%s6892_s28 + $0xc0] sm:$0xff] }
  0x9b   : > { %2724 = vmatpush1.bf16.msra.mxu0 %v5990_v47  ;;  %2950 = vmatpush1.bf16.msra.mxu1 %v5991_v48  ;;  %v6054_v47 = vld [vmem:[#allocation5 + $0x844] ss:$48 sps:$4 sm:$0xff]   ;;  %v6057_v48 = vld [vmem:[#allocation5 + $0x84c] ss:$48 sps:$4 sm:$0xff]  }
  0x9c   : > { %2725 = vmatprep.subr.bf16.mxu0 %v5992_v50  ;;  %2951 = vmatprep.subr.bf16.mxu1 %v5994_v52  ;;  %v6946_v50 = vpack.c.bf16 %v265_v46, %v261_v45  ;;  %v270_v52 = vld [vmem:[%s6892_s28 + $0x108] sm:$0xff]  ;;  %v297_v45 = vld [vmem:[%s6892_s28 + $0x1e0] sm:$0xff] }
  0x9d   : > { %v6102_v46 = vld [vmem:[#allocation5 + $0xb44] ss:$48 sps:$4 sm:$0xff]  }
  0x9f   : > { %2726 = vmatpush1.bf16.msra.mxu0 %v5996_v53  ;;  %2952 = vmatpush1.bf16.msra.mxu1 %v5997_v54  ;;  %v274_v53 = vld [vmem:[%s6892_s28 + $0x128] sm:$0xff] }
  0xa0   : > { %2727 = vmatprep.subr.bf16.mxu0 %v5998_v55  ;;  %2953 = vmatprep.subr.bf16.mxu1 %v6000_v56  ;;  %v6055_v54 = vld [vmem:[#allocation5 + $0x848] ss:$48 sps:$4 sm:$0xff]   ;;  %v6060_v55 = vld [vmem:[#allocation5 + $0x8a4] ss:$48 sps:$4 sm:$0xff]   ;;  %v6063_v56 = vld [vmem:[#allocation5 + $0x8ac] ss:$48 sps:$4 sm:$0xff]  }
  0xa3   : > { %2728 = vmatpush1.bf16.msra.mxu0 %v6002_v57  ;;  %2954 = vmatpush1.bf16.msra.mxu1 %v6003_v58  ;;  %v6058_v57 = vld [vmem:[#allocation5 + $0x8a0] ss:$48 sps:$4 sm:$0xff]   ;;  %v6061_v58 = vld [vmem:[#allocation5 + $0x8a8] ss:$48 sps:$4 sm:$0xff]  }
  0xa4   : > { %2729 = vmatprep.subr.bf16.mxu0 %v6004_v59  ;;  %2955 = vmatprep.subr.bf16.mxu1 %v6006_v60  ;;  %v6950_v59 = vpack.c.bf16 %v274_v53, %v270_v52  ;;  %v269_v60 = vld [vmem:[%s6892_s28 + $0x100] sm:$0xff]  ;;  %v240_v53 = vld [vmem:[%s6892_s28 + $0x18] sm:$0xff] }
  0xa7   : > { %2730 = vmatpush1.bf16.msra.mxu0 %v6008_v61  ;;  %2956 = vmatpush1.bf16.msra.mxu1 %v6009_v62  ;;  %v273_v61 = vld [vmem:[%s6892_s28 + $0x120] sm:$0xff] }
  0xa8   : > { %2731 = vmatprep.subr.bf16.mxu0 %v6010_v63  ;;  %2957 = vmatprep.subr.bf16.mxu1 %v6012_v0  ;;  %v6066_v62 = vld [vmem:[#allocation5 + $0x904] ss:$48 sps:$4 sm:$0xff]   ;;  %v6069_v63 = vld [vmem:[#allocation5 + $0x90c] ss:$48 sps:$4 sm:$0xff]   ;;  %v6958_v0 = vpack.c.bf16 %v273_v61, %v269_v60  ;;  %v6109_v60 = vld [vmem:[#allocation5 + $0xba8] ss:$48 sps:$4 sm:$0xff]  }
  0xa9   : > { %v239_v61 = vld [vmem:[%s6892_s28 + $0x10] sm:$0xff] }
  0xab   : > { %2732 = vmatpush1.bf16.msra.mxu0 %v6014_v1  ;;  %2958 = vmatpush1.bf16.msra.mxu1 %v6015_v2  ;;  %v278_v1 = vld [vmem:[%s6892_s28 + $0x148] sm:$0xff] }
  0xac   : > { %2814 = vmatprep.subr.bf16.mxu0 %v6018_v5  ;;  %3040 = vmatprep.subr.bf16.mxu1 %v6021_v6  ;;  %v282_v2 = vld [vmem:[%s6892_s28 + $0x168] sm:$0xff]  ;;  %v6072_v5 = vld [vmem:[#allocation5 + $0x964] ss:$48 sps:$4 sm:$0xff]  }
  0xad   : > { %v6075_v6 = vld [vmem:[#allocation5 + $0x96c] ss:$48 sps:$4 sm:$0xff]   ;;  %v6962_v10 = vpack.c.bf16 %v282_v2, %v278_v1  ;;  %v6112_v2 = vld [vmem:[#allocation5 + $0x10] ss:$48 sps:$4 sm:$0xff]  }
  0xae   : > { %2734 = vmatmul.mubr.bf16.vlgmr.msra.gmra.mrb[0].mxu0 %v6910_v8  ;;  %2960 = vmatmul.mubr.bf16.vlgmr.msra.gmra.mrb[0].mxu1 %v6910_v8  ;;  %v6117_v1 = vld [vmem:[#allocation5 + $0x1c] ss:$48 sps:$4 sm:$0xff]  }
  0xaf   : > { %2815 = vmatpush1.bf16.msra.mxu0 %v6016_v7  ;;  %3041 = vmatpush1.bf16.msra.mxu1 %v6019_v9  ;;  %v6070_v7 = vld [vmem:[#allocation5 + $0x960] ss:$48 sps:$4 sm:$0xff]   ;;  %v6073_v9 = vld [vmem:[#allocation5 + $0x968] ss:$48 sps:$4 sm:$0xff]  }
  0xb0   : > { %2816 = vmatprep.subr.bf16.mxu0 %v6024_v12  ;;  %3042 = vmatprep.subr.bf16.mxu1 %v6027_v13  ;;  %v281_v12 = vld [vmem:[%s6892_s28 + $0x160] sm:$0xff] }
  0xb1   : > { %2743 = vmatprep.mubr.bf16.mxu0 %v6914_v15  ;;  %2969 = vmatprep.mubr.bf16.mxu1 %v6914_v15  ;;  %v6078_v13 = vld [vmem:[#allocation5 + $0x9c4] ss:$48 sps:$4 sm:$0xff]   ;;  %v6970_v17 = vpack.c.bf16 %v281_v12, %v277_v11  ;;  %v6118_v11 = vld [vmem:[#allocation5 + $0x70] ss:$48 sps:$4 sm:$0xff]   ;;  %v6121_v12 = vld [vmem:[#allocation5 + $0x78] ss:$48 sps:$4 sm:$0xff]  }
  0xb3   : > { %2817 = vmatpush1.bf16.msra.mxu0 %v6022_v14  ;;  %3043 = vmatpush1.bf16.msra.mxu1 %v6025_v16  ;;  %v6081_v14 = vld [vmem:[#allocation5 + $0x9cc] ss:$48 sps:$4 sm:$0xff]   ;;  %v6076_v16 = vld [vmem:[#allocation5 + $0x9c0] ss:$48 sps:$4 sm:$0xff]  }
  0xb4   : > { %2818 = vmatprep.subr.bf16.mxu0 %v6030_v19  ;;  %3044 = vmatprep.subr.bf16.mxu1 %v6033_v20  ;;  %v286_v19 = vld [vmem:[%s6892_s28 + $0x188] sm:$0xff] }
  0xb5   : > { %v290_v20 = vld [vmem:[%s6892_s28 + $0x1a8] sm:$0xff] }
  0xb6   : > { %2744 = vmatmul.mubr.bf16.gmra.mrb[4].mxu0 %v6922_v23  ;;  %2970 = vmatmul.mubr.bf16.gmra.mrb[4].mxu1 %v6922_v23  ;;  %v6974_v25 = vpack.c.bf16 %v290_v20, %v286_v19  ;;  %v6129_v19 = vld [vmem:[#allocation5 + $0xdc] ss:$48 sps:$4 sm:$0xff]  }
  0xb7   : > { %2819 = vmatpush1.bf16.msra.mxu0 %v6028_v21  ;;  %3045 = vmatpush1.bf16.msra.mxu1 %v6031_v22  ;;  %v6084_v21 = vld [vmem:[#allocation5 + $0xa24] ss:$48 sps:$4 sm:$0xff]   ;;  %v6087_v22 = vld [vmem:[#allocation5 + $0xa2c] ss:$48 sps:$4 sm:$0xff]  }
  0xb8   : > { %2820 = vmatprep.subr.bf16.mxu0 %v6036_v26  ;;  %3046 = vmatprep.subr.bf16.mxu1 %v6039_v27  ;;  %v6085_v26 = vld [vmem:[#allocation5 + $0xa28] ss:$48 sps:$4 sm:$0xff]   ;;  %v285_v27 = vld [vmem:[%s6892_s28 + $0x180] sm:$0xff] }
  0xb9   : > { %2753 = vmatprep.mubr.bf16.mxu0 %v6926_v28  ;;  %2979 = vmatprep.mubr.bf16.mxu1 %v6926_v28 }
  0xbb   : > { %2821 = vmatpush1.bf16.msra.mxu0 %v6034_v29  ;;  %3047 = vmatpush1.bf16.msra.mxu1 %v6037_v30  ;;  %v289_v29 = vld [vmem:[%s6892_s28 + $0x1a0] sm:$0xff] }
  0xbc   : > { %2822 = vmatprep.subr.bf16.mxu0 %v6042_v33  ;;  %3048 = vmatprep.subr.bf16.mxu1 %v6045_v34  ;;  %v6090_v30 = vld [vmem:[#allocation5 + $0xa84] ss:$48 sps:$4 sm:$0xff]   ;;  %v6091_v33 = vld [vmem:[#allocation5 + $0xa88] ss:$48 sps:$4 sm:$0xff]   ;;  %v6982_v34 = vpack.c.bf16 %v289_v29, %v285_v27  ;;  %v6135_v29 = vld [vmem:[#allocation5 + $0x13c] ss:$48 sps:$4 sm:$0xff]  }
  0xbd   : > { %v6132_v27 = vld [vmem:[#allocation5 + $0x134] ss:$48 sps:$4 sm:$0xff]  }
  0xbe   : > { %2754 = vmatmul.mubr.bf16.gmra.mrb[8].mxu0 %v6934_v37  ;;  %2980 = vmatmul.mubr.bf16.gmra.mrb[8].mxu1 %v6934_v37 }
  0xbf   : > { %2823 = vmatpush1.bf16.msra.mxu0 %v6040_v35  ;;  %3049 = vmatpush1.bf16.msra.mxu1 %v6043_v36  ;;  %v294_v35 = vld [vmem:[%s6892_s28 + $0x1c8] sm:$0xff] }
  0xc0   : > { %2824 = vmatprep.subr.bf16.mxu0 %v6048_v40  ;;  %3050 = vmatprep.subr.bf16.mxu1 %v6051_v41  ;;  %v298_v36 = vld [vmem:[%s6892_s28 + $0x1e8] sm:$0xff]  ;;  %v6094_v41 = vld [vmem:[#allocation5 + $0xae0] ss:$48 sps:$4 sm:$0xff]  }
  0xc1   : > { %2763 = vmatprep.mubr.bf16.mxu0 %v6938_v43  ;;  %2989 = vmatprep.mubr.bf16.mxu1 %v6938_v43  ;;  %v6986_v40 = vpack.c.bf16 %v298_v36, %v294_v35  ;;  %v259_v35 = vld [vmem:[%s6892_s28 + $0xb0] sm:$0xff] }
  0xc2   : > { %v6138_v36 = vld [vmem:[#allocation5 + $0x194] ss:$48 sps:$4 sm:$0xff]  }
  0xc3   : > { %2825 = vmatpush1.bf16.msra.mxu0 %v6046_v42  ;;  %3051 = vmatpush1.bf16.msra.mxu1 %v6049_v44  ;;  %v6097_v42 = vld [vmem:[#allocation5 + $0xae8] ss:$48 sps:$4 sm:$0xff]   ;;  %v293_v44 = vld [vmem:[%s6892_s28 + $0x1c0] sm:$0xff] }
  0xc4   : > { %2826 = vmatprep.subr.bf16.mxu0 %v6054_v47  ;;  %3052 = vmatprep.subr.bf16.mxu1 %v6057_v48  ;;  %v6105_v47 = vld [vmem:[#allocation5 + $0xb4c] ss:$48 sps:$4 sm:$0xff]   ;;  %v6100_v48 = vld [vmem:[#allocation5 + $0xb40] ss:$48 sps:$4 sm:$0xff]   ;;  %v6994_v52 = vpack.c.bf16 %v297_v45, %v293_v44 }
  0xc5   : > { %v264_v44 = vld [vmem:[%s6892_s28 + $0xd8] sm:$0xff] }
  0xc6   : > { %2764 = vmatmul.mubr.bf16.gmra.mrb[12].mxu0 %v6946_v50  ;;  %2990 = vmatmul.mubr.bf16.gmra.mrb[12].mxu1 %v6946_v50  ;;  %v268_v45 = vld [vmem:[%s6892_s28 + $0xf8] sm:$0xff] }
  0xc7   : > { %2827 = vmatpush1.bf16.msra.mxu0 %v6052_v49  ;;  %3053 = vmatpush1.bf16.msra.mxu1 %v6055_v54  ;;  %v6103_v49 = vld [vmem:[#allocation5 + $0xb48] ss:$48 sps:$4 sm:$0xff]  }
  0xc8   : > { %2828 = vmatprep.subr.bf16.mxu0 %v6060_v55  ;;  %3054 = vmatprep.subr.bf16.mxu1 %v6063_v56  ;;  %v244_v54 = vld [vmem:[%s6892_s28 + $0x38] sm:$0xff]  ;;  %v6108_v55 = vld [vmem:[#allocation5 + $0xba4] ss:$48 sps:$4 sm:$0xff]  }
  0xc9   : > { %2773 = vmatprep.mubr.bf16.mxu0 %v6950_v59  ;;  %2999 = vmatprep.mubr.bf16.mxu1 %v6950_v59  ;;  %v6111_v56 = vld [vmem:[#allocation5 + $0xbac] ss:$48 sps:$4 sm:$0xff]  }
  0xcb   : > { %2829 = vmatpush1.bf16.msra.mxu0 %v6058_v57  ;;  %3055 = vmatpush1.bf16.msra.mxu1 %v6061_v58  ;;  %v6106_v57 = vld [vmem:[#allocation5 + $0xba0] ss:$48 sps:$4 sm:$0xff]   ;;  %v6998_v58 = vpack.c.bf16 %v244_v54, %v240_v53  ;;  %v7034_v53 = vpack.c.bf16 %v268_v45, %v264_v44  ;;  %v288_v44 = vld [vmem:[%s6892_s28 + $0x198] sm:$0xff] }
  0xcc   : > { %2830 = vmatprep.subr.bf16.mxu0 %v6066_v62  ;;  %3056 = vmatprep.subr.bf16.mxu1 %v6069_v63  ;;  %v243_v62 = vld [vmem:[%s6892_s28 + $0x30] sm:$0xff]  ;;  %v292_v45 = vld [vmem:[%s6892_s28 + $0x1b8] sm:$0xff] }
  0xcd   : > { %v6114_v63 = vld [vmem:[#allocation5 + $0x14] ss:$48 sps:$4 sm:$0xff]  }
  0xce   : > { %2774 = vmatmul.mubr.bf16.gmra.mrb[16].mxu0 %v6958_v0  ;;  %3000 = vmatmul.mubr.bf16.gmra.mrb[16].mxu1 %v6958_v0  ;;  %v263_v54 = vld [vmem:[%s6892_s28 + $0xd0] sm:$0xff] }
  0xcf   : > { %2831 = vmatpush1.bf16.msra.mxu0 %v6064_v3  ;;  %3057 = vmatpush1.bf16.msra.mxu1 %v6067_v4  ;;  %v7006_v3 = vpack.c.bf16 %v243_v62, %v239_v61  ;;  %v248_v4 = vld [vmem:[%s6892_s28 + $0x58] sm:$0xff] }
  0xd0   : > { %2832 = vmatprep.subr.bf16.mxu0 %v6072_v5  ;;  %3058 = vmatprep.subr.bf16.mxu1 %v6075_v6  ;;  %v252_v5 = vld [vmem:[%s6892_s28 + $0x78] sm:$0xff] }
  0xd1   : > { %2783 = vmatprep.mubr.bf16.mxu0 %v6962_v10  ;;  %3009 = vmatprep.mubr.bf16.mxu1 %v6962_v10  ;;  %v6115_v6 = vld [vmem:[#allocation5 + $0x18] ss:$48 sps:$4 sm:$0xff]  }
  0xd2   : > { %v6151_v61 = vld [vmem:[#allocation5 + $0x258] ss:$48 sps:$4 sm:$0xff]  }
  0xd3   : > { %2833 = vmatpush1.bf16.msra.mxu0 %v6070_v7  ;;  %3059 = vmatpush1.bf16.msra.mxu1 %v6073_v9  ;;  %v6120_v7 = vld [vmem:[#allocation5 + $0x74] ss:$48 sps:$4 sm:$0xff]   ;;  %v6123_v9 = vld [vmem:[#allocation5 + $0x7c] ss:$48 sps:$4 sm:$0xff]  }
  0xd4   : > { %2834 = vmatprep.subr.bf16.mxu0 %v6078_v13  ;;  %3060 = vmatprep.subr.bf16.mxu1 %v6081_v14  ;;  %v7010_v13 = vpack.c.bf16 %v252_v5, %v248_v4  ;;  %v247_v14 = vld [vmem:[%s6892_s28 + $0x50] sm:$0xff]  ;;  %v6159_v4 = vld [vmem:[#allocation5 + $0x2bc] ss:$48 sps:$4 sm:$0xff]  }
  0xd5   : > { %v6154_v5 = vld [vmem:[#allocation5 + $0x2b0] ss:$48 sps:$4 sm:$0xff]  }
  0xd6   : > { %2784 = vmatmul.mubr.bf16.gmra.mrb[20].mxu0 %v6970_v17  ;;  %3010 = vmatmul.mubr.bf16.gmra.mrb[20].mxu1 %v6970_v17 }
  0xd7   : > { %2835 = vmatpush1.bf16.msra.mxu0 %v6076_v16  ;;  %3061 = vmatpush1.bf16.msra.mxu1 %v6079_v18  ;;  %v251_v16 = vld [vmem:[%s6892_s28 + $0x70] sm:$0xff] }
  0xd8   : > { %2836 = vmatprep.subr.bf16.mxu0 %v6084_v21  ;;  %3062 = vmatprep.subr.bf16.mxu1 %v6087_v22  ;;  %v6126_v18 = vld [vmem:[#allocation5 + $0xd4] ss:$48 sps:$4 sm:$0xff]   ;;  %v7018_v20 = vpack.c.bf16 %v251_v16, %v247_v14  ;;  %v256_v21 = vld [vmem:[%s6892_s28 + $0x98] sm:$0xff]  ;;  %v6160_v16 = vld [vmem:[#allocation5 + $0x310] ss:$48 sps:$4 sm:$0xff]  }
  0xd9   : > { %2793 = vmatprep.mubr.bf16.mxu0 %v6974_v25  ;;  %3019 = vmatprep.mubr.bf16.mxu1 %v6974_v25  ;;  %v260_v22 = vld [vmem:[%s6892_s28 + $0xb8] sm:$0xff] }
  0xda   : > { %v6165_v14 = vld [vmem:[#allocation5 + $0x31c] ss:$48 sps:$4 sm:$0xff]  }
  0xdb   : > { %2837 = vmatpush1.bf16.msra.mxu0 %v6082_v24  ;;  %3063 = vmatpush1.bf16.msra.mxu1 %v6085_v26  ;;  %v6124_v24 = vld [vmem:[#allocation5 + $0xd0] ss:$48 sps:$4 sm:$0xff]   ;;  %v6127_v26 = vld [vmem:[#allocation5 + $0xd8] ss:$48 sps:$4 sm:$0xff]  }
  0xdc   : > { %2838 = vmatprep.subr.bf16.mxu0 %v6090_v30  ;;  %3064 = vmatprep.subr.bf16.mxu1 %v6093_v31  ;;  %v6130_v30 = vld [vmem:[#allocation5 + $0x130] ss:$48 sps:$4 sm:$0xff]   ;;  %v6133_v31 = vld [vmem:[#allocation5 + $0x138] ss:$48 sps:$4 sm:$0xff]  }
  0xde   : > { %2794 = vmatmul.mubr.bf16.gmra.mrb[24].mxu0 %v6982_v34  ;;  %3020 = vmatmul.mubr.bf16.gmra.mrb[24].mxu1 %v6982_v34 }
  0xdf   : > { %2839 = vmatpush1.bf16.msra.mxu0 %v6088_v32  ;;  %3065 = vmatpush1.bf16.msra.mxu1 %v6091_v33  ;;  %v7022_v32 = vpack.c.bf16 %v260_v22, %v256_v21  ;;  %v255_v33 = vld [vmem:[%s6892_s28 + $0x90] sm:$0xff]  ;;  %v280_v21 = vld [vmem:[%s6892_s28 + $0x158] sm:$0xff] }
  0xe0   : > { %2840 = vmatprep.subr.bf16.mxu0 %v6096_v38  ;;  %3066 = vmatprep.subr.bf16.mxu1 %v6099_v39  ;;  %v6141_v38 = vld [vmem:[#allocation5 + $0x19c] ss:$48 sps:$4 sm:$0xff]   ;;  %v6136_v39 = vld [vmem:[#allocation5 + $0x190] ss:$48 sps:$4 sm:$0xff]  }
  0xe1   : > { %2803 = vmatprep.mubr.bf16.mxu0 %v6986_v40  ;;  %3029 = vmatprep.mubr.bf16.mxu1 %v6986_v40  ;;  %v284_v22 = vld [vmem:[%s6892_s28 + $0x178] sm:$0xff] }
  0xe3   : > { %2841 = vmatpush1.bf16.msra.mxu0 %v6094_v41  ;;  %3067 = vmatpush1.bf16.msra.mxu1 %v6097_v42  ;;  %v7030_v41 = vpack.c.bf16 %v259_v35, %v255_v33  ;;  %v6139_v42 = vld [vmem:[#allocation5 + $0x198] ss:$48 sps:$4 sm:$0xff]   ;;  %v283_v33 = vld [vmem:[%s6892_s28 + $0x170] sm:$0xff] }
  0xe4   : > { %2842 = vmatprep.subr.bf16.mxu0 %v6102_v46  ;;  %3068 = vmatprep.subr.bf16.mxu1 %v6105_v47  ;;  %v6144_v46 = vld [vmem:[#allocation5 + $0x1f4] ss:$48 sps:$4 sm:$0xff]   ;;  %v6147_v47 = vld [vmem:[#allocation5 + $0x1fc] ss:$48 sps:$4 sm:$0xff]  }
  0xe5   : > { %v6174_v35 = vld [vmem:[#allocation5 + $0x3d4] ss:$48 sps:$4 sm:$0xff]  }
  0xe6   : > { %2804 = vmatmul.mubr.bf16.gmra.mrb[28].mxu0 %v6994_v52  ;;  %3030 = vmatmul.mubr.bf16.gmra.mrb[28].mxu1 %v6994_v52 }
  0xe7   : > { %2843 = vmatpush1.bf16.msra.mxu0 %v6100_v48  ;;  %3069 = vmatpush1.bf16.msra.mxu1 %v6103_v49  ;;  %v6142_v48 = vld [vmem:[#allocation5 + $0x1f0] ss:$48 sps:$4 sm:$0xff]   ;;  %v6145_v49 = vld [vmem:[#allocation5 + $0x1f8] ss:$48 sps:$4 sm:$0xff]  }
  0xe8   : > { %2844 = vmatprep.subr.bf16.mxu0 %v6108_v55  ;;  %3070 = vmatprep.subr.bf16.mxu1 %v6111_v56  ;;  %v267_v55 = vld [vmem:[%s6892_s28 + $0xf0] sm:$0xff] }
  0xe9   : > { %2846 = vmatprep.mubr.bf16.mxu0 %v6998_v58  ;;  %3072 = vmatprep.mubr.bf16.mxu1 %v6998_v58  ;;  %v6150_v56 = vld [vmem:[#allocation5 + $0x254] ss:$48 sps:$4 sm:$0xff]   ;;  %v7042_v62 = vpack.c.bf16 %v267_v55, %v263_v54  ;;  %v7070_v54 = vpack.c.bf16 %v292_v45, %v288_v44  ;;  %v6219_v45 = vld [vmem:[#allocation5 + $0x67c] ss:$48 sps:$4 sm:$0xff]  }
  0xea   : > { %v287_v55 = vld [vmem:[%s6892_s28 + $0x190] sm:$0xff] }
  0xeb   : > { %2845 = vmatpush1.bf16.msra.mxu0 %v6106_v57  ;;  %3071 = vmatpush1.bf16.msra.mxu1 %v6109_v60  ;;  %v6153_v57 = vld [vmem:[#allocation5 + $0x25c] ss:$48 sps:$4 sm:$0xff]   ;;  %v6148_v60 = vld [vmem:[#allocation5 + $0x250] ss:$48 sps:$4 sm:$0xff]   ;;  %v6216_v44 = vld [vmem:[#allocation5 + $0x674] ss:$48 sps:$4 sm:$0xff]  }
  0xec   : > { %3153 = vmatprep.subr.bf16.mxu0 %v6114_v63  ;;  %3379 = vmatprep.subr.bf16.mxu1 %v6117_v1  ;;  %v272_v63 = vld [vmem:[%s6892_s28 + $0x118] sm:$0xff] }
  0xed   : > { %v276_v1 = vld [vmem:[%s6892_s28 + $0x138] sm:$0xff] }
  0xee   : > { %2847 = vmatmul.mubr.bf16.vlgmr.msra.gmra.mrb[0].mxu0 %v7006_v3  ;;  %3073 = vmatmul.mubr.bf16.vlgmr.msra.gmra.mrb[0].mxu1 %v7006_v3 }
  0xef   : > { %3154 = vmatpush1.bf16.msra.mxu0 %v6112_v2  ;;  %3380 = vmatpush1.bf16.msra.mxu1 %v6115_v6  ;;  %v6156_v2 = vld [vmem:[#allocation5 + $0x2b4] ss:$48 sps:$4 sm:$0xff]   ;;  %v6157_v6 = vld [vmem:[#allocation5 + $0x2b8] ss:$48 sps:$4 sm:$0xff]  }
  0xf0   : > { %3155 = vmatprep.subr.bf16.mxu0 %v6120_v7  ;;  %3381 = vmatprep.subr.bf16.mxu1 %v6123_v9  ;;  %v7046_v7 = vpack.c.bf16 %v276_v1, %v272_v63  ;;  %v271_v9 = vld [vmem:[%s6892_s28 + $0x110] sm:$0xff]  ;;  %v6187_v63 = vld [vmem:[#allocation5 + $0x498] ss:$48 sps:$4 sm:$0xff]  }
  0xf1   : > { %2856 = vmatprep.mubr.bf16.mxu0 %v7010_v13  ;;  %3082 = vmatprep.mubr.bf16.mxu1 %v7010_v13 }
  0xf3   : > { %3156 = vmatpush1.bf16.msra.mxu0 %v6118_v11  ;;  %3382 = vmatpush1.bf16.msra.mxu1 %v6121_v12  ;;  %v275_v11 = vld [vmem:[%s6892_s28 + $0x130] sm:$0xff] }
  0xf4   : > { %3157 = vmatprep.subr.bf16.mxu0 %v6126_v18  ;;  %3383 = vmatprep.subr.bf16.mxu1 %v6129_v19  ;;  %v6162_v12 = vld [vmem:[#allocation5 + $0x314] ss:$48 sps:$4 sm:$0xff]   ;;  %v6163_v18 = vld [vmem:[#allocation5 + $0x318] ss:$48 sps:$4 sm:$0xff]   ;;  %v7054_v19 = vpack.c.bf16 %v275_v11, %v271_v9  ;;  %v6190_v9 = vld [vmem:[#allocation5 + $0x4f0] ss:$48 sps:$4 sm:$0xff]  }
  0xf5   : > { %v6193_v11 = vld [vmem:[#allocation5 + $0x4f8] ss:$48 sps:$4 sm:$0xff]  }
  0xf6   : > { %2857 = vmatmul.mubr.bf16.gmra.mrb[4].mxu0 %v7018_v20  ;;  %3083 = vmatmul.mubr.bf16.gmra.mrb[4].mxu1 %v7018_v20 }
  0xf7   : > { %3158 = vmatpush1.bf16.msra.mxu0 %v6124_v24  ;;  %3384 = vmatpush1.bf16.msra.mxu1 %v6127_v26  ;;  %v6168_v24 = vld [vmem:[#allocation5 + $0x374] ss:$48 sps:$4 sm:$0xff]   ;;  %v6171_v26 = vld [vmem:[#allocation5 + $0x37c] ss:$48 sps:$4 sm:$0xff]  }
  0xf8   : > { %3159 = vmatprep.subr.bf16.mxu0 %v6132_v27  ;;  %3385 = vmatprep.subr.bf16.mxu1 %v6135_v29  ;;  %v6166_v27 = vld [vmem:[#allocation5 + $0x370] ss:$48 sps:$4 sm:$0xff]   ;;  %v6169_v29 = vld [vmem:[#allocation5 + $0x378] ss:$48 sps:$4 sm:$0xff]  }
  0xf9   : > { %2866 = vmatprep.mubr.bf16.mxu0 %v7022_v32  ;;  %3092 = vmatprep.mubr.bf16.mxu1 %v7022_v32 }
  0xfb   : > { %3160 = vmatpush1.bf16.msra.mxu0 %v6130_v30  ;;  %3386 = vmatpush1.bf16.msra.mxu1 %v6133_v31  ;;  %v7058_v30 = vpack.c.bf16 %v284_v22, %v280_v21  ;;  %v279_v31 = vld [vmem:[%s6892_s28 + $0x150] sm:$0xff]  ;;  %v6201_v21 = vld [vmem:[#allocation5 + $0x55c] ss:$48 sps:$4 sm:$0xff]  }
  0xfc   : > { %3161 = vmatprep.subr.bf16.mxu0 %v6138_v36  ;;  %3387 = vmatprep.subr.bf16.mxu1 %v6141_v38  ;;  %v6177_v36 = vld [vmem:[#allocation5 + $0x3dc] ss:$48 sps:$4 sm:$0xff]   ;;  %v6172_v38 = vld [vmem:[#allocation5 + $0x3d0] ss:$48 sps:$4 sm:$0xff]  }
  0xfe   : > { %2867 = vmatmul.mubr.bf16.gmra.mrb[8].mxu0 %v7030_v41  ;;  %3093 = vmatmul.mubr.bf16.gmra.mrb[8].mxu1 %v7030_v41 }
  0xff   : > { %3162 = vmatpush1.bf16.msra.mxu0 %v6136_v39  ;;  %3388 = vmatpush1.bf16.msra.mxu1 %v6139_v42  ;;  %v6175_v39 = vld [vmem:[#allocation5 + $0x3d8] ss:$48 sps:$4 sm:$0xff]   ;;  %v7066_v42 = vpack.c.bf16 %v283_v33, %v279_v31  ;;  %v6202_v31 = vld [vmem:[#allocation5 + $0x5b0] ss:$48 sps:$4 sm:$0xff]  }
 0x100   : > { %3163 = vmatprep.subr.bf16.mxu0 %v6144_v46  ;;  %3389 = vmatprep.subr.bf16.mxu1 %v6147_v47  ;;  %v6180_v46 = vld [vmem:[#allocation5 + $0x434] ss:$48 sps:$4 sm:$0xff]   ;;  %v6183_v47 = vld [vmem:[#allocation5 + $0x43c] ss:$48 sps:$4 sm:$0xff]   ;;  %v6205_v33 = vld [vmem:[#allocation5 + $0x5b8] ss:$48 sps:$4 sm:$0xff]  }
 0x101   : > { %2876 = vmatprep.mubr.bf16.mxu0 %v7034_v53  ;;  %3102 = vmatprep.mubr.bf16.mxu1 %v7034_v53 }
 0x103   : > { %3164 = vmatpush1.bf16.msra.mxu0 %v6142_v48  ;;  %3390 = vmatpush1.bf16.msra.mxu1 %v6145_v49  ;;  %v6178_v48 = vld [vmem:[#allocation5 + $0x430] ss:$48 sps:$4 sm:$0xff]   ;;  %v6181_v49 = vld [vmem:[#allocation5 + $0x438] ss:$48 sps:$4 sm:$0xff]  }
 0x104   : > { %3165 = vmatprep.subr.bf16.mxu0 %v6150_v56  ;;  %3391 = vmatprep.subr.bf16.mxu1 %v6153_v57  ;;  %v291_v56 = vld [vmem:[%s6892_s28 + $0x1b0] sm:$0xff] }
 0x105   : > { %v6186_v57 = vld [vmem:[#allocation5 + $0x494] ss:$48 sps:$4 sm:$0xff]   ;;  %v7078_v1 = vpack.c.bf16 %v291_v56, %v287_v55  ;;  %v6220_v55 = vld [vmem:[#allocation5 + $0x6d0] ss:$48 sps:$4 sm:$0xff]   ;;  %v6223_v56 = vld [vmem:[#allocation5 + $0x6d8] ss:$48 sps:$4 sm:$0xff]  }
 0x106   : > { %2877 = vmatmul.mubr.bf16.gmra.mrb[12].mxu0 %v7042_v62  ;;  %3103 = vmatmul.mubr.bf16.gmra.mrb[12].mxu1 %v7042_v62 }
 0x107   : > { %3166 = vmatpush1.bf16.msra.mxu0 %v6148_v60  ;;  %3392 = vmatpush1.bf16.msra.mxu1 %v6151_v61  ;;  %v6189_v60 = vld [vmem:[#allocation5 + $0x49c] ss:$48 sps:$4 sm:$0xff]   ;;  %v6184_v61 = vld [vmem:[#allocation5 + $0x490] ss:$48 sps:$4 sm:$0xff]  }
 0x108   : > { %3167 = vmatprep.subr.bf16.mxu0 %v6156_v2  ;;  %3393 = vmatprep.subr.bf16.mxu1 %v6159_v4  ;;  %v296_v2 = vld [vmem:[%s6892_s28 + $0x1d8] sm:$0xff] }
 0x109   : > { %2886 = vmatprep.mubr.bf16.mxu0 %v7046_v7  ;;  %3112 = vmatprep.mubr.bf16.mxu1 %v7046_v7  ;;  %v300_v4 = vld [vmem:[%s6892_s28 + $0x1f8] sm:$0xff] }
 0x10b   : > { %3168 = vmatpush1.bf16.msra.mxu0 %v6154_v5  ;;  %3394 = vmatpush1.bf16.msra.mxu1 %v6157_v6  ;;  %v6192_v5 = vld [vmem:[#allocation5 + $0x4f4] ss:$48 sps:$4 sm:$0xff]   ;;  %v6195_v6 = vld [vmem:[#allocation5 + $0x4fc] ss:$48 sps:$4 sm:$0xff]  }
 0x10c   : > { %3169 = vmatprep.subr.bf16.mxu0 %v6162_v12  ;;  %3395 = vmatprep.subr.bf16.mxu1 %v6165_v14  ;;  %v7082_v12 = vpack.c.bf16 %v300_v4, %v296_v2  ;;  %v295_v14 = vld [vmem:[%s6892_s28 + $0x1d0] sm:$0xff]  ;;  %v6237_v4 = vld [vmem:[#allocation5 + $0x79c] ss:$48 sps:$4 sm:$0xff]  }
 0x10d   : > { %v6234_v2 = vld [vmem:[#allocation5 + $0x794] ss:$48 sps:$4 sm:$0xff]  }
 0x10e   : > { %2887 = vmatmul.mubr.bf16.gmra.mrb[16].mxu0 %v7054_v19  ;;  %3113 = vmatmul.mubr.bf16.gmra.mrb[16].mxu1 %v7054_v19 }
 0x10f   : > { %3170 = vmatpush1.bf16.msra.mxu0 %v6160_v16  ;;  %3396 = vmatpush1.bf16.msra.mxu1 %v6163_v18  ;;  %v299_v16 = vld [vmem:[%s6892_s28 + $0x1f0] sm:$0xff] }
 0x110   : > { %3171 = vmatprep.subr.bf16.mxu0 %v6168_v24  ;;  %3397 = vmatprep.subr.bf16.mxu1 %v6171_v26  ;;  %v6198_v18 = vld [vmem:[#allocation5 + $0x554] ss:$48 sps:$4 sm:$0xff]   ;;  %v7090_v22 = vpack.c.bf16 %v299_v16, %v295_v14  ;;  %v6196_v24 = vld [vmem:[#allocation5 + $0x550] ss:$48 sps:$4 sm:$0xff]   ;;  %v6199_v26 = vld [vmem:[#allocation5 + $0x558] ss:$48 sps:$4 sm:$0xff]  }
 0x111   : > { %2896 = vmatprep.mubr.bf16.mxu0 %v7058_v30  ;;  %3122 = vmatprep.mubr.bf16.mxu1 %v7058_v30  ;;  %v6238_v14 = vld [vmem:[#allocation5 + $0x7f0] ss:$48 sps:$4 sm:$0xff]   ;;  %v6241_v16 = vld [vmem:[#allocation5 + $0x7f8] ss:$48 sps:$4 sm:$0xff]  }
 0x113   : > { %3172 = vmatpush1.bf16.msra.mxu0 %v6166_v27  ;;  %3398 = vmatpush1.bf16.msra.mxu1 %v6169_v29  ;;  %v6204_v27 = vld [vmem:[#allocation5 + $0x5b4] ss:$48 sps:$4 sm:$0xff]   ;;  %v6207_v29 = vld [vmem:[#allocation5 + $0x5bc] ss:$48 sps:$4 sm:$0xff]  }
 0x114   : > { %3173 = vmatprep.subr.bf16.mxu0 %v6174_v35  ;;  %3399 = vmatprep.subr.bf16.mxu1 %v6177_v36  ;;  %v6210_v35 = vld [vmem:[#allocation5 + $0x614] ss:$48 sps:$4 sm:$0xff]   ;;  %v6213_v36 = vld [vmem:[#allocation5 + $0x61c] ss:$48 sps:$4 sm:$0xff]  }
 0x116   : > { %2897 = vmatmul.mubr.bf16.gmra.mrb[20].mxu0 %v7066_v42  ;;  %3123 = vmatmul.mubr.bf16.gmra.mrb[20].mxu1 %v7066_v42 }
 0x117   : > { %3174 = vmatpush1.bf16.msra.mxu0 %v6172_v38  ;;  %3400 = vmatpush1.bf16.msra.mxu1 %v6175_v39  ;;  %v6208_v38 = vld [vmem:[#allocation5 + $0x610] ss:$48 sps:$4 sm:$0xff]   ;;  %v6211_v39 = vld [vmem:[#allocation5 + $0x618] ss:$48 sps:$4 sm:$0xff]  }
 0x118   : > { %3175 = vmatprep.subr.bf16.mxu0 %v6180_v46  ;;  %3401 = vmatprep.subr.bf16.mxu1 %v6183_v47  ;;  %v6214_v46 = vld [vmem:[#allocation5 + $0x670] ss:$48 sps:$4 sm:$0xff]   ;;  %v6217_v47 = vld [vmem:[#allocation5 + $0x678] ss:$48 sps:$4 sm:$0xff]  }
 0x119   : > { %2906 = vmatprep.mubr.bf16.mxu0 %v7070_v54  ;;  %3132 = vmatprep.mubr.bf16.mxu1 %v7070_v54 }
 0x11b   : > { %3176 = vmatpush1.bf16.msra.mxu0 %v6178_v48  ;;  %3402 = vmatpush1.bf16.msra.mxu1 %v6181_v49  ;;  %v6222_v48 = vld [vmem:[#allocation5 + $0x6d4] ss:$48 sps:$4 sm:$0xff]   ;;  %v6225_v49 = vld [vmem:[#allocation5 + $0x6dc] ss:$48 sps:$4 sm:$0xff]  }
 0x11c   : > { %3177 = vmatprep.subr.bf16.mxu0 %v6186_v57  ;;  %3403 = vmatprep.subr.bf16.mxu1 %v6189_v60  ;;  %v6228_v57 = vld [vmem:[#allocation5 + $0x734] ss:$48 sps:$4 sm:$0xff]   ;;  %v6231_v60 = vld [vmem:[#allocation5 + $0x73c] ss:$48 sps:$4 sm:$0xff]  }
 0x11e   : > { %2907 = vmatmul.mubr.bf16.gmra.mrb[24].mxu0 %v7078_v1  ;;  %3133 = vmatmul.mubr.bf16.gmra.mrb[24].mxu1 %v7078_v1 }
 0x11f   : > { %3178 = vmatpush1.bf16.msra.mxu0 %v6184_v61  ;;  %3404 = vmatpush1.bf16.msra.mxu1 %v6187_v63  ;;  %v6226_v61 = vld [vmem:[#allocation5 + $0x730] ss:$48 sps:$4 sm:$0xff]   ;;  %v6229_v63 = vld [vmem:[#allocation5 + $0x738] ss:$48 sps:$4 sm:$0xff]  }
 0x120   : > { %3179 = vmatprep.subr.bf16.mxu0 %v6192_v5  ;;  %3405 = vmatprep.subr.bf16.mxu1 %v6195_v6  ;;  %v6232_v5 = vld [vmem:[#allocation5 + $0x790] ss:$48 sps:$4 sm:$0xff]   ;;  %v6235_v6 = vld [vmem:[#allocation5 + $0x798] ss:$48 sps:$4 sm:$0xff]  }
 0x121   : > { %2916 = vmatprep.mubr.bf16.mxu0 %v7082_v12  ;;  %3142 = vmatprep.mubr.bf16.mxu1 %v7082_v12 }
 0x123   : > { %3180 = vmatpush1.bf16.msra.mxu0 %v6190_v9  ;;  %3406 = vmatpush1.bf16.msra.mxu1 %v6193_v11  ;;  %v6240_v9 = vld [vmem:[#allocation5 + $0x7f4] ss:$48 sps:$4 sm:$0xff]   ;;  %v6243_v11 = vld [vmem:[#allocation5 + $0x7fc] ss:$48 sps:$4 sm:$0xff]  }
 0x124   : > { %3181 = vmatprep.subr.bf16.mxu0 %v6198_v18  ;;  %3407 = vmatprep.subr.bf16.mxu1 %v6201_v21  ;;  %v6246_v18 = vld [vmem:[#allocation5 + $0x854] ss:$48 sps:$4 sm:$0xff]   ;;  %v6249_v21 = vld [vmem:[#allocation5 + $0x85c] ss:$48 sps:$4 sm:$0xff]  }
 0x126   : > { %2917 = vmatmul.mubr.bf16.gmra.mrb[28].mxu0 %v7090_v22  ;;  %3143 = vmatmul.mubr.bf16.gmra.mrb[28].mxu1 %v7090_v22 }
 0x127   : > { %3182 = vmatpush1.bf16.msra.mxu0 %v6196_v24  ;;  %3408 = vmatpush1.bf16.msra.mxu1 %v6199_v26  ;;  %v6244_v24 = vld [vmem:[#allocation5 + $0x850] ss:$48 sps:$4 sm:$0xff]   ;;  %v6247_v26 = vld [vmem:[#allocation5 + $0x858] ss:$48 sps:$4 sm:$0xff]  }
 0x128   : > { %3183 = vmatprep.subr.bf16.mxu0 %v6204_v27  ;;  %3409 = vmatprep.subr.bf16.mxu1 %v6207_v29  ;;  %v6252_v27 = vld [vmem:[#allocation5 + $0x8b4] ss:$48 sps:$4 sm:$0xff]   ;;  %v6255_v29 = vld [vmem:[#allocation5 + $0x8bc] ss:$48 sps:$4 sm:$0xff]  }
 0x129   : > { %3185 = vmatprep.mubr.bf16.mxu0 %v6904_v51  ;;  %3411 = vmatprep.mubr.bf16.mxu1 %v6904_v51 }
 0x12b   : > { %3184 = vmatpush1.bf16.msra.mxu0 %v6202_v31  ;;  %3410 = vmatpush1.bf16.msra.mxu1 %v6205_v33  ;;  %v6250_v31 = vld [vmem:[#allocation5 + $0x8b0] ss:$48 sps:$4 sm:$0xff]   ;;  %v6253_v33 = vld [vmem:[#allocation5 + $0x8b8] ss:$48 sps:$4 sm:$0xff]  }
 0x12c   : > { %3266 = vmatprep.subr.bf16.mxu0 %v6210_v35  ;;  %3492 = vmatprep.subr.bf16.mxu1 %v6213_v36  ;;  %v6258_v35 = vld [vmem:[#allocation5 + $0x914] ss:$48 sps:$4 sm:$0xff]   ;;  %v6261_v36 = vld [vmem:[#allocation5 + $0x91c] ss:$48 sps:$4 sm:$0xff]  }
 0x12e   : > { %3186 = vmatmul.mubr.bf16.vlgmr.msra.gmra.mrb[32].mxu0 %v6910_v8  ;;  %3412 = vmatmul.mubr.bf16.vlgmr.msra.gmra.mrb[32].mxu1 %v6910_v8 }
 0x12f   : > { %3267 = vmatpush1.bf16.msra.mxu0 %v6208_v38  ;;  %3493 = vmatpush1.bf16.msra.mxu1 %v6211_v39  ;;  %v6256_v38 = vld [vmem:[#allocation5 + $0x910] ss:$48 sps:$4 sm:$0xff]   ;;  %v6259_v39 = vld [vmem:[#allocation5 + $0x918] ss:$48 sps:$4 sm:$0xff]  }
 0x130   : > { %3268 = vmatprep.subr.bf16.mxu0 %v6216_v44  ;;  %3494 = vmatprep.subr.bf16.mxu1 %v6219_v45  ;;  %v6264_v44 = vld [vmem:[#allocation5 + $0x974] ss:$48 sps:$4 sm:$0xff]   ;;  %v6267_v45 = vld [vmem:[#allocation5 + $0x97c] ss:$48 sps:$4 sm:$0xff]  }
 0x131   : > { %3195 = vmatprep.mubr.bf16.mxu0 %v6914_v15  ;;  %3421 = vmatprep.mubr.bf16.mxu1 %v6914_v15 }
 0x133   : > { %3269 = vmatpush1.bf16.msra.mxu0 %v6214_v46  ;;  %3495 = vmatpush1.bf16.msra.mxu1 %v6217_v47  ;;  %v6262_v46 = vld [vmem:[#allocation5 + $0x970] ss:$48 sps:$4 sm:$0xff]   ;;  %v6265_v47 = vld [vmem:[#allocation5 + $0x978] ss:$48 sps:$4 sm:$0xff]  }
 0x134   : > { %3270 = vmatprep.subr.bf16.mxu0 %v6222_v48  ;;  %3496 = vmatprep.subr.bf16.mxu1 %v6225_v49  ;;  %v6270_v48 = vld [vmem:[#allocation5 + $0x9d4] ss:$48 sps:$4 sm:$0xff]   ;;  %v6273_v49 = vld [vmem:[#allocation5 + $0x9dc] ss:$48 sps:$4 sm:$0xff]  }
 0x136   : > { %3196 = vmatmul.mubr.bf16.gmra.mrb[36].mxu0 %v6922_v23  ;;  %3422 = vmatmul.mubr.bf16.gmra.mrb[36].mxu1 %v6922_v23 }
 0x137   : > { %3271 = vmatpush1.bf16.msra.mxu0 %v6220_v55  ;;  %3497 = vmatpush1.bf16.msra.mxu1 %v6223_v56  ;;  %v6268_v55 = vld [vmem:[#allocation5 + $0x9d0] ss:$48 sps:$4 sm:$0xff]   ;;  %v6271_v56 = vld [vmem:[#allocation5 + $0x9d8] ss:$48 sps:$4 sm:$0xff]  }
 0x138   : > { %3272 = vmatprep.subr.bf16.mxu0 %v6228_v57  ;;  %3498 = vmatprep.subr.bf16.mxu1 %v6231_v60  ;;  %v6276_v57 = vld [vmem:[#allocation5 + $0xa34] ss:$48 sps:$4 sm:$0xff]   ;;  %v6279_v60 = vld [vmem:[#allocation5 + $0xa3c] ss:$48 sps:$4 sm:$0xff]  }
 0x139   : > { %3205 = vmatprep.mubr.bf16.mxu0 %v6926_v28  ;;  %3431 = vmatprep.mubr.bf16.mxu1 %v6926_v28 }
 0x13b   : > { %3273 = vmatpush1.bf16.msra.mxu0 %v6226_v61  ;;  %3499 = vmatpush1.bf16.msra.mxu1 %v6229_v63  ;;  %v6274_v61 = vld [vmem:[#allocation5 + $0xa30] ss:$48 sps:$4 sm:$0xff]   ;;  %v6277_v63 = vld [vmem:[#allocation5 + $0xa38] ss:$48 sps:$4 sm:$0xff]  }
 0x13c   : > { %3274 = vmatprep.subr.bf16.mxu0 %v6234_v2  ;;  %3500 = vmatprep.subr.bf16.mxu1 %v6237_v4  ;;  %v6282_v2 = vld [vmem:[#allocation5 + $0xa94] ss:$48 sps:$4 sm:$0xff]   ;;  %v6285_v4 = vld [vmem:[#allocation5 + $0xa9c] ss:$48 sps:$4 sm:$0xff]  }
 0x13e   : > { %3206 = vmatmul.mubr.bf16.gmra.mrb[40].mxu0 %v6934_v37  ;;  %3432 = vmatmul.mubr.bf16.gmra.mrb[40].mxu1 %v6934_v37 }
 0x13f   : > { %3275 = vmatpush1.bf16.msra.mxu0 %v6232_v5  ;;  %3501 = vmatpush1.bf16.msra.mxu1 %v6235_v6  ;;  %v6280_v5 = vld [vmem:[#allocation5 + $0xa90] ss:$48 sps:$4 sm:$0xff]   ;;  %v6283_v6 = vld [vmem:[#allocation5 + $0xa98] ss:$48 sps:$4 sm:$0xff]  }
 0x140   : > { %3276 = vmatprep.subr.bf16.mxu0 %v6240_v9  ;;  %3502 = vmatprep.subr.bf16.mxu1 %v6243_v11  ;;  %v6288_v9 = vld [vmem:[#allocation5 + $0xaf4] ss:$48 sps:$4 sm:$0xff]   ;;  %v6291_v11 = vld [vmem:[#allocation5 + $0xafc] ss:$48 sps:$4 sm:$0xff]  }
 0x141   : > { %3215 = vmatprep.mubr.bf16.mxu0 %v6938_v43  ;;  %3441 = vmatprep.mubr.bf16.mxu1 %v6938_v43 }
 0x143   : > { %3277 = vmatpush1.bf16.msra.mxu0 %v6238_v14  ;;  %3503 = vmatpush1.bf16.msra.mxu1 %v6241_v16  ;;  %v6286_v14 = vld [vmem:[#allocation5 + $0xaf0] ss:$48 sps:$4 sm:$0xff]   ;;  %v6289_v16 = vld [vmem:[#allocation5 + $0xaf8] ss:$48 sps:$4 sm:$0xff]  }
 0x144   : > { %3278 = vmatprep.subr.bf16.mxu0 %v6246_v18  ;;  %3504 = vmatprep.subr.bf16.mxu1 %v6249_v21  ;;  %v6294_v18 = vld [vmem:[#allocation5 + $0xb54] ss:$48 sps:$4 sm:$0xff]   ;;  %v6297_v21 = vld [vmem:[#allocation5 + $0xb5c] ss:$48 sps:$4 sm:$0xff]  }
 0x146   : > { %3216 = vmatmul.mubr.bf16.gmra.mrb[44].mxu0 %v6946_v50  ;;  %3442 = vmatmul.mubr.bf16.gmra.mrb[44].mxu1 %v6946_v50 }
 0x147   : > { %3279 = vmatpush1.bf16.msra.mxu0 %v6244_v24  ;;  %3505 = vmatpush1.bf16.msra.mxu1 %v6247_v26  ;;  %v6292_v24 = vld [vmem:[#allocation5 + $0xb50] ss:$48 sps:$4 sm:$0xff]   ;;  %v6295_v26 = vld [vmem:[#allocation5 + $0xb58] ss:$48 sps:$4 sm:$0xff]  }
 0x148   : > { %3280 = vmatprep.subr.bf16.mxu0 %v6252_v27  ;;  %3506 = vmatprep.subr.bf16.mxu1 %v6255_v29  ;;  %v6300_v27 = vld [vmem:[#allocation5 + $0xbb4] ss:$48 sps:$4 sm:$0xff]   ;;  %v6303_v29 = vld [vmem:[#allocation5 + $0xbbc] ss:$48 sps:$4 sm:$0xff]  }
 0x149   : > { %3225 = vmatprep.mubr.bf16.mxu0 %v6950_v59  ;;  %3451 = vmatprep.mubr.bf16.mxu1 %v6950_v59 }
 0x14b   : > { %3281 = vmatpush1.bf16.msra.mxu0 %v6250_v31  ;;  %3507 = vmatpush1.bf16.msra.mxu1 %v6253_v33  ;;  %v6298_v31 = vld [vmem:[#allocation5 + $0xbb0] ss:$48 sps:$4 sm:$0xff]   ;;  %v6301_v33 = vld [vmem:[#allocation5 + $0xbb8] ss:$48 sps:$4 sm:$0xff]  }
 0x14c   : > { %3282 = vmatprep.subr.bf16.mxu0 %v6258_v35  ;;  %3508 = vmatprep.subr.bf16.mxu1 %v6261_v36  ;;  %v6306_v35 = vld [vmem:[#allocation5 + $0x24] ss:$48 sps:$4 sm:$0xff]   ;;  %v6309_v36 = vld [vmem:[#allocation5 + $0x2c] ss:$48 sps:$4 sm:$0xff]  }
 0x14e   : > { %3226 = vmatmul.mubr.bf16.gmra.mrb[48].mxu0 %v6958_v0  ;;  %3452 = vmatmul.mubr.bf16.gmra.mrb[48].mxu1 %v6958_v0 }
 0x14f   : > { %3283 = vmatpush1.bf16.msra.mxu0 %v6256_v38  ;;  %3509 = vmatpush1.bf16.msra.mxu1 %v6259_v39  ;;  %v6304_v38 = vld [vmem:[#allocation5 + $0x20] ss:$48 sps:$4 sm:$0xff]   ;;  %v6307_v39 = vld [vmem:[#allocation5 + $0x28] ss:$48 sps:$4 sm:$0xff]  }
 0x150   : > { %3284 = vmatprep.subr.bf16.mxu0 %v6264_v44  ;;  %3510 = vmatprep.subr.bf16.mxu1 %v6267_v45  ;;  %v6312_v44 = vld [vmem:[#allocation5 + $0x84] ss:$48 sps:$4 sm:$0xff]   ;;  %v6315_v45 = vld [vmem:[#allocation5 + $0x8c] ss:$48 sps:$4 sm:$0xff]  }
 0x151   : > { %3235 = vmatprep.mubr.bf16.mxu0 %v6962_v10  ;;  %3461 = vmatprep.mubr.bf16.mxu1 %v6962_v10 }
 0x153   : > { %3285 = vmatpush1.bf16.msra.mxu0 %v6262_v46  ;;  %3511 = vmatpush1.bf16.msra.mxu1 %v6265_v47  ;;  %v6310_v46 = vld [vmem:[#allocation5 + $0x80] ss:$48 sps:$4 sm:$0xff]   ;;  %v6313_v47 = vld [vmem:[#allocation5 + $0x88] ss:$48 sps:$4 sm:$0xff]  }
 0x154   : > { %3286 = vmatprep.subr.bf16.mxu0 %v6270_v48  ;;  %3512 = vmatprep.subr.bf16.mxu1 %v6273_v49  ;;  %v6318_v48 = vld [vmem:[#allocation5 + $0xe4] ss:$48 sps:$4 sm:$0xff]   ;;  %v6321_v49 = vld [vmem:[#allocation5 + $0xec] ss:$48 sps:$4 sm:$0xff]  }
 0x156   : > { %3236 = vmatmul.mubr.bf16.gmra.mrb[52].mxu0 %v6970_v17  ;;  %3462 = vmatmul.mubr.bf16.gmra.mrb[52].mxu1 %v6970_v17 }
 0x157   : > { %3287 = vmatpush1.bf16.msra.mxu0 %v6268_v55  ;;  %3513 = vmatpush1.bf16.msra.mxu1 %v6271_v56  ;;  %v6316_v55 = vld [vmem:[#allocation5 + $0xe0] ss:$48 sps:$4 sm:$0xff]   ;;  %v6319_v56 = vld [vmem:[#allocation5 + $0xe8] ss:$48 sps:$4 sm:$0xff]  }
 0x158   : > { %3288 = vmatprep.subr.bf16.mxu0 %v6276_v57  ;;  %3514 = vmatprep.subr.bf16.mxu1 %v6279_v60  ;;  %v6324_v57 = vld [vmem:[#allocation5 + $0x144] ss:$48 sps:$4 sm:$0xff]   ;;  %v6327_v60 = vld [vmem:[#allocation5 + $0x14c] ss:$48 sps:$4 sm:$0xff]  }
 0x159   : > { %3245 = vmatprep.mubr.bf16.mxu0 %v6974_v25  ;;  %3471 = vmatprep.mubr.bf16.mxu1 %v6974_v25 }
 0x15b   : > { %3289 = vmatpush1.bf16.msra.mxu0 %v6274_v61  ;;  %3515 = vmatpush1.bf16.msra.mxu1 %v6277_v63  ;;  %v6322_v61 = vld [vmem:[#allocation5 + $0x140] ss:$48 sps:$4 sm:$0xff]   ;;  %v6325_v63 = vld [vmem:[#allocation5 + $0x148] ss:$48 sps:$4 sm:$0xff]  }
 0x15c   : > { %3290 = vmatprep.subr.bf16.mxu0 %v6282_v2  ;;  %3516 = vmatprep.subr.bf16.mxu1 %v6285_v4  ;;  %v6330_v2 = vld [vmem:[#allocation5 + $0x1a4] ss:$48 sps:$4 sm:$0xff]   ;;  %v6333_v4 = vld [vmem:[#allocation5 + $0x1ac] ss:$48 sps:$4 sm:$0xff]  }
 0x15e   : > { %3246 = vmatmul.mubr.bf16.gmra.mrb[56].mxu0 %v6982_v34  ;;  %3472 = vmatmul.mubr.bf16.gmra.mrb[56].mxu1 %v6982_v34 }
 0x15f   : > { %3291 = vmatpush1.bf16.msra.mxu0 %v6280_v5  ;;  %3517 = vmatpush1.bf16.msra.mxu1 %v6283_v6  ;;  %v6328_v5 = vld [vmem:[#allocation5 + $0x1a0] ss:$48 sps:$4 sm:$0xff]   ;;  %v6331_v6 = vld [vmem:[#allocation5 + $0x1a8] ss:$48 sps:$4 sm:$0xff]  }
 0x160   : > { %3292 = vmatprep.subr.bf16.mxu0 %v6288_v9  ;;  %3518 = vmatprep.subr.bf16.mxu1 %v6291_v11  ;;  %v6336_v9 = vld [vmem:[#allocation5 + $0x204] ss:$48 sps:$4 sm:$0xff]   ;;  %v6339_v11 = vld [vmem:[#allocation5 + $0x20c] ss:$48 sps:$4 sm:$0xff]  }
 0x161   : > { %3255 = vmatprep.mubr.bf16.mxu0 %v6986_v40  ;;  %3481 = vmatprep.mubr.bf16.mxu1 %v6986_v40 }
 0x163   : > { %3293 = vmatpush1.bf16.msra.mxu0 %v6286_v14  ;;  %3519 = vmatpush1.bf16.msra.mxu1 %v6289_v16  ;;  %v6334_v14 = vld [vmem:[#allocation5 + $0x200] ss:$48 sps:$4 sm:$0xff]   ;;  %v6337_v16 = vld [vmem:[#allocation5 + $0x208] ss:$48 sps:$4 sm:$0xff]  }
 0x164   : > { %3294 = vmatprep.subr.bf16.mxu0 %v6294_v18  ;;  %3520 = vmatprep.subr.bf16.mxu1 %v6297_v21  ;;  %v6342_v18 = vld [vmem:[#allocation5 + $0x264] ss:$48 sps:$4 sm:$0xff]   ;;  %v6345_v21 = vld [vmem:[#allocation5 + $0x26c] ss:$48 sps:$4 sm:$0xff]  }
 0x166   : > { %3256 = vmatmul.mubr.bf16.gmra.mrb[60].mxu0 %v6994_v52  ;;  %3482 = vmatmul.mubr.bf16.gmra.mrb[60].mxu1 %v6994_v52 }
 0x167   : > { %3295 = vmatpush1.bf16.msra.mxu0 %v6292_v24  ;;  %3521 = vmatpush1.bf16.msra.mxu1 %v6295_v26  ;;  %v6340_v24 = vld [vmem:[#allocation5 + $0x260] ss:$48 sps:$4 sm:$0xff]   ;;  %v6343_v26 = vld [vmem:[#allocation5 + $0x268] ss:$48 sps:$4 sm:$0xff]  }
 0x168   : > { %3296 = vmatprep.subr.bf16.mxu0 %v6300_v27  ;;  %3522 = vmatprep.subr.bf16.mxu1 %v6303_v29  ;;  %v6348_v27 = vld [vmem:[#allocation5 + $0x2c4] ss:$48 sps:$4 sm:$0xff]   ;;  %v6351_v29 = vld [vmem:[#allocation5 + $0x2cc] ss:$48 sps:$4 sm:$0xff]  }
 0x169   : > { %3298 = vmatprep.mubr.bf16.mxu0 %v6998_v58  ;;  %3524 = vmatprep.mubr.bf16.mxu1 %v6998_v58 }
 0x16b   : > { %3297 = vmatpush1.bf16.msra.mxu0 %v6298_v31  ;;  %3523 = vmatpush1.bf16.msra.mxu1 %v6301_v33  ;;  %v6346_v31 = vld [vmem:[#allocation5 + $0x2c0] ss:$48 sps:$4 sm:$0xff]   ;;  %v6349_v33 = vld [vmem:[#allocation5 + $0x2c8] ss:$48 sps:$4 sm:$0xff]  }
 0x16c   : > { %3605 = vmatprep.subr.bf16.mxu0 %v6306_v35  ;;  %3831 = vmatprep.subr.bf16.mxu1 %v6309_v36  ;;  %v6354_v35 = vld [vmem:[#allocation5 + $0x324] ss:$48 sps:$4 sm:$0xff]   ;;  %v6357_v36 = vld [vmem:[#allocation5 + $0x32c] ss:$48 sps:$4 sm:$0xff]  }
 0x16e   : > { %3299 = vmatmul.mubr.bf16.vlgmr.msra.gmra.mrb[32].mxu0 %v7006_v3  ;;  %3525 = vmatmul.mubr.bf16.vlgmr.msra.gmra.mrb[32].mxu1 %v7006_v3 }
 0x16f   : > { %3606 = vmatpush1.bf16.msra.mxu0 %v6304_v38  ;;  %3832 = vmatpush1.bf16.msra.mxu1 %v6307_v39  ;;  %v6352_v38 = vld [vmem:[#allocation5 + $0x320] ss:$48 sps:$4 sm:$0xff]   ;;  %v6355_v39 = vld [vmem:[#allocation5 + $0x328] ss:$48 sps:$4 sm:$0xff]  }
 0x170   : > { %3607 = vmatprep.subr.bf16.mxu0 %v6312_v44  ;;  %3833 = vmatprep.subr.bf16.mxu1 %v6315_v45  ;;  %v6360_v44 = vld [vmem:[#allocation5 + $0x384] ss:$48 sps:$4 sm:$0xff]   ;;  %v6363_v45 = vld [vmem:[#allocation5 + $0x38c] ss:$48 sps:$4 sm:$0xff]  }
 0x171   : > { %3308 = vmatprep.mubr.bf16.mxu0 %v7010_v13  ;;  %3534 = vmatprep.mubr.bf16.mxu1 %v7010_v13 }
 0x173   : > { %3608 = vmatpush1.bf16.msra.mxu0 %v6310_v46  ;;  %3834 = vmatpush1.bf16.msra.mxu1 %v6313_v47  ;;  %v6358_v46 = vld [vmem:[#allocation5 + $0x380] ss:$48 sps:$4 sm:$0xff]   ;;  %v6361_v47 = vld [vmem:[#allocation5 + $0x388] ss:$48 sps:$4 sm:$0xff]  }
 0x174   : > { %3609 = vmatprep.subr.bf16.mxu0 %v6318_v48  ;;  %3835 = vmatprep.subr.bf16.mxu1 %v6321_v49  ;;  %v6366_v48 = vld [vmem:[#allocation5 + $0x3e4] ss:$48 sps:$4 sm:$0xff]   ;;  %v6369_v49 = vld [vmem:[#allocation5 + $0x3ec] ss:$48 sps:$4 sm:$0xff]  }
 0x176   : > { %3309 = vmatmul.mubr.bf16.gmra.mrb[36].mxu0 %v7018_v20  ;;  %3535 = vmatmul.mubr.bf16.gmra.mrb[36].mxu1 %v7018_v20 }
 0x177   : > { %3610 = vmatpush1.bf16.msra.mxu0 %v6316_v55  ;;  %3836 = vmatpush1.bf16.msra.mxu1 %v6319_v56  ;;  %v6364_v55 = vld [vmem:[#allocation5 + $0x3e0] ss:$48 sps:$4 sm:$0xff]   ;;  %v6367_v56 = vld [vmem:[#allocation5 + $0x3e8] ss:$48 sps:$4 sm:$0xff]  }
 0x178   : > { %3611 = vmatprep.subr.bf16.mxu0 %v6324_v57  ;;  %3837 = vmatprep.subr.bf16.mxu1 %v6327_v60  ;;  %v6372_v57 = vld [vmem:[#allocation5 + $0x444] ss:$48 sps:$4 sm:$0xff]   ;;  %v6375_v60 = vld [vmem:[#allocation5 + $0x44c] ss:$48 sps:$4 sm:$0xff]  }
 0x179   : > { %3318 = vmatprep.mubr.bf16.mxu0 %v7022_v32  ;;  %3544 = vmatprep.mubr.bf16.mxu1 %v7022_v32 }
 0x17b   : > { %3612 = vmatpush1.bf16.msra.mxu0 %v6322_v61  ;;  %3838 = vmatpush1.bf16.msra.mxu1 %v6325_v63  ;;  %v6370_v61 = vld [vmem:[#allocation5 + $0x440] ss:$48 sps:$4 sm:$0xff]   ;;  %v6373_v63 = vld [vmem:[#allocation5 + $0x448] ss:$48 sps:$4 sm:$0xff]  }
 0x17c   : > { %3613 = vmatprep.subr.bf16.mxu0 %v6330_v2  ;;  %3839 = vmatprep.subr.bf16.mxu1 %v6333_v4  ;;  %v6378_v2 = vld [vmem:[#allocation5 + $0x4a4] ss:$48 sps:$4 sm:$0xff]   ;;  %v6381_v4 = vld [vmem:[#allocation5 + $0x4ac] ss:$48 sps:$4 sm:$0xff]  }
 0x17e   : > { %3319 = vmatmul.mubr.bf16.gmra.mrb[40].mxu0 %v7030_v41  ;;  %3545 = vmatmul.mubr.bf16.gmra.mrb[40].mxu1 %v7030_v41 }
 0x17f   : > { %3614 = vmatpush1.bf16.msra.mxu0 %v6328_v5  ;;  %3840 = vmatpush1.bf16.msra.mxu1 %v6331_v6  ;;  %v6376_v5 = vld [vmem:[#allocation5 + $0x4a0] ss:$48 sps:$4 sm:$0xff]   ;;  %v6379_v6 = vld [vmem:[#allocation5 + $0x4a8] ss:$48 sps:$4 sm:$0xff]  }
 0x180   : > { %3615 = vmatprep.subr.bf16.mxu0 %v6336_v9  ;;  %3841 = vmatprep.subr.bf16.mxu1 %v6339_v11  ;;  %v6384_v9 = vld [vmem:[#allocation5 + $0x504] ss:$48 sps:$4 sm:$0xff]   ;;  %v6387_v11 = vld [vmem:[#allocation5 + $0x50c] ss:$48 sps:$4 sm:$0xff]  }
 0x181   : > { %3328 = vmatprep.mubr.bf16.mxu0 %v7034_v53  ;;  %3554 = vmatprep.mubr.bf16.mxu1 %v7034_v53 }
 0x183   : > { %3616 = vmatpush1.bf16.msra.mxu0 %v6334_v14  ;;  %3842 = vmatpush1.bf16.msra.mxu1 %v6337_v16  ;;  %v6382_v14 = vld [vmem:[#allocation5 + $0x500] ss:$48 sps:$4 sm:$0xff]   ;;  %v6385_v16 = vld [vmem:[#allocation5 + $0x508] ss:$48 sps:$4 sm:$0xff]  }
 0x184   : > { %3617 = vmatprep.subr.bf16.mxu0 %v6342_v18  ;;  %3843 = vmatprep.subr.bf16.mxu1 %v6345_v21  ;;  %v6390_v18 = vld [vmem:[#allocation5 + $0x564] ss:$48 sps:$4 sm:$0xff]   ;;  %v6393_v21 = vld [vmem:[#allocation5 + $0x56c] ss:$48 sps:$4 sm:$0xff]  }
 0x186   : > { %3329 = vmatmul.mubr.bf16.gmra.mrb[44].mxu0 %v7042_v62  ;;  %3555 = vmatmul.mubr.bf16.gmra.mrb[44].mxu1 %v7042_v62 }
 0x187   : > { %3618 = vmatpush1.bf16.msra.mxu0 %v6340_v24  ;;  %3844 = vmatpush1.bf16.msra.mxu1 %v6343_v26  ;;  %v6388_v24 = vld [vmem:[#allocation5 + $0x560] ss:$48 sps:$4 sm:$0xff]   ;;  %v6391_v26 = vld [vmem:[#allocation5 + $0x568] ss:$48 sps:$4 sm:$0xff]  }
 0x188   : > { %3619 = vmatprep.subr.bf16.mxu0 %v6348_v27  ;;  %3845 = vmatprep.subr.bf16.mxu1 %v6351_v29  ;;  %v6396_v27 = vld [vmem:[#allocation5 + $0x5c4] ss:$48 sps:$4 sm:$0xff]   ;;  %v6399_v29 = vld [vmem:[#allocation5 + $0x5cc] ss:$48 sps:$4 sm:$0xff]  }
 0x189   : > { %3338 = vmatprep.mubr.bf16.mxu0 %v7046_v7  ;;  %3564 = vmatprep.mubr.bf16.mxu1 %v7046_v7 }
 0x18b   : > { %3620 = vmatpush1.bf16.msra.mxu0 %v6346_v31  ;;  %3846 = vmatpush1.bf16.msra.mxu1 %v6349_v33  ;;  %v6394_v31 = vld [vmem:[#allocation5 + $0x5c0] ss:$48 sps:$4 sm:$0xff]   ;;  %v6397_v33 = vld [vmem:[#allocation5 + $0x5c8] ss:$48 sps:$4 sm:$0xff]  }
 0x18c   : > { %3621 = vmatprep.subr.bf16.mxu0 %v6354_v35  ;;  %3847 = vmatprep.subr.bf16.mxu1 %v6357_v36  ;;  %v6402_v35 = vld [vmem:[#allocation5 + $0x624] ss:$48 sps:$4 sm:$0xff]   ;;  %v6405_v36 = vld [vmem:[#allocation5 + $0x62c] ss:$48 sps:$4 sm:$0xff]  }
 0x18e   : > { %3339 = vmatmul.mubr.bf16.gmra.mrb[48].mxu0 %v7054_v19  ;;  %3565 = vmatmul.mubr.bf16.gmra.mrb[48].mxu1 %v7054_v19 }
 0x18f   : > { %3622 = vmatpush1.bf16.msra.mxu0 %v6352_v38  ;;  %3848 = vmatpush1.bf16.msra.mxu1 %v6355_v39  ;;  %v6400_v38 = vld [vmem:[#allocation5 + $0x620] ss:$48 sps:$4 sm:$0xff]   ;;  %v6403_v39 = vld [vmem:[#allocation5 + $0x628] ss:$48 sps:$4 sm:$0xff]  }
 0x190   : > { %3623 = vmatprep.subr.bf16.mxu0 %v6360_v44  ;;  %3849 = vmatprep.subr.bf16.mxu1 %v6363_v45  ;;  %v6408_v44 = vld [vmem:[#allocation5 + $0x684] ss:$48 sps:$4 sm:$0xff]   ;;  %v6411_v45 = vld [vmem:[#allocation5 + $0x68c] ss:$48 sps:$4 sm:$0xff]  }
 0x191   : > { %3348 = vmatprep.mubr.bf16.mxu0 %v7058_v30  ;;  %3574 = vmatprep.mubr.bf16.mxu1 %v7058_v30 }
 0x193   : > { %3624 = vmatpush1.bf16.msra.mxu0 %v6358_v46  ;;  %3850 = vmatpush1.bf16.msra.mxu1 %v6361_v47  ;;  %v6406_v46 = vld [vmem:[#allocation5 + $0x680] ss:$48 sps:$4 sm:$0xff]   ;;  %v6409_v47 = vld [vmem:[#allocation5 + $0x688] ss:$48 sps:$4 sm:$0xff]  }
 0x194   : > { %3625 = vmatprep.subr.bf16.mxu0 %v6366_v48  ;;  %3851 = vmatprep.subr.bf16.mxu1 %v6369_v49  ;;  %v6414_v48 = vld [vmem:[#allocation5 + $0x6e4] ss:$48 sps:$4 sm:$0xff]   ;;  %v721_v49 = vlaneseq }
 0x196   : > { %3349 = vmatmul.mubr.bf16.gmra.mrb[52].mxu0 %v7066_v42  ;;  %3575 = vmatmul.mubr.bf16.gmra.mrb[52].mxu1 %v7066_v42 }
 0x197   : > { %3626 = vmatpush1.bf16.msra.mxu0 %v6364_v55  ;;  %3852 = vmatpush1.bf16.msra.mxu1 %v6367_v56  ;;  %v6412_v55 = vld [vmem:[#allocation5 + $0x6e0] ss:$48 sps:$4 sm:$0xff]   ;;  %v6415_v56 = vld [vmem:[#allocation5 + $0x6e8] ss:$48 sps:$4 sm:$0xff]  }
 0x198   : > { %3627 = vmatprep.subr.bf16.mxu0 %v6372_v57  ;;  %3853 = vmatprep.subr.bf16.mxu1 %v6375_v60  ;;  %v6423_v57 = vld [vmem:[#allocation5 + $0x74c] ss:$48 sps:$4 sm:$0xff]   ;;  %v7166_v60 = vshrl.u32 %v721_v49, 7  ;;  %v6439_v49 = vld [vmem:[#allocation5 + $0x868] ss:$48 sps:$4 sm:$0xff]  }
 0x199   : > { %3358 = vmatprep.mubr.bf16.mxu0 %v7070_v54  ;;  %3584 = vmatprep.mubr.bf16.mxu1 %v7070_v54 }
 0x19b   : > { %3628 = vmatpush1.bf16.msra.mxu0 %v6370_v61  ;;  %3854 = vmatpush1.bf16.msra.mxu1 %v6373_v63  ;;  %v6418_v61 = vld [vmem:[#allocation5 + $0x740] ss:$48 sps:$4 sm:$0xff]   ;;  %v6421_v63 = vld [vmem:[#allocation5 + $0x748] ss:$48 sps:$4 sm:$0xff]  }
 0x19c   : > { %3629 = vmatprep.subr.bf16.mxu0 %v6378_v2  ;;  %3855 = vmatprep.subr.bf16.mxu1 %v6381_v4  ;;  %v6429_v2 = vld [vmem:[#allocation5 + $0x7ac] ss:$48 sps:$4 sm:$0xff]   ;;  %v723_v4 = vsub.s32 0, %v7166_v60 }
 0x19e   : > { %3359 = vmatmul.mubr.bf16.gmra.mrb[56].mxu0 %v7078_v1  ;;  %3585 = vmatmul.mubr.bf16.gmra.mrb[56].mxu1 %v7078_v1 }
 0x19f   : > { %3630 = vmatpush1.bf16.msra.mxu0 %v6376_v5  ;;  %3856 = vmatpush1.bf16.msra.mxu1 %v6379_v6  ;;  %v731_v5 = vsub.s32 2, %v7166_v60  ;;  %v6424_v6 = vld [vmem:[#allocation5 + $0x7a0] ss:$48 sps:$4 sm:$0xff]  }
 0x1a0   : > { %3631 = vmatprep.subr.bf16.mxu0 %v6384_v9  ;;  %3857 = vmatprep.subr.bf16.mxu1 %v6387_v11  ;;  %v6427_v9 = vld [vmem:[#allocation5 + $0x7a8] ss:$48 sps:$4 sm:$0xff]   ;;  %v7173_v11 = vld [vmem:[#allocation7] sm:$0xff] }
 0x1a1   : > { %3368 = vmatprep.mubr.bf16.mxu0 %v7082_v12  ;;  %3594 = vmatprep.mubr.bf16.mxu1 %v7082_v12 }
 0x1a3   : > { %3632 = vmatpush1.bf16.msra.mxu0 %v6382_v14  ;;  %3858 = vmatpush1.bf16.msra.mxu1 %v6385_v16  ;;  %v735_v14 = vsub.s32 3, %v7166_v60  ;;  %v6432_v16 = vld [vmem:[#allocation5 + $0x804] ss:$48 sps:$4 sm:$0xff]  }
 0x1a4   : > { %3633 = vmatprep.subr.bf16.mxu0 %v6390_v18  ;;  %3859 = vmatprep.subr.bf16.mxu1 %v6393_v21  ;;  %v6435_v18 = vld [vmem:[#allocation5 + $0x80c] ss:$48 sps:$4 sm:$0xff]   ;;  %v7186_v21 = vrot.slane %v7173_v11, %v731_v5 }
 0x1a6   : > { %3369 = vmatmul.mubr.bf16.gmra.mrb[60].mxu0 %v7090_v22  ;;  %3595 = vmatmul.mubr.bf16.gmra.mrb[60].mxu1 %v7090_v22 }
 0x1a7   : > { %3634 = vmatpush1.bf16.msra.mxu0 %v6388_v24  ;;  %3860 = vmatpush1.bf16.msra.mxu1 %v6391_v26  ;;  %v6430_v26 = vld [vmem:[#allocation5 + $0x800] ss:$48 sps:$4 sm:$0xff]  }
 0x1a8   : > { %3635 = vmatprep.subr.bf16.mxu0 %v6396_v27  ;;  %3861 = vmatprep.subr.bf16.mxu1 %v6399_v29  ;;  %v6433_v27 = vld [vmem:[#allocation5 + $0x808] ss:$48 sps:$4 sm:$0xff]   ;;  %v6438_v29 = vld [vmem:[#allocation5 + $0x864] ss:$48 sps:$4 sm:$0xff]  }
 0x1a9   : > { %3637 = vmatprep.mubr.bf16.mxu0 %v6904_v51  ;;  %3863 = vmatprep.mubr.bf16.mxu1 %v6904_v51  ;;  %v6417_v51 = vld [vmem:[#allocation5 + $0x6ec] ss:$48 sps:$4 sm:$0xff]  }
 0x1ab   : > { %3636 = vmatpush1.bf16.msra.mxu0 %v6394_v31  ;;  %3862 = vmatpush1.bf16.msra.mxu1 %v6397_v33  ;;  %v6441_v31 = vld [vmem:[#allocation5 + $0x86c] ss:$48 sps:$4 sm:$0xff]  }
 0x1ac   : > { %3718 = vmatprep.subr.bf16.mxu0 %v6402_v35  ;;  %3944 = vmatprep.subr.bf16.mxu1 %v6405_v36 }
 0x1ae   : > { %3638 = vmatmul.mubr.bf16.vlgmr.msra.gmra.mrb[64].mxu0 %v6910_v8  ;;  %3864 = vmatmul.mubr.bf16.vlgmr.msra.gmra.mrb[64].mxu1 %v6910_v8  ;;  %v6420_v8 = vld [vmem:[#allocation5 + $0x744] ss:$48 sps:$4 sm:$0xff]  }
 0x1af   : > { %3719 = vmatpush1.bf16.msra.mxu0 %v6400_v38  ;;  %3945 = vmatpush1.bf16.msra.mxu1 %v6403_v39 }
 0x1b0   : > { %3720 = vmatprep.subr.bf16.mxu0 %v6408_v44  ;;  %3946 = vmatprep.subr.bf16.mxu1 %v6411_v45 }
 0x1b1   : > { %3647 = vmatprep.mubr.bf16.mxu0 %v6914_v15  ;;  %3873 = vmatprep.mubr.bf16.mxu1 %v6914_v15  ;;  %v6426_v15 = vld [vmem:[#allocation5 + $0x7a4] ss:$48 sps:$4 sm:$0xff]  }
 0x1b3   : > { %3721 = vmatpush1.bf16.msra.mxu0 %v6406_v46  ;;  %3947 = vmatpush1.bf16.msra.mxu1 %v6409_v47 }
 0x1b4   : > { %3722 = vmatprep.subr.bf16.mxu0 %v6414_v48  ;;  %3948 = vmatprep.subr.bf16.mxu1 %v6417_v51  ;;  %v6436_v51 = vld [vmem:[#allocation5 + $0x860] ss:$48 sps:$4 sm:$0xff]  }
 0x1b6   : > { %3648 = vmatmul.mubr.bf16.gmra.mrb[68].mxu0 %v6922_v23  ;;  %3874 = vmatmul.mubr.bf16.gmra.mrb[68].mxu1 %v6922_v23  ;;  %v727_v23 = vsub.s32 1, %v7166_v60 }
 0x1b7   : > { %3723 = vmatpush1.bf16.msra.mxu0 %v6412_v55  ;;  %3949 = vmatpush1.bf16.msra.mxu1 %v6415_v56 }
 0x1b8   : > { %3724 = vmatprep.subr.bf16.mxu0 %v6420_v8  ;;  %3950 = vmatprep.subr.bf16.mxu1 %v6423_v57  ;;  %v7192_v24 = vrot.slane %v7173_v11, %v727_v23  ;;  %v6444_v57 = vld [vmem:[#allocation5 + $0x8c4] ss:$48 sps:$4 sm:$0xff]  }
 0x1b9   : > { %3657 = vmatprep.mubr.bf16.mxu0 %v6926_v28  ;;  %3883 = vmatprep.mubr.bf16.mxu1 %v6926_v28  ;;  %v7181_v28 = vrot.slane %v7173_v11, %v723_v4 }
 0x1bb   : > { %3725 = vmatpush1.bf16.msra.mxu0 %v6418_v61  ;;  %3951 = vmatpush1.bf16.msra.mxu1 %v6421_v63  ;;  %v6447_v61 = vld [vmem:[#allocation5 + $0x8cc] ss:$48 sps:$4 sm:$0xff]  }
 0x1bc   : > { %3726 = vmatprep.subr.bf16.mxu0 %v6426_v15  ;;  %3952 = vmatprep.subr.bf16.mxu1 %v6429_v2 }
 0x1be   : > { %3658 = vmatmul.mubr.bf16.gmra.mrb[72].mxu0 %v6934_v37  ;;  %3884 = vmatmul.mubr.bf16.gmra.mrb[72].mxu1 %v6934_v37  ;;  %v7197_v37 = vrot.slane %v7173_v11, %v735_v14 }
 0x1bf   : > { %3727 = vmatpush1.bf16.msra.mxu0 %v6424_v6  ;;  %3953 = vmatpush1.bf16.msra.mxu1 %v6427_v9 }
 0x1c0   : > { %3728 = vmatprep.subr.bf16.mxu0 %v6432_v16  ;;  %3954 = vmatprep.subr.bf16.mxu1 %v6435_v18  ;;  %v6442_v18 = vld [vmem:[#allocation5 + $0x8c0] ss:$48 sps:$4 sm:$0xff]  }
 0x1c1   : > { %v2848_v33 = vpop.f32.mrb[0].mxu0  ;;  %v3074_v35 = vpop.f32.mrb[0].mxu1  ;;  %3667 = vmatprep.mubr.bf16.mxu0 %v6938_v43  ;;  %3893 = vmatprep.mubr.bf16.mxu1 %v6938_v43 }
 0x1c2   : > { %v5445_v36 = vadd.f32 %v2848_v33, %v7181_v28  ;;  %v5477_v38 = vadd.f32 %v3074_v35, %v7186_v21  ;;  %v2850_v39 = vpop.f32.mrb[1].mxu0  ;;  %v3076_v44 = vpop.f32.mrb[1].mxu1 }
 0x1c3   : > { %v5446_v45 = vadd.f32 %v2850_v39, %v7192_v24  ;;  %v5478_v46 = vadd.f32 %v3076_v44, %v7197_v37  ;;  %v2852_v47 = vpop.f32.mrb[2].mxu0  ;;  %v3078_v48 = vpop.f32.mrb[2].mxu1  ;;  %3729 = vmatpush1.bf16.msra.mxu0 %v6430_v26  ;;  %3955 = vmatpush1.bf16.msra.mxu1 %v6433_v27  ;;  %v6445_v26 = vld [vmem:[#allocation5 + $0x8c8] ss:$48 sps:$4 sm:$0xff]   ;;  %v6450_v27 = vld [vmem:[#allocation5 + $0x924] ss:$48 sps:$4 sm:$0xff]  }
 0x1c4   : > { %v5447_v55 = vadd.f32 %v2852_v47, %v7181_v28  ;;  %v5479_v43 = vadd.f32 %v3078_v48, %v7186_v21  ;;  %v2854_v56 = vpop.f32.mrb[3].mxu0  ;;  %v3080_v8 = vpop.f32.mrb[3].mxu1  ;;  %3730 = vmatprep.subr.bf16.mxu0 %v6438_v29  ;;  %3956 = vmatprep.subr.bf16.mxu1 %v6441_v31  ;;  %v6453_v29 = vld [vmem:[#allocation5 + $0x92c] ss:$48 sps:$4 sm:$0xff]   ;;  %v6448_v47 = vld [vmem:[#allocation5 + $0x920] ss:$48 sps:$4 sm:$0xff]  }
 0x1c5   : > { %v5349_v63 = vpack.c.bf16 %v5446_v45, %v5445_v36  ;;  %v5350_v15 = vpack.c.bf16 %v5478_v46, %v5477_v38  ;;  %v5448_v2 = vadd.f32 %v2854_v56, %v7192_v24  ;;  %v5480_v6 = vadd.f32 %v3080_v8, %v7197_v37  ;;  %v6451_v48 = vld [vmem:[#allocation5 + $0x928] ss:$48 sps:$4 sm:$0xff]   ;;  %v6459_v56 = vld [vmem:[#allocation5 + $0x98c] ss:$48 sps:$4 sm:$0xff]  }
 0x1c6   : > { %3668 = vmatmul.mubr.bf16.gmra.mrb[76].mxu0 %v6946_v50  ;;  %3894 = vmatmul.mubr.bf16.gmra.mrb[76].mxu1 %v6946_v50 }
 0x1c7   : > { %4633 = vst [vmem:[%s7213_s22] sm:$0xff] %v5349_v63  ;;  %4634 = vst [vmem:[%s7213_s22 + $0x8] sm:$0xff] %v5350_v15  ;;  %v5355_v9 = vpack.c.bf16 %v5448_v2, %v5447_v55  ;;  %v5356_v16 = vpack.c.bf16 %v5480_v6, %v5479_v43  ;;  %3731 = vmatpush1.bf16.msra.mxu0 %v6436_v51  ;;  %3957 = vmatpush1.bf16.msra.mxu1 %v6439_v49  ;;  %v6456_v43 = vld [vmem:[#allocation5 + $0x984] ss:$48 sps:$4 sm:$0xff]   ;;  %v6454_v6 = vld [vmem:[#allocation5 + $0x980] ss:$48 sps:$4 sm:$0xff]  }
 0x1c8   : > { %3732 = vmatprep.subr.bf16.mxu0 %v6444_v57  ;;  %3958 = vmatprep.subr.bf16.mxu1 %v6447_v61 }
 0x1c9   : > { %4639 = vst [vmem:[%s7213_s22 + $0x30] sm:$0xff] %v5355_v9  ;;  %4640 = vst [vmem:[%s7213_s22 + $0x38] sm:$0xff] %v5356_v16  ;;  %v2858_v50 = vpop.f32.mrb[4].mxu0  ;;  %v3084_v31 = vpop.f32.mrb[4].mxu1  ;;  %3677 = vmatprep.mubr.bf16.mxu0 %v6950_v59  ;;  %3903 = vmatprep.mubr.bf16.mxu1 %v6950_v59  ;;  %v6457_v9 = vld [vmem:[#allocation5 + $0x988] ss:$48 sps:$4 sm:$0xff]  }
 0x1ca   : > { %v5449_v33 = vadd.f32 %v2858_v50, %v7181_v28  ;;  %v5481_v35 = vadd.f32 %v3084_v31, %v7186_v21  ;;  %v2860_v36 = vpop.f32.mrb[5].mxu0  ;;  %v3086_v38 = vpop.f32.mrb[5].mxu1  ;;  %v6462_v16 = vld [vmem:[#allocation5 + $0x9e4] ss:$48 sps:$4 sm:$0xff]  }
 0x1cb   : > { %v5450_v39 = vadd.f32 %v2860_v36, %v7192_v24  ;;  %v5482_v44 = vadd.f32 %v3086_v38, %v7197_v37  ;;  %v2862_v45 = vpop.f32.mrb[6].mxu0  ;;  %v3088_v46 = vpop.f32.mrb[6].mxu1  ;;  %3733 = vmatpush1.bf16.msra.mxu0 %v6442_v18  ;;  %3959 = vmatpush1.bf16.msra.mxu1 %v6445_v26  ;;  %v6465_v18 = vld [vmem:[#allocation5 + $0x9ec] ss:$48 sps:$4 sm:$0xff]  }
 0x1cc   : > { %v5451_v59 = vadd.f32 %v2862_v45, %v7181_v28  ;;  %v5483_v51 = vadd.f32 %v3088_v46, %v7186_v21  ;;  %v2864_v49 = vpop.f32.mrb[7].mxu0  ;;  %v3090_v55 = vpop.f32.mrb[7].mxu1  ;;  %3734 = vmatprep.subr.bf16.mxu0 %v6450_v27  ;;  %3960 = vmatprep.subr.bf16.mxu1 %v6453_v29 }
 0x1cd   : > { %v5361_v8 = vpack.c.bf16 %v5450_v39, %v5449_v33  ;;  %v5362_v57 = vpack.c.bf16 %v5482_v44, %v5481_v35  ;;  %v5452_v61 = vadd.f32 %v2864_v49, %v7192_v24  ;;  %v5484_v63 = vadd.f32 %v3090_v55, %v7197_v37  ;;  %v6460_v39 = vld [vmem:[#allocation5 + $0x9e0] ss:$48 sps:$4 sm:$0xff]   ;;  %v6463_v44 = vld [vmem:[#allocation5 + $0x9e8] ss:$48 sps:$4 sm:$0xff]  }
 0x1ce   : > { %3678 = vmatmul.mubr.bf16.gmra.mrb[80].mxu0 %v6958_v0  ;;  %3904 = vmatmul.mubr.bf16.gmra.mrb[80].mxu1 %v6958_v0 }
 0x1cf   : > { %4645 = vst [vmem:[%s7213_s22 + $0x60] sm:$0xff] %v5361_v8  ;;  %4646 = vst [vmem:[%s7213_s22 + $0x68] sm:$0xff] %v5362_v57  ;;  %v5367_v15 = vpack.c.bf16 %v5452_v61, %v5451_v59  ;;  %v5368_v2 = vpack.c.bf16 %v5484_v63, %v5483_v51  ;;  %3735 = vmatpush1.bf16.msra.mxu0 %v6448_v47  ;;  %3961 = vmatpush1.bf16.msra.mxu1 %v6451_v48  ;;  %v6468_v48 = vld [vmem:[#allocation5 + $0xa44] ss:$48 sps:$4 sm:$0xff]   ;;  %v6471_v59 = vld [vmem:[#allocation5 + $0xa4c] ss:$48 sps:$4 sm:$0xff]  }
 0x1d0   : > { %3736 = vmatprep.subr.bf16.mxu0 %v6456_v43  ;;  %3962 = vmatprep.subr.bf16.mxu1 %v6459_v56  ;;  %v6466_v57 = vld [vmem:[#allocation5 + $0xa40] ss:$48 sps:$4 sm:$0xff]   ;;  %v6469_v61 = vld [vmem:[#allocation5 + $0xa48] ss:$48 sps:$4 sm:$0xff]   ;;  %v6474_v63 = vld [vmem:[#allocation5 + $0xaa4] ss:$48 sps:$4 sm:$0xff]  }
 0x1d1   : > { %4651 = vst [vmem:[%s7213_s22 + $0x90] sm:$0xff] %v5367_v15  ;;  %4652 = vst [vmem:[%s7213_s22 + $0x98] sm:$0xff] %v5368_v2  ;;  %v2868_v26 = vpop.f32.mrb[8].mxu0  ;;  %v3094_v27 = vpop.f32.mrb[8].mxu1  ;;  %3687 = vmatprep.mubr.bf16.mxu0 %v6962_v10  ;;  %3913 = vmatprep.mubr.bf16.mxu1 %v6962_v10  ;;  %v6477_v15 = vld [vmem:[#allocation5 + $0xaac] ss:$48 sps:$4 sm:$0xff]  }
 0x1d2   : > { %v5453_v0 = vadd.f32 %v2868_v26, %v7181_v28  ;;  %v5485_v29 = vadd.f32 %v3094_v27, %v7186_v21  ;;  %v2870_v50 = vpop.f32.mrb[9].mxu0  ;;  %v3096_v31 = vpop.f32.mrb[9].mxu1 }
 0x1d3   : > { %v5454_v33 = vadd.f32 %v2870_v50, %v7192_v24  ;;  %v5486_v35 = vadd.f32 %v3096_v31, %v7197_v37  ;;  %v2872_v36 = vpop.f32.mrb[10].mxu0  ;;  %v3098_v38 = vpop.f32.mrb[10].mxu1  ;;  %3737 = vmatpush1.bf16.msra.mxu0 %v6454_v6  ;;  %3963 = vmatpush1.bf16.msra.mxu1 %v6457_v9  ;;  %v6472_v50 = vld [vmem:[#allocation5 + $0xaa0] ss:$48 sps:$4 sm:$0xff]   ;;  %v6475_v31 = vld [vmem:[#allocation5 + $0xaa8] ss:$48 sps:$4 sm:$0xff]  }
 0x1d4   : > { %v5455_v10 = vadd.f32 %v2872_v36, %v7181_v28  ;;  %v5487_v45 = vadd.f32 %v3098_v38, %v7186_v21  ;;  %v2874_v46 = vpop.f32.mrb[11].mxu0  ;;  %v3100_v47 = vpop.f32.mrb[11].mxu1  ;;  %3738 = vmatprep.subr.bf16.mxu0 %v6462_v16  ;;  %3964 = vmatprep.subr.bf16.mxu1 %v6465_v18  ;;  %v6480_v38 = vld [vmem:[#allocation5 + $0xb04] ss:$48 sps:$4 sm:$0xff]  }
 0x1d5   : > { %v5373_v51 = vpack.c.bf16 %v5454_v33, %v5453_v0  ;;  %v5374_v49 = vpack.c.bf16 %v5486_v35, %v5485_v29  ;;  %v5456_v55 = vadd.f32 %v2874_v46, %v7192_v24  ;;  %v5488_v43 = vadd.f32 %v3100_v47, %v7197_v37 }
 0x1d6   : > { %3688 = vmatmul.mubr.bf16.gmra.mrb[84].mxu0 %v6970_v17  ;;  %3914 = vmatmul.mubr.bf16.gmra.mrb[84].mxu1 %v6970_v17 }
 0x1d7   : > { %4657 = vst [vmem:[%s7213_s22 + $0xc0] sm:$0xff] %v5373_v51  ;;  %4658 = vst [vmem:[%s7213_s22 + $0xc8] sm:$0xff] %v5374_v49  ;;  %v5379_v56 = vpack.c.bf16 %v5456_v55, %v5455_v10  ;;  %v5380_v8 = vpack.c.bf16 %v5488_v43, %v5487_v45  ;;  %3739 = vmatpush1.bf16.msra.mxu0 %v6460_v39  ;;  %3965 = vmatpush1.bf16.msra.mxu1 %v6463_v44  ;;  %v6483_v39 = vld [vmem:[#allocation5 + $0xb0c] ss:$48 sps:$4 sm:$0xff]   ;;  %v6481_v51 = vld [vmem:[#allocation5 + $0xb08] ss:$48 sps:$4 sm:$0xff]  }
 0x1d8   : > { %3740 = vmatprep.subr.bf16.mxu0 %v6468_v48  ;;  %3966 = vmatprep.subr.bf16.mxu1 %v6471_v59  ;;  %v6478_v59 = vld [vmem:[#allocation5 + $0xb00] ss:$48 sps:$4 sm:$0xff]   ;;  %v6486_v49 = vld [vmem:[#allocation5 + $0xb64] ss:$48 sps:$4 sm:$0xff]   ;;  %v6489_v55 = vld [vmem:[#allocation5 + $0xb6c] ss:$48 sps:$4 sm:$0xff]  }
 0x1d9   : > { %4663 = vst [vmem:[%s7213_s22 + $0xf0] sm:$0xff] %v5379_v56  ;;  %4664 = vst [vmem:[%s7213_s22 + $0xf8] sm:$0xff] %v5380_v8  ;;  %v2878_v2 = vpop.f32.mrb[12].mxu0  ;;  %v3104_v6 = vpop.f32.mrb[12].mxu1  ;;  %3697 = vmatprep.mubr.bf16.mxu0 %v6974_v25  ;;  %3923 = vmatprep.mubr.bf16.mxu1 %v6974_v25 }
 0x1da   : > { %v5457_v17 = vadd.f32 %v2878_v2, %v7181_v28  ;;  %v5489_v9 = vadd.f32 %v3104_v6, %v7186_v21  ;;  %v2880_v16 = vpop.f32.mrb[13].mxu0  ;;  %v3106_v18 = vpop.f32.mrb[13].mxu1 }
 0x1db   : > { %v5458_v26 = vadd.f32 %v2880_v16, %v7192_v24  ;;  %v5490_v27 = vadd.f32 %v3106_v18, %v7197_v37  ;;  %v2882_v0 = vpop.f32.mrb[14].mxu0  ;;  %v3108_v29 = vpop.f32.mrb[14].mxu1  ;;  %3741 = vmatpush1.bf16.msra.mxu0 %v6466_v57  ;;  %3967 = vmatpush1.bf16.msra.mxu1 %v6469_v61 }
 0x1dc   : > { %v5459_v25 = vadd.f32 %v2882_v0, %v7181_v28  ;;  %v5491_v33 = vadd.f32 %v3108_v29, %v7186_v21  ;;  %v2884_v35 = vpop.f32.mrb[15].mxu0  ;;  %v3110_v36 = vpop.f32.mrb[15].mxu1  ;;  %3742 = vmatprep.subr.bf16.mxu0 %v6474_v63  ;;  %3968 = vmatprep.subr.bf16.mxu1 %v6477_v15  ;;  %v6495_v0 = vld [vmem:[#allocation5 + $0xbcc] ss:$48 sps:$4 sm:$0xff]  }
 0x1dd   : > { %v5385_v44 = vpack.c.bf16 %v5458_v26, %v5457_v17  ;;  %v5386_v10 = vpack.c.bf16 %v5490_v27, %v5489_v9  ;;  %v5460_v45 = vadd.f32 %v2884_v35, %v7192_v24  ;;  %v5492_v46 = vadd.f32 %v3110_v36, %v7197_v37  ;;  %v6484_v17 = vld [vmem:[#allocation5 + $0xb60] ss:$48 sps:$4 sm:$0xff]   ;;  %v6487_v9 = vld [vmem:[#allocation5 + $0xb68] ss:$48 sps:$4 sm:$0xff]   ;;  %v6492_v27 = vld [vmem:[#allocation5 + $0xbc4] ss:$48 sps:$4 sm:$0xff]  }
 0x1de   : > { %3698 = vmatmul.mubr.bf16.gmra.mrb[88].mxu0 %v6982_v34  ;;  %3924 = vmatmul.mubr.bf16.gmra.mrb[88].mxu1 %v6982_v34  ;;  %v6490_v36 = vld [vmem:[#allocation5 + $0xbc0] ss:$48 sps:$4 sm:$0xff]  }
 0x1df   : > { %4669 = vst [vmem:[%s7213_s22 + $0x120] sm:$0xff] %v5385_v44  ;;  %4670 = vst [vmem:[%s7213_s22 + $0x128] sm:$0xff] %v5386_v10  ;;  %v5391_v47 = vpack.c.bf16 %v5460_v45, %v5459_v25  ;;  %v5392_v48 = vpack.c.bf16 %v5492_v46, %v5491_v33  ;;  %3743 = vmatpush1.bf16.msra.mxu0 %v6472_v50  ;;  %3969 = vmatpush1.bf16.msra.mxu1 %v6475_v31 }
 0x1e0   : > { %3744 = vmatprep.subr.bf16.mxu0 %v6480_v38  ;;  %3970 = vmatprep.subr.bf16.mxu1 %v6483_v39  ;;  %v6493_v38 = vld [vmem:[#allocation5 + $0xbc8] ss:$48 sps:$4 sm:$0xff]  }
 0x1e1   : > { %4675 = vst [vmem:[%s7213_s22 + $0x150] sm:$0xff] %v5391_v47  ;;  %4676 = vst [vmem:[%s7213_s22 + $0x158] sm:$0xff] %v5392_v48  ;;  %v2888_v43 = vpop.f32.mrb[16].mxu0  ;;  %v3114_v56 = vpop.f32.mrb[16].mxu1  ;;  %3707 = vmatprep.mubr.bf16.mxu0 %v6986_v40  ;;  %3933 = vmatprep.mubr.bf16.mxu1 %v6986_v40 }
 0x1e2   : > { %v5461_v34 = vadd.f32 %v2888_v43, %v7181_v28  ;;  %v5493_v8 = vadd.f32 %v3114_v56, %v7186_v21  ;;  %v2890_v57 = vpop.f32.mrb[17].mxu0  ;;  %v3116_v61 = vpop.f32.mrb[17].mxu1 }
 0x1e3   : > { %v5462_v63 = vadd.f32 %v2890_v57, %v7192_v24  ;;  %v5494_v15 = vadd.f32 %v3116_v61, %v7197_v37  ;;  %v2892_v2 = vpop.f32.mrb[18].mxu0  ;;  %v3118_v6 = vpop.f32.mrb[18].mxu1  ;;  %3745 = vmatpush1.bf16.msra.mxu0 %v6478_v59  ;;  %3971 = vmatpush1.bf16.msra.mxu1 %v6481_v51 }
 0x1e4   : > { %v5463_v40 = vadd.f32 %v2892_v2, %v7181_v28  ;;  %v5495_v16 = vadd.f32 %v3118_v6, %v7186_v21  ;;  %v2894_v18 = vpop.f32.mrb[19].mxu0  ;;  %v3120_v26 = vpop.f32.mrb[19].mxu1  ;;  %3746 = vmatprep.subr.bf16.mxu0 %v6486_v49  ;;  %3972 = vmatprep.subr.bf16.mxu1 %v6489_v55 }
 0x1e5   : > { %v5397_v29 = vpack.c.bf16 %v5462_v63, %v5461_v34  ;;  %v5398_v50 = vpack.c.bf16 %v5494_v15, %v5493_v8  ;;  %v5464_v31 = vadd.f32 %v2894_v18, %v7192_v24  ;;  %v5496_v25 = vadd.f32 %v3120_v26, %v7197_v37 }
 0x1e6   : > { %3708 = vmatmul.mubr.bf16.gmra.mrb[92].mxu0 %v6994_v52  ;;  %3934 = vmatmul.mubr.bf16.gmra.mrb[92].mxu1 %v6994_v52 }
 0x1e7   : > { %4681 = vst [vmem:[%s7213_s22 + $0x180] sm:$0xff] %v5397_v29  ;;  %4682 = vst [vmem:[%s7213_s22 + $0x188] sm:$0xff] %v5398_v50  ;;  %v5403_v33 = vpack.c.bf16 %v5464_v31, %v5463_v40  ;;  %v5404_v35 = vpack.c.bf16 %v5496_v25, %v5495_v16  ;;  %3747 = vmatpush1.bf16.msra.mxu0 %v6484_v17  ;;  %3973 = vmatpush1.bf16.msra.mxu1 %v6487_v9 }
 0x1e8   : > { %3748 = vmatprep.subr.bf16.mxu0 %v6492_v27  ;;  %3974 = vmatprep.subr.bf16.mxu1 %v6495_v0 }
 0x1e9   : > { %4687 = vst [vmem:[%s7213_s22 + $0x1b0] sm:$0xff] %v5403_v33  ;;  %4688 = vst [vmem:[%s7213_s22 + $0x1b8] sm:$0xff] %v5404_v35  ;;  %v2898_v39 = vpop.f32.mrb[20].mxu0  ;;  %v3124_v44 = vpop.f32.mrb[20].mxu1  ;;  %3750 = vmatprep.mubr.bf16.mxu0 %v6998_v58  ;;  %3976 = vmatprep.mubr.bf16.mxu1 %v6998_v58 }
 0x1ea   : > { %v5465_v52 = vadd.f32 %v2898_v39, %v7181_v28  ;;  %v5497_v10 = vadd.f32 %v3124_v44, %v7186_v21  ;;  %v2900_v45 = vpop.f32.mrb[21].mxu0  ;;  %v3126_v46 = vpop.f32.mrb[21].mxu1 }
 0x1eb   : > { %v5466_v47 = vadd.f32 %v2900_v45, %v7192_v24  ;;  %v5498_v48 = vadd.f32 %v3126_v46, %v7197_v37  ;;  %v2902_v59 = vpop.f32.mrb[22].mxu0  ;;  %v3128_v51 = vpop.f32.mrb[22].mxu1  ;;  %3749 = vmatpush1.bf16.msra.mxu0 %v6490_v36  ;;  %3975 = vmatpush1.bf16.msra.mxu1 %v6493_v38 }
 0x1ec   : > { %v5467_v49 = vadd.f32 %v2902_v59, %v7181_v28  ;;  %v5499_v58 = vadd.f32 %v3128_v51, %v7186_v21  ;;  %v2904_v55 = vpop.f32.mrb[23].mxu0  ;;  %v3130_v43 = vpop.f32.mrb[23].mxu1 }
 0x1ed   : > { %v5409_v56 = vpack.c.bf16 %v5466_v47, %v5465_v52  ;;  %v5410_v34 = vpack.c.bf16 %v5498_v48, %v5497_v10  ;;  %v5468_v8 = vadd.f32 %v2904_v55, %v7192_v24  ;;  %v5500_v57 = vadd.f32 %v3130_v43, %v7197_v37 }
 0x1ee   : > { %3751 = vmatmul.mubr.bf16.vlgmr.msra.gmra.mrb[64].mxu0 %v7006_v3  ;;  %3977 = vmatmul.mubr.bf16.vlgmr.msra.gmra.mrb[64].mxu1 %v7006_v3 }
 0x1ef   : > { %4693 = vst [vmem:[%s7213_s22 + $0x1e0] sm:$0xff] %v5409_v56  ;;  %4694 = vst [vmem:[%s7213_s22 + $0x1e8] sm:$0xff] %v5410_v34  ;;  %v5415_v61 = vpack.c.bf16 %v5468_v8, %v5467_v49  ;;  %v5416_v63 = vpack.c.bf16 %v5500_v57, %v5499_v58  ;;  %3760 = vmatprep.mubr.bf16.mxu0 %v7010_v13  ;;  %3986 = vmatprep.mubr.bf16.mxu1 %v7010_v13 }
 0x1f1   : > { %4699 = vst [vmem:[%s7213_s22 + $0x210] sm:$0xff] %v5415_v61  ;;  %4700 = vst [vmem:[%s7213_s22 + $0x218] sm:$0xff] %v5416_v63  ;;  %v2908_v15 = vpop.f32.mrb[24].mxu0  ;;  %v3134_v2 = vpop.f32.mrb[24].mxu1 }
 0x1f2   : > { %v5469_v6 = vadd.f32 %v2908_v15, %v7181_v28  ;;  %v5501_v17 = vadd.f32 %v3134_v2, %v7186_v21  ;;  %v2910_v9 = vpop.f32.mrb[25].mxu0  ;;  %v3136_v40 = vpop.f32.mrb[25].mxu1 }
 0x1f3   : > { %v5470_v3 = vadd.f32 %v2910_v9, %v7192_v24  ;;  %v5502_v16 = vadd.f32 %v3136_v40, %v7197_v37  ;;  %v2912_v18 = vpop.f32.mrb[26].mxu0  ;;  %v3138_v26 = vpop.f32.mrb[26].mxu1 }
 0x1f4   : > { %v5471_v13 = vadd.f32 %v2912_v18, %v7181_v28  ;;  %v5503_v27 = vadd.f32 %v3138_v26, %v7186_v21  ;;  %v2914_v0 = vpop.f32.mrb[27].mxu0  ;;  %v3140_v29 = vpop.f32.mrb[27].mxu1 }
 0x1f5   : > { %v5421_v50 = vpack.c.bf16 %v5470_v3, %v5469_v6  ;;  %v5422_v31 = vpack.c.bf16 %v5502_v16, %v5501_v17  ;;  %v5472_v25 = vadd.f32 %v2914_v0, %v7192_v24  ;;  %v5504_v33 = vadd.f32 %v3140_v29, %v7197_v37 }
 0x1f6   : > { %3761 = vmatmul.mubr.bf16.gmra.mrb[68].mxu0 %v7018_v20  ;;  %3987 = vmatmul.mubr.bf16.gmra.mrb[68].mxu1 %v7018_v20 }
 0x1f7   : > { %4705 = vst [vmem:[%s7213_s22 + $0x240] sm:$0xff] %v5421_v50  ;;  %4706 = vst [vmem:[%s7213_s22 + $0x248] sm:$0xff] %v5422_v31  ;;  %v5427_v35 = vpack.c.bf16 %v5472_v25, %v5471_v13  ;;  %v5428_v36 = vpack.c.bf16 %v5504_v33, %v5503_v27  ;;  %3770 = vmatprep.mubr.bf16.mxu0 %v7022_v32  ;;  %3996 = vmatprep.mubr.bf16.mxu1 %v7022_v32 }
 0x1f9   : > { %4711 = vst [vmem:[%s7213_s22 + $0x270] sm:$0xff] %v5427_v35  ;;  %4712 = vst [vmem:[%s7213_s22 + $0x278] sm:$0xff] %v5428_v36  ;;  %v2918_v38 = vpop.f32.mrb[28].mxu0  ;;  %v3144_v39 = vpop.f32.mrb[28].mxu1 }
 0x1fa   : > { %v5473_v44 = vadd.f32 %v2918_v38, %v7181_v28  ;;  %v5505_v52 = vadd.f32 %v3144_v39, %v7186_v21  ;;  %v2920_v10 = vpop.f32.mrb[29].mxu0  ;;  %v3146_v45 = vpop.f32.mrb[29].mxu1 }
 0x1fb   : > { %v5474_v20 = vadd.f32 %v2920_v10, %v7192_v24  ;;  %v5506_v46 = vadd.f32 %v3146_v45, %v7197_v37  ;;  %v2922_v47 = vpop.f32.mrb[30].mxu0  ;;  %v3148_v48 = vpop.f32.mrb[30].mxu1 }
 0x1fc   : > { %v5475_v32 = vadd.f32 %v2922_v47, %v7181_v28  ;;  %v5507_v59 = vadd.f32 %v3148_v48, %v7186_v21  ;;  %v2924_v51 = vpop.f32.mrb[31].mxu0  ;;  %v3150_v49 = vpop.f32.mrb[31].mxu1 }
 0x1fd   : > { %v5433_v58 = vpack.c.bf16 %v5474_v20, %v5473_v44  ;;  %v5434_v55 = vpack.c.bf16 %v5506_v46, %v5505_v52  ;;  %v5476_v43 = vadd.f32 %v2924_v51, %v7192_v24  ;;  %v5508_v56 = vadd.f32 %v3150_v49, %v7197_v37 }
 0x1fe   : > { %3771 = vmatmul.mubr.bf16.gmra.mrb[72].mxu0 %v7030_v41  ;;  %3997 = vmatmul.mubr.bf16.gmra.mrb[72].mxu1 %v7030_v41  ;;  %v739_v41 = vsub.s32 4, %v7166_v60 }
 0x1ff   : > { %4717 = vst [vmem:[%s7213_s22 + $0x2a0] sm:$0xff] %v5433_v58  ;;  %4718 = vst [vmem:[%s7213_s22 + $0x2a8] sm:$0xff] %v5434_v55  ;;  %v5439_v34 = vpack.c.bf16 %v5476_v43, %v5475_v32  ;;  %v5440_v28 = vpack.c.bf16 %v5508_v56, %v5507_v59  ;;  %3780 = vmatprep.mubr.bf16.mxu0 %v7034_v53  ;;  %4006 = vmatprep.mubr.bf16.mxu1 %v7034_v53  ;;  %v747_v53 = vsub.s32 6, %v7166_v60 }
 0x201   : > { %4723 = vst [vmem:[%s7213_s22 + $0x2d0] sm:$0xff] %v5439_v34  ;;  %4724 = vst [vmem:[%s7213_s22 + $0x2d8] sm:$0xff] %v5440_v28 }
 0x206   : > { %3781 = vmatmul.mubr.bf16.gmra.mrb[76].mxu0 %v7042_v62  ;;  %4007 = vmatmul.mubr.bf16.gmra.mrb[76].mxu1 %v7042_v62  ;;  %v743_v62 = vsub.s32 5, %v7166_v60 }
 0x207   : > { %3790 = vmatprep.mubr.bf16.mxu0 %v7046_v7  ;;  %4016 = vmatprep.mubr.bf16.mxu1 %v7046_v7  ;;  %v751_v7 = vsub.s32 7, %v7166_v60 }
 0x20e   : > { %3791 = vmatmul.mubr.bf16.gmra.mrb[80].mxu0 %v7054_v19  ;;  %4017 = vmatmul.mubr.bf16.gmra.mrb[80].mxu1 %v7054_v19  ;;  %v7356_v19 = vrot.slane %v7173_v11, %v739_v41 }
 0x20f   : > { %3800 = vmatprep.mubr.bf16.mxu0 %v7058_v30  ;;  %4026 = vmatprep.mubr.bf16.mxu1 %v7058_v30  ;;  %v7359_v30 = vrot.slane %v7173_v11, %v747_v53 }
 0x216   : > { %3801 = vmatmul.mubr.bf16.gmra.mrb[84].mxu0 %v7066_v42  ;;  %4027 = vmatmul.mubr.bf16.gmra.mrb[84].mxu1 %v7066_v42  ;;  %v7362_v42 = vrot.slane %v7173_v11, %v743_v62 }
 0x217   : > { %3810 = vmatprep.mubr.bf16.mxu0 %v7070_v54  ;;  %4036 = vmatprep.mubr.bf16.mxu1 %v7070_v54  ;;  %v7365_v54 = vrot.slane %v7173_v11, %v751_v7 }
 0x21e   : > { %3811 = vmatmul.mubr.bf16.gmra.mrb[88].mxu0 %v7078_v1  ;;  %4037 = vmatmul.mubr.bf16.gmra.mrb[88].mxu1 %v7078_v1 }
 0x21f   : > { %3820 = vmatprep.mubr.bf16.mxu0 %v7082_v12  ;;  %4046 = vmatprep.mubr.bf16.mxu1 %v7082_v12 }
 0x226   : > { %3821 = vmatmul.mubr.bf16.gmra.mrb[92].mxu0 %v7090_v22  ;;  %4047 = vmatmul.mubr.bf16.gmra.mrb[92].mxu1 %v7090_v22 }
 0x241   : > { %v3300_v1 = vpop.f32.mrb[32].mxu0  ;;  %v3526_v12 = vpop.f32.mrb[32].mxu1 }
 0x242   : > { %v5509_v22 = vadd.f32 %v3300_v1, %v7356_v19  ;;  %v5541_v21 = vadd.f32 %v3526_v12, %v7359_v30  ;;  %v3302_v24 = vpop.f32.mrb[33].mxu0  ;;  %v3528_v37 = vpop.f32.mrb[33].mxu1 }
 0x243   : > { %v5510_v8 = vadd.f32 %v3302_v24, %v7362_v42  ;;  %v5542_v57 = vadd.f32 %v3528_v37, %v7365_v54  ;;  %v3304_v61 = vpop.f32.mrb[34].mxu0  ;;  %v3530_v63 = vpop.f32.mrb[34].mxu1 }
 0x244   : > { %v5511_v11 = vadd.f32 %v3304_v61, %v7356_v19  ;;  %v5543_v15 = vadd.f32 %v3530_v63, %v7359_v30  ;;  %v3306_v2 = vpop.f32.mrb[35].mxu0  ;;  %v3532_v6 = vpop.f32.mrb[35].mxu1 }
 0x245   : > { %v5351_v17 = vpack.c.bf16 %v5510_v8, %v5509_v22  ;;  %v5352_v9 = vpack.c.bf16 %v5542_v57, %v5541_v21  ;;  %v5512_v40 = vadd.f32 %v3306_v2, %v7362_v42  ;;  %v5544_v3 = vadd.f32 %v3532_v6, %v7365_v54 }
 0x247   : > { %4635 = vst [vmem:[%s7213_s22 + $0x10] sm:$0xff] %v5351_v17  ;;  %4636 = vst [vmem:[%s7213_s22 + $0x18] sm:$0xff] %v5352_v9  ;;  %v5357_v16 = vpack.c.bf16 %v5512_v40, %v5511_v11  ;;  %v5358_v18 = vpack.c.bf16 %v5544_v3, %v5543_v15 }
 0x249   : > { %4641 = vst [vmem:[%s7213_s22 + $0x40] sm:$0xff] %v5357_v16  ;;  %4642 = vst [vmem:[%s7213_s22 + $0x48] sm:$0xff] %v5358_v18  ;;  %v3310_v26 = vpop.f32.mrb[36].mxu0  ;;  %v3536_v13 = vpop.f32.mrb[36].mxu1 }
 0x24a   : > { %v5513_v27 = vadd.f32 %v3310_v26, %v7356_v19  ;;  %v5545_v0 = vadd.f32 %v3536_v13, %v7359_v30  ;;  %v3312_v29 = vpop.f32.mrb[37].mxu0  ;;  %v3538_v50 = vpop.f32.mrb[37].mxu1 }
 0x24b   : > { %v5514_v31 = vadd.f32 %v3312_v29, %v7362_v42  ;;  %v5546_v25 = vadd.f32 %v3538_v50, %v7365_v54  ;;  %v3314_v33 = vpop.f32.mrb[38].mxu0  ;;  %v3540_v35 = vpop.f32.mrb[38].mxu1 }
 0x24c   : > { %v5515_v36 = vadd.f32 %v3314_v33, %v7356_v19  ;;  %v5547_v38 = vadd.f32 %v3540_v35, %v7359_v30  ;;  %v3316_v39 = vpop.f32.mrb[39].mxu0  ;;  %v3542_v44 = vpop.f32.mrb[39].mxu1 }
 0x24d   : > { %v5363_v52 = vpack.c.bf16 %v5514_v31, %v5513_v27  ;;  %v5364_v10 = vpack.c.bf16 %v5546_v25, %v5545_v0  ;;  %v5516_v45 = vadd.f32 %v3316_v39, %v7362_v42  ;;  %v5548_v20 = vadd.f32 %v3542_v44, %v7365_v54 }
 0x24f   : > { %4647 = vst [vmem:[%s7213_s22 + $0x70] sm:$0xff] %v5363_v52  ;;  %4648 = vst [vmem:[%s7213_s22 + $0x78] sm:$0xff] %v5364_v10  ;;  %v5369_v46 = vpack.c.bf16 %v5516_v45, %v5515_v36  ;;  %v5370_v47 = vpack.c.bf16 %v5548_v20, %v5547_v38 }
 0x251   : > { %4653 = vst [vmem:[%s7213_s22 + $0xa0] sm:$0xff] %v5369_v46  ;;  %4654 = vst [vmem:[%s7213_s22 + $0xa8] sm:$0xff] %v5370_v47  ;;  %v3320_v48 = vpop.f32.mrb[40].mxu0  ;;  %v3546_v32 = vpop.f32.mrb[40].mxu1 }
 0x252   : > { %v5517_v59 = vadd.f32 %v3320_v48, %v7356_v19  ;;  %v5549_v51 = vadd.f32 %v3546_v32, %v7359_v30  ;;  %v3322_v49 = vpop.f32.mrb[41].mxu0  ;;  %v3548_v58 = vpop.f32.mrb[41].mxu1 }
 0x253   : > { %v5518_v55 = vadd.f32 %v3322_v49, %v7362_v42  ;;  %v5550_v43 = vadd.f32 %v3548_v58, %v7365_v54  ;;  %v3324_v56 = vpop.f32.mrb[42].mxu0  ;;  %v3550_v34 = vpop.f32.mrb[42].mxu1 }
 0x254   : > { %v5519_v28 = vadd.f32 %v3324_v56, %v7356_v19  ;;  %v5551_v41 = vadd.f32 %v3550_v34, %v7359_v30  ;;  %v3326_v53 = vpop.f32.mrb[43].mxu0  ;;  %v3552_v62 = vpop.f32.mrb[43].mxu1 }
 0x255   : > { %v5375_v7 = vpack.c.bf16 %v5518_v55, %v5517_v59  ;;  %v5376_v1 = vpack.c.bf16 %v5550_v43, %v5549_v51  ;;  %v5520_v12 = vadd.f32 %v3326_v53, %v7362_v42  ;;  %v5552_v22 = vadd.f32 %v3552_v62, %v7365_v54 }
 0x257   : > { %4659 = vst [vmem:[%s7213_s22 + $0xd0] sm:$0xff] %v5375_v7  ;;  %4660 = vst [vmem:[%s7213_s22 + $0xd8] sm:$0xff] %v5376_v1  ;;  %v5381_v21 = vpack.c.bf16 %v5520_v12, %v5519_v28  ;;  %v5382_v24 = vpack.c.bf16 %v5552_v22, %v5551_v41 }
 0x259   : > { %4665 = vst [vmem:[%s7213_s22 + $0x100] sm:$0xff] %v5381_v21  ;;  %4666 = vst [vmem:[%s7213_s22 + $0x108] sm:$0xff] %v5382_v24  ;;  %v3330_v37 = vpop.f32.mrb[44].mxu0  ;;  %v3556_v8 = vpop.f32.mrb[44].mxu1 }
 0x25a   : > { %v5521_v57 = vadd.f32 %v3330_v37, %v7356_v19  ;;  %v5553_v61 = vadd.f32 %v3556_v8, %v7359_v30  ;;  %v3332_v63 = vpop.f32.mrb[45].mxu0  ;;  %v3558_v11 = vpop.f32.mrb[45].mxu1 }
 0x25b   : > { %v5522_v15 = vadd.f32 %v3332_v63, %v7362_v42  ;;  %v5554_v2 = vadd.f32 %v3558_v11, %v7365_v54  ;;  %v3334_v6 = vpop.f32.mrb[46].mxu0  ;;  %v3560_v17 = vpop.f32.mrb[46].mxu1 }
 0x25c   : > { %v5523_v9 = vadd.f32 %v3334_v6, %v7356_v19  ;;  %v5555_v40 = vadd.f32 %v3560_v17, %v7359_v30  ;;  %v3336_v3 = vpop.f32.mrb[47].mxu0  ;;  %v3562_v16 = vpop.f32.mrb[47].mxu1 }
 0x25d   : > { %v5387_v18 = vpack.c.bf16 %v5522_v15, %v5521_v57  ;;  %v5388_v26 = vpack.c.bf16 %v5554_v2, %v5553_v61  ;;  %v5524_v13 = vadd.f32 %v3336_v3, %v7362_v42  ;;  %v5556_v27 = vadd.f32 %v3562_v16, %v7365_v54 }
 0x25f   : > { %4671 = vst [vmem:[%s7213_s22 + $0x130] sm:$0xff] %v5387_v18  ;;  %4672 = vst [vmem:[%s7213_s22 + $0x138] sm:$0xff] %v5388_v26  ;;  %v5393_v0 = vpack.c.bf16 %v5524_v13, %v5523_v9  ;;  %v5394_v29 = vpack.c.bf16 %v5556_v27, %v5555_v40 }
 0x261   : > { %4677 = vst [vmem:[%s7213_s22 + $0x160] sm:$0xff] %v5393_v0  ;;  %4678 = vst [vmem:[%s7213_s22 + $0x168] sm:$0xff] %v5394_v29  ;;  %v3340_v50 = vpop.f32.mrb[48].mxu0  ;;  %v3566_v31 = vpop.f32.mrb[48].mxu1 }
 0x262   : > { %v5525_v25 = vadd.f32 %v3340_v50, %v7356_v19  ;;  %v5557_v33 = vadd.f32 %v3566_v31, %v7359_v30  ;;  %v3342_v35 = vpop.f32.mrb[49].mxu0  ;;  %v3568_v36 = vpop.f32.mrb[49].mxu1 }
 0x263   : > { %v5526_v38 = vadd.f32 %v3342_v35, %v7362_v42  ;;  %v5558_v39 = vadd.f32 %v3568_v36, %v7365_v54  ;;  %v3344_v44 = vpop.f32.mrb[50].mxu0  ;;  %v3570_v52 = vpop.f32.mrb[50].mxu1 }
 0x264   : > { %v5527_v10 = vadd.f32 %v3344_v44, %v7356_v19  ;;  %v5559_v45 = vadd.f32 %v3570_v52, %v7359_v30  ;;  %v3346_v20 = vpop.f32.mrb[51].mxu0  ;;  %v3572_v46 = vpop.f32.mrb[51].mxu1 }
 0x265   : > { %v5399_v47 = vpack.c.bf16 %v5526_v38, %v5525_v25  ;;  %v5400_v48 = vpack.c.bf16 %v5558_v39, %v5557_v33  ;;  %v5528_v32 = vadd.f32 %v3346_v20, %v7362_v42  ;;  %v5560_v59 = vadd.f32 %v3572_v46, %v7365_v54 }
 0x267   : > { %4683 = vst [vmem:[%s7213_s22 + $0x190] sm:$0xff] %v5399_v47  ;;  %4684 = vst [vmem:[%s7213_s22 + $0x198] sm:$0xff] %v5400_v48  ;;  %v5405_v51 = vpack.c.bf16 %v5528_v32, %v5527_v10  ;;  %v5406_v49 = vpack.c.bf16 %v5560_v59, %v5559_v45 }
 0x269   : > { %4689 = vst [vmem:[%s7213_s22 + $0x1c0] sm:$0xff] %v5405_v51  ;;  %4690 = vst [vmem:[%s7213_s22 + $0x1c8] sm:$0xff] %v5406_v49  ;;  %v3350_v58 = vpop.f32.mrb[52].mxu0  ;;  %v3576_v55 = vpop.f32.mrb[52].mxu1 }
 0x26a   : > { %v5529_v43 = vadd.f32 %v3350_v58, %v7356_v19  ;;  %v5561_v56 = vadd.f32 %v3576_v55, %v7359_v30  ;;  %v3352_v34 = vpop.f32.mrb[53].mxu0  ;;  %v3578_v28 = vpop.f32.mrb[53].mxu1 }
 0x26b   : > { %v5530_v41 = vadd.f32 %v3352_v34, %v7362_v42  ;;  %v5562_v53 = vadd.f32 %v3578_v28, %v7365_v54  ;;  %v3354_v62 = vpop.f32.mrb[54].mxu0  ;;  %v3580_v7 = vpop.f32.mrb[54].mxu1  ;;  %v718_v28 = vld [vmem:[#allocation7 + $0x8] sm:$0xf] }
 0x26c   : > { %v5531_v1 = vadd.f32 %v3354_v62, %v7356_v19  ;;  %v5563_v12 = vadd.f32 %v3580_v7, %v7359_v30  ;;  %v3356_v22 = vpop.f32.mrb[55].mxu0  ;;  %v3582_v21 = vpop.f32.mrb[55].mxu1 }
 0x26d   : > { %v5411_v24 = vpack.c.bf16 %v5530_v41, %v5529_v43  ;;  %v5412_v37 = vpack.c.bf16 %v5562_v53, %v5561_v56  ;;  %v5532_v8 = vadd.f32 %v3356_v22, %v7362_v42  ;;  %v5564_v57 = vadd.f32 %v3582_v21, %v7365_v54 }
 0x26f   : > { %4695 = vst [vmem:[%s7213_s22 + $0x1f0] sm:$0xff] %v5411_v24  ;;  %4696 = vst [vmem:[%s7213_s22 + $0x1f8] sm:$0xff] %v5412_v37  ;;  %v5417_v61 = vpack.c.bf16 %v5532_v8, %v5531_v1  ;;  %v5418_v63 = vpack.c.bf16 %v5564_v57, %v5563_v12 }
 0x271   : > { %4701 = vst [vmem:[%s7213_s22 + $0x220] sm:$0xff] %v5417_v61  ;;  %4702 = vst [vmem:[%s7213_s22 + $0x228] sm:$0xff] %v5418_v63  ;;  %v3360_v11 = vpop.f32.mrb[56].mxu0  ;;  %v3586_v15 = vpop.f32.mrb[56].mxu1 }
 0x272   : > { %v5533_v2 = vadd.f32 %v3360_v11, %v7356_v19  ;;  %v5565_v6 = vadd.f32 %v3586_v15, %v7359_v30  ;;  %v3362_v17 = vpop.f32.mrb[57].mxu0  ;;  %v3588_v9 = vpop.f32.mrb[57].mxu1 }
 0x273   : > { %v5534_v40 = vadd.f32 %v3362_v17, %v7362_v42  ;;  %v5566_v3 = vadd.f32 %v3588_v9, %v7365_v54  ;;  %v3364_v16 = vpop.f32.mrb[58].mxu0  ;;  %v3590_v18 = vpop.f32.mrb[58].mxu1 }
 0x274   : > { %v5535_v26 = vadd.f32 %v3364_v16, %v7356_v19  ;;  %v5567_v13 = vadd.f32 %v3590_v18, %v7359_v30  ;;  %v3366_v27 = vpop.f32.mrb[59].mxu0  ;;  %v3592_v0 = vpop.f32.mrb[59].mxu1 }
 0x275   : > { %v5423_v29 = vpack.c.bf16 %v5534_v40, %v5533_v2  ;;  %v5424_v50 = vpack.c.bf16 %v5566_v3, %v5565_v6  ;;  %v5536_v31 = vadd.f32 %v3366_v27, %v7362_v42  ;;  %v5568_v25 = vadd.f32 %v3592_v0, %v7365_v54 }
 0x277   : > { %4707 = vst [vmem:[%s7213_s22 + $0x250] sm:$0xff] %v5423_v29  ;;  %4708 = vst [vmem:[%s7213_s22 + $0x258] sm:$0xff] %v5424_v50  ;;  %v5429_v33 = vpack.c.bf16 %v5536_v31, %v5535_v26  ;;  %v5430_v35 = vpack.c.bf16 %v5568_v25, %v5567_v13 }
 0x279   : > { %4713 = vst [vmem:[%s7213_s22 + $0x280] sm:$0xff] %v5429_v33  ;;  %4714 = vst [vmem:[%s7213_s22 + $0x288] sm:$0xff] %v5430_v35  ;;  %v3370_v36 = vpop.f32.mrb[60].mxu0  ;;  %v3596_v38 = vpop.f32.mrb[60].mxu1 }
 0x27a   : > { %v5537_v39 = vadd.f32 %v3370_v36, %v7356_v19  ;;  %v5569_v44 = vadd.f32 %v3596_v38, %v7359_v30  ;;  %v3372_v52 = vpop.f32.mrb[61].mxu0  ;;  %v3598_v10 = vpop.f32.mrb[61].mxu1 }
 0x27b   : > { %v5538_v45 = vadd.f32 %v3372_v52, %v7362_v42  ;;  %v5570_v20 = vadd.f32 %v3598_v10, %v7365_v54  ;;  %v3374_v46 = vpop.f32.mrb[62].mxu0  ;;  %v3600_v47 = vpop.f32.mrb[62].mxu1 }
 0x27c   : > { %v5539_v48 = vadd.f32 %v3374_v46, %v7356_v19  ;;  %v5571_v32 = vadd.f32 %v3600_v47, %v7359_v30  ;;  %v3376_v59 = vpop.f32.mrb[63].mxu0  ;;  %v3602_v51 = vpop.f32.mrb[63].mxu1  ;;  %v7465_v19 = vrot.slane %v718_v28, %v723_v4  ;;  %v7469_v30 = vrot.slane %v718_v28, %v731_v5 }
 0x27d   : > { %v5435_v49 = vpack.c.bf16 %v5538_v45, %v5537_v39  ;;  %v5436_v58 = vpack.c.bf16 %v5570_v20, %v5569_v44  ;;  %v5540_v55 = vadd.f32 %v3376_v59, %v7362_v42  ;;  %v5572_v43 = vadd.f32 %v3602_v51, %v7365_v54 }
 0x27e   : > { %v7473_v42 = vrot.slane %v718_v28, %v727_v23  ;;  %v7477_v54 = vrot.slane %v718_v28, %v735_v14 }
 0x27f   : > { %4719 = vst [vmem:[%s7213_s22 + $0x2b0] sm:$0xff] %v5435_v49  ;;  %4720 = vst [vmem:[%s7213_s22 + $0x2b8] sm:$0xff] %v5436_v58  ;;  %v5441_v56 = vpack.c.bf16 %v5540_v55, %v5539_v48  ;;  %v5442_v34 = vpack.c.bf16 %v5572_v43, %v5571_v32 }
 0x281   : > { %4725 = vst [vmem:[%s7213_s22 + $0x2e0] sm:$0xff] %v5441_v56  ;;  %4726 = vst [vmem:[%s7213_s22 + $0x2e8] sm:$0xff] %v5442_v34 }
 0x2c1   : > { %v3752_v41 = vpop.f32.mrb[64].mxu0  ;;  %v3978_v53 = vpop.f32.mrb[64].mxu1 }
 0x2c2   : > { %v5573_v62 = vadd.f32 %v3752_v41, %v7465_v19  ;;  %v5605_v4 = vadd.f32 %v3978_v53, %v7469_v30  ;;  %v3754_v7 = vpop.f32.mrb[65].mxu0  ;;  %v3980_v1 = vpop.f32.mrb[65].mxu1 }
 0x2c3   : > { %v5574_v5 = vadd.f32 %v3754_v7, %v7473_v42  ;;  %v5606_v23 = vadd.f32 %v3980_v1, %v7477_v54  ;;  %v3756_v12 = vpop.f32.mrb[66].mxu0  ;;  %v3982_v60 = vpop.f32.mrb[66].mxu1 }
 0x2c4   : > { %v5575_v14 = vadd.f32 %v3756_v12, %v7465_v19  ;;  %v5607_v22 = vadd.f32 %v3982_v60, %v7469_v30  ;;  %v3758_v21 = vpop.f32.mrb[67].mxu0  ;;  %v3984_v24 = vpop.f32.mrb[67].mxu1 }
 0x2c5   : > { %v5353_v37 = vpack.c.bf16 %v5574_v5, %v5573_v62  ;;  %v5354_v8 = vpack.c.bf16 %v5606_v23, %v5605_v4  ;;  %v5576_v57 = vadd.f32 %v3758_v21, %v7473_v42  ;;  %v5608_v61 = vadd.f32 %v3984_v24, %v7477_v54 }
 0x2c7   : > { %4637 = vst [vmem:[%s7213_s22 + $0x20] sm:$0xff] %v5353_v37  ;;  %4638 = vst [vmem:[%s7213_s22 + $0x28] sm:$0xff] %v5354_v8  ;;  %v5359_v63 = vpack.c.bf16 %v5576_v57, %v5575_v14  ;;  %v5360_v11 = vpack.c.bf16 %v5608_v61, %v5607_v22 }
 0x2c9   : > { %4643 = vst [vmem:[%s7213_s22 + $0x50] sm:$0xff] %v5359_v63  ;;  %4644 = vst [vmem:[%s7213_s22 + $0x58] sm:$0xff] %v5360_v11  ;;  %v3762_v15 = vpop.f32.mrb[68].mxu0  ;;  %v3988_v2 = vpop.f32.mrb[68].mxu1 }
 0x2ca   : > { %v5577_v6 = vadd.f32 %v3762_v15, %v7465_v19  ;;  %v5609_v17 = vadd.f32 %v3988_v2, %v7469_v30  ;;  %v3764_v9 = vpop.f32.mrb[69].mxu0  ;;  %v3990_v40 = vpop.f32.mrb[69].mxu1 }
 0x2cb   : > { %v5578_v3 = vadd.f32 %v3764_v9, %v7473_v42  ;;  %v5610_v16 = vadd.f32 %v3990_v40, %v7477_v54  ;;  %v3766_v18 = vpop.f32.mrb[70].mxu0  ;;  %v3992_v26 = vpop.f32.mrb[70].mxu1 }
 0x2cc   : > { %v5579_v13 = vadd.f32 %v3766_v18, %v7465_v19  ;;  %v5611_v27 = vadd.f32 %v3992_v26, %v7469_v30  ;;  %v3768_v0 = vpop.f32.mrb[71].mxu0  ;;  %v3994_v29 = vpop.f32.mrb[71].mxu1 }
 0x2cd   : > { %v5365_v50 = vpack.c.bf16 %v5578_v3, %v5577_v6  ;;  %v5366_v31 = vpack.c.bf16 %v5610_v16, %v5609_v17  ;;  %v5580_v25 = vadd.f32 %v3768_v0, %v7473_v42  ;;  %v5612_v33 = vadd.f32 %v3994_v29, %v7477_v54 }
 0x2cf   : > { %4649 = vst [vmem:[%s7213_s22 + $0x80] sm:$0xff] %v5365_v50  ;;  %4650 = vst [vmem:[%s7213_s22 + $0x88] sm:$0xff] %v5366_v31  ;;  %v5371_v35 = vpack.c.bf16 %v5580_v25, %v5579_v13  ;;  %v5372_v36 = vpack.c.bf16 %v5612_v33, %v5611_v27 }
 0x2d1   : > { %4655 = vst [vmem:[%s7213_s22 + $0xb0] sm:$0xff] %v5371_v35  ;;  %4656 = vst [vmem:[%s7213_s22 + $0xb8] sm:$0xff] %v5372_v36  ;;  %v3772_v38 = vpop.f32.mrb[72].mxu0  ;;  %v3998_v39 = vpop.f32.mrb[72].mxu1 }
 0x2d2   : > { %v5581_v44 = vadd.f32 %v3772_v38, %v7465_v19  ;;  %v5613_v52 = vadd.f32 %v3998_v39, %v7469_v30  ;;  %v3774_v10 = vpop.f32.mrb[73].mxu0  ;;  %v4000_v45 = vpop.f32.mrb[73].mxu1 }
 0x2d3   : > { %v5582_v20 = vadd.f32 %v3774_v10, %v7473_v42  ;;  %v5614_v46 = vadd.f32 %v4000_v45, %v7477_v54  ;;  %v3776_v47 = vpop.f32.mrb[74].mxu0  ;;  %v4002_v48 = vpop.f32.mrb[74].mxu1 }
 0x2d4   : > { %v5583_v32 = vadd.f32 %v3776_v47, %v7465_v19  ;;  %v5615_v59 = vadd.f32 %v4002_v48, %v7469_v30  ;;  %v3778_v51 = vpop.f32.mrb[75].mxu0  ;;  %v4004_v49 = vpop.f32.mrb[75].mxu1 }
 0x2d5   : > { %v5377_v58 = vpack.c.bf16 %v5582_v20, %v5581_v44  ;;  %v5378_v55 = vpack.c.bf16 %v5614_v46, %v5613_v52  ;;  %v5584_v43 = vadd.f32 %v3778_v51, %v7473_v42  ;;  %v5616_v56 = vadd.f32 %v4004_v49, %v7477_v54 }
 0x2d7   : > { %4661 = vst [vmem:[%s7213_s22 + $0xe0] sm:$0xff] %v5377_v58  ;;  %4662 = vst [vmem:[%s7213_s22 + $0xe8] sm:$0xff] %v5378_v55  ;;  %v5383_v34 = vpack.c.bf16 %v5584_v43, %v5583_v32  ;;  %v5384_v28 = vpack.c.bf16 %v5616_v56, %v5615_v59 }
 0x2d9   : > { %4667 = vst [vmem:[%s7213_s22 + $0x110] sm:$0xff] %v5383_v34  ;;  %4668 = vst [vmem:[%s7213_s22 + $0x118] sm:$0xff] %v5384_v28  ;;  %v3782_v41 = vpop.f32.mrb[76].mxu0  ;;  %v4008_v53 = vpop.f32.mrb[76].mxu1 }
 0x2da   : > { %v5585_v62 = vadd.f32 %v3782_v41, %v7465_v19  ;;  %v5617_v4 = vadd.f32 %v4008_v53, %v7469_v30  ;;  %v3784_v7 = vpop.f32.mrb[77].mxu0  ;;  %v4010_v1 = vpop.f32.mrb[77].mxu1 }
 0x2db   : > { %v5586_v5 = vadd.f32 %v3784_v7, %v7473_v42  ;;  %v5618_v23 = vadd.f32 %v4010_v1, %v7477_v54  ;;  %v3786_v12 = vpop.f32.mrb[78].mxu0  ;;  %v4012_v60 = vpop.f32.mrb[78].mxu1 }
 0x2dc   : > { %v5587_v14 = vadd.f32 %v3786_v12, %v7465_v19  ;;  %v5619_v22 = vadd.f32 %v4012_v60, %v7469_v30  ;;  %v3788_v21 = vpop.f32.mrb[79].mxu0  ;;  %v4014_v24 = vpop.f32.mrb[79].mxu1 }
 0x2dd   : > { %v5389_v37 = vpack.c.bf16 %v5586_v5, %v5585_v62  ;;  %v5390_v8 = vpack.c.bf16 %v5618_v23, %v5617_v4  ;;  %v5588_v57 = vadd.f32 %v3788_v21, %v7473_v42  ;;  %v5620_v61 = vadd.f32 %v4014_v24, %v7477_v54 }
 0x2df   : > { %4673 = vst [vmem:[%s7213_s22 + $0x140] sm:$0xff] %v5389_v37  ;;  %4674 = vst [vmem:[%s7213_s22 + $0x148] sm:$0xff] %v5390_v8  ;;  %v5395_v63 = vpack.c.bf16 %v5588_v57, %v5587_v14  ;;  %v5396_v11 = vpack.c.bf16 %v5620_v61, %v5619_v22 }
 0x2e1   : > { %4679 = vst [vmem:[%s7213_s22 + $0x170] sm:$0xff] %v5395_v63  ;;  %4680 = vst [vmem:[%s7213_s22 + $0x178] sm:$0xff] %v5396_v11  ;;  %v3792_v15 = vpop.f32.mrb[80].mxu0  ;;  %v4018_v2 = vpop.f32.mrb[80].mxu1 }
 0x2e2   : > { %v5589_v6 = vadd.f32 %v3792_v15, %v7465_v19  ;;  %v5621_v17 = vadd.f32 %v4018_v2, %v7469_v30  ;;  %v3794_v9 = vpop.f32.mrb[81].mxu0  ;;  %v4020_v40 = vpop.f32.mrb[81].mxu1 }
 0x2e3   : > { %v5590_v3 = vadd.f32 %v3794_v9, %v7473_v42  ;;  %v5622_v16 = vadd.f32 %v4020_v40, %v7477_v54  ;;  %v3796_v18 = vpop.f32.mrb[82].mxu0  ;;  %v4022_v26 = vpop.f32.mrb[82].mxu1 }
 0x2e4   : > { %v5591_v13 = vadd.f32 %v3796_v18, %v7465_v19  ;;  %v5623_v27 = vadd.f32 %v4022_v26, %v7469_v30  ;;  %v3798_v0 = vpop.f32.mrb[83].mxu0  ;;  %v4024_v29 = vpop.f32.mrb[83].mxu1 }
 0x2e5   : > { %v5401_v50 = vpack.c.bf16 %v5590_v3, %v5589_v6  ;;  %v5402_v31 = vpack.c.bf16 %v5622_v16, %v5621_v17  ;;  %v5592_v25 = vadd.f32 %v3798_v0, %v7473_v42  ;;  %v5624_v33 = vadd.f32 %v4024_v29, %v7477_v54 }
 0x2e7   : > { %4685 = vst [vmem:[%s7213_s22 + $0x1a0] sm:$0xff] %v5401_v50  ;;  %4686 = vst [vmem:[%s7213_s22 + $0x1a8] sm:$0xff] %v5402_v31  ;;  %v5407_v35 = vpack.c.bf16 %v5592_v25, %v5591_v13  ;;  %v5408_v36 = vpack.c.bf16 %v5624_v33, %v5623_v27 }
 0x2e9   : > { %4691 = vst [vmem:[%s7213_s22 + $0x1d0] sm:$0xff] %v5407_v35  ;;  %4692 = vst [vmem:[%s7213_s22 + $0x1d8] sm:$0xff] %v5408_v36  ;;  %v3802_v38 = vpop.f32.mrb[84].mxu0  ;;  %v4028_v39 = vpop.f32.mrb[84].mxu1 }
 0x2ea   : > { %v5593_v44 = vadd.f32 %v3802_v38, %v7465_v19  ;;  %v5625_v52 = vadd.f32 %v4028_v39, %v7469_v30  ;;  %v3804_v10 = vpop.f32.mrb[85].mxu0  ;;  %v4030_v45 = vpop.f32.mrb[85].mxu1 }
 0x2eb   : > { %v5594_v20 = vadd.f32 %v3804_v10, %v7473_v42  ;;  %v5626_v46 = vadd.f32 %v4030_v45, %v7477_v54  ;;  %v3806_v47 = vpop.f32.mrb[86].mxu0  ;;  %v4032_v48 = vpop.f32.mrb[86].mxu1 }
 0x2ec   : > { %v5595_v32 = vadd.f32 %v3806_v47, %v7465_v19  ;;  %v5627_v59 = vadd.f32 %v4032_v48, %v7469_v30  ;;  %v3808_v51 = vpop.f32.mrb[87].mxu0  ;;  %v4034_v49 = vpop.f32.mrb[87].mxu1 }
 0x2ed   : > { %v5413_v58 = vpack.c.bf16 %v5594_v20, %v5593_v44  ;;  %v5414_v55 = vpack.c.bf16 %v5626_v46, %v5625_v52  ;;  %v5596_v43 = vadd.f32 %v3808_v51, %v7473_v42  ;;  %v5628_v56 = vadd.f32 %v4034_v49, %v7477_v54 }
 0x2ef   : > { %4697 = vst [vmem:[%s7213_s22 + $0x200] sm:$0xff] %v5413_v58  ;;  %4698 = vst [vmem:[%s7213_s22 + $0x208] sm:$0xff] %v5414_v55  ;;  %v5419_v34 = vpack.c.bf16 %v5596_v43, %v5595_v32  ;;  %v5420_v28 = vpack.c.bf16 %v5628_v56, %v5627_v59 }
 0x2f1   : > { %4703 = vst [vmem:[%s7213_s22 + $0x230] sm:$0xff] %v5419_v34  ;;  %4704 = vst [vmem:[%s7213_s22 + $0x238] sm:$0xff] %v5420_v28  ;;  %v3812_v41 = vpop.f32.mrb[88].mxu0  ;;  %v4038_v53 = vpop.f32.mrb[88].mxu1 }
 0x2f2   : > { %v5597_v62 = vadd.f32 %v3812_v41, %v7465_v19  ;;  %v5629_v4 = vadd.f32 %v4038_v53, %v7469_v30  ;;  %v3814_v7 = vpop.f32.mrb[89].mxu0  ;;  %v4040_v1 = vpop.f32.mrb[89].mxu1 }
 0x2f3   : > { %v5598_v5 = vadd.f32 %v3814_v7, %v7473_v42  ;;  %v5630_v23 = vadd.f32 %v4040_v1, %v7477_v54  ;;  %v3816_v12 = vpop.f32.mrb[90].mxu0  ;;  %v4042_v60 = vpop.f32.mrb[90].mxu1 }
 0x2f4   : > { %v5599_v14 = vadd.f32 %v3816_v12, %v7465_v19  ;;  %v5631_v22 = vadd.f32 %v4042_v60, %v7469_v30  ;;  %v3818_v21 = vpop.f32.mrb[91].mxu0  ;;  %v4044_v24 = vpop.f32.mrb[91].mxu1 }
 0x2f5   : > { %v5425_v37 = vpack.c.bf16 %v5598_v5, %v5597_v62  ;;  %v5426_v8 = vpack.c.bf16 %v5630_v23, %v5629_v4  ;;  %v5600_v57 = vadd.f32 %v3818_v21, %v7473_v42  ;;  %v5632_v61 = vadd.f32 %v4044_v24, %v7477_v54 }
 0x2f7   : > { %4709 = vst [vmem:[%s7213_s22 + $0x260] sm:$0xff] %v5425_v37  ;;  %4710 = vst [vmem:[%s7213_s22 + $0x268] sm:$0xff] %v5426_v8  ;;  %v5431_v63 = vpack.c.bf16 %v5600_v57, %v5599_v14  ;;  %v5432_v11 = vpack.c.bf16 %v5632_v61, %v5631_v22 }
 0x2f9   : > { %4715 = vst [vmem:[%s7213_s22 + $0x290] sm:$0xff] %v5431_v63  ;;  %4716 = vst [vmem:[%s7213_s22 + $0x298] sm:$0xff] %v5432_v11  ;;  %v3822_v15 = vpop.f32.mrb[92].mxu0  ;;  %v4048_v2 = vpop.f32.mrb[92].mxu1 }
 0x2fa   : > { %v5601_v6 = vadd.f32 %v3822_v15, %v7465_v19  ;;  %v5633_v17 = vadd.f32 %v4048_v2, %v7469_v30  ;;  %v3824_v9 = vpop.f32.mrb[93].mxu0  ;;  %v4050_v40 = vpop.f32.mrb[93].mxu1 }
 0x2fb   : > { %v5602_v3 = vadd.f32 %v3824_v9, %v7473_v42  ;;  %v5634_v16 = vadd.f32 %v4050_v40, %v7477_v54  ;;  %v3826_v18 = vpop.f32.mrb[94].mxu0  ;;  %v4052_v26 = vpop.f32.mrb[94].mxu1 }
 0x2fc   : > { %v5603_v13 = vadd.f32 %v3826_v18, %v7465_v19  ;;  %v5635_v27 = vadd.f32 %v4052_v26, %v7469_v30  ;;  %v3828_v0 = vpop.f32.mrb[95].mxu0  ;;  %v4054_v29 = vpop.f32.mrb[95].mxu1 }
 0x2fd   : > { %v5437_v50 = vpack.c.bf16 %v5602_v3, %v5601_v6  ;;  %v5438_v31 = vpack.c.bf16 %v5634_v16, %v5633_v17  ;;  %v5604_v25 = vadd.f32 %v3828_v0, %v7473_v42  ;;  %v5636_v33 = vadd.f32 %v4054_v29, %v7477_v54 }
 0x2ff   : > { %4721 = vst [vmem:[%s7213_s22 + $0x2c0] sm:$0xff] %v5437_v50  ;;  %4722 = vst [vmem:[%s7213_s22 + $0x2c8] sm:$0xff] %v5438_v31  ;;  %v5443_v19 = vpack.c.bf16 %v5604_v25, %v5603_v13  ;;  %v5444_v30 = vpack.c.bf16 %v5636_v33, %v5635_v27 }
 0x301   : > { %4727 = vst [vmem:[%s7213_s22 + $0x2f0] sm:$0xff] %v5443_v19  ;;  %4728 = vst [vmem:[%s7213_s22 + $0x2f8] sm:$0xff] %v5444_v30 }
 0x302   : > { %6595 = shalt.err (!%p6592_p11)
}
 0x303   : > { %s6596_s9 = scalar_lea.hbm %s7576_s8, 12288  ;;  %s6600_s29 = scalar_lea.hbm %s7634_s3, 24576 }
 0x304   : > { %p6597_p0 = scmp.ne.s32.totalorder %s7576_s8, %s6596_s9  ;;  %p6601_p6 = scmp.lt.u32.totalorder %s7576_s8, %s7634_s3 }
 0x305   : > { %p6602_p7 = scmp.lt.u32.totalorder %s6600_s29, %s6596_s9  ;;  %p6604_p8 = scmp.lt.u32.totalorder %s6596_s9, %s7576_s8 }
 0x306   : > { %p6598_p4 = pnand %p6597_p0, %p7649_p12 }
 0x307   : > { %p6603_p2 = por %p6602_p7, %p6601_p6 }
 0x308   : > { %p6599_p13 = pneg %p6598_p4 }
 0x309   : > { %p6605_p1 = por %p6604_p8, %p6603_p2 }
 0x30b   : > { %p6606_p10 = pnand %p6605_p1, %p6599_p13 }
 0x30d   : > { %6609 = shalt.err (!%p6606_p10)
}
 0x30e   : > { %s6678_s22 = smov 768   ;;  %s6679_s24 = smov 48  }
 0x30f   : > { %5841 = dma.vmem_to_hbm [thread:$0]  (%p7649_p12), %s7578_s6, 12288, %s7576_s8, %s4730_s26, %s6678_s22, %s6678_s22, %s6679_s24  }
 0x310 PF: > { %s4761_s15 = sand.u32 1, %s6648_s12   ;;  %p7650_p3 = scmp.ne.s32.totalorder %s7642_s23, 0 }
 0x311   : > { %p7651_p5 = scmp.ge.s32.totalorder %s6668_s17, 2  ;;  %s4762_s7 = scalar_lea.sflag [#allocation4], %s4761_s15 }
 0x313   : > { %p5855_p9 = pnand %p7651_p5, %p7650_p3 }
 0x315   : > { %6643 = dma.done.wait (!%p5855_p9), %s4762_s7, 12288  }
 0x316   : > { %6645 = vsyncadd (!%p5855_p9), %s4762_s7, 4294955008  ;;  %s20_s17 = sadd.s32 1, %s6668_s17   ;;  %s7652_s12 = smov %s6652_s13 }
 0x317   : > { %p17_p11 = scmp.ge.s32.totalorder %s20_s17, 4   ;;  %s7653_s13 = smov %s6656_s14 }
 0x318   : > { %s7654_s14 = smov %s6842_s30  ;;  %s7655_s15 = smov %s6664_s16 }
 0x319   : > { %s7656_s16 = smov %s7658_s11  ;;  %19 = sbr.rel (!%p17_p11) target bundleno = 7 (0x7), region = 85 }
 0x320   :  { %4767 = vsyncpa [#allocation3], 1 }
 0x321   :  { %4769 = vsyncpa [#allocation3 + $0x1], 1 }
 0x322   :  { %4770 = vsyncpa [#allocation6], 1 }
 0x323   :  { %4771 = vsyncpa [#allocation4], 1 }
 0x324   :  { %4773 = vsyncpa [#allocation4 + $0x1], 1 }

</bundles_post_ra>
